<compile_context>
chip_gen: v7x
topology: tpu7x:2x2x1
jax: 0.10.0
libtpu: 0.0.40
codegen_flags: <defaults>
</compile_context>

<pallas_src>
import numpy as np
import jax
import jax.numpy as jnp
from jax import lax
from jax.experimental import pallas as pl
from jax.experimental.pallas import tpu as pltpu


def _round_up(x, m):
    return (x + m - 1) // m * m


def _bilstm_last_hidden_kernel(x_ref, mask_ref, sel_ref, wih_ref, whh_ref, b_ref,
                               out_ref, gx_ref, valid_ref):
    """One N/P tile of the fused, row-paired, masked BiLSTM (last hidden state only).

    x_ref    : (W, R, P*2E) bf16  packed [fwd-time | rev-time] char embeddings per pair
    mask_ref : (W, R, 2P)   bf16  per pair: [fwd-time mask, rev-time mask]
    sel_ref  : (2P, P*2H)   bf16  mask -> state-column broadcast matrix
    wih_ref  : (P*2E, P*8H) bf16  per-gate block-diagonal packed input weights
    whh_ref  : (P*2H, P*8H) bf16  per-gate block-diagonal packed recurrent weights
    b_ref    : (1, P*8H)    f32   packed bias (b_ih + b_hh folded)
    out_ref  : (R, P*2H)    f32   row-paired [fwd | bwd] last hidden state
    gx_ref   : (W, R, P*8H) f32   VMEM scratch: hoisted input projection, all steps
    valid_ref: (W, R, P*2H) f32   VMEM scratch: hoisted masked-update validity, all steps
    """
    W, R, _ = x_ref.shape
    S, G = whh_ref.shape                                    # S = P*2H, G = P*8H

    # ---- hoisted input projection: ONE MXU matmul per tile for all timesteps and both
    # directions (the backward time reversal is pre-baked into the packed x / wih).
    x_all = x_ref[...].reshape(W * R, -1)
    gx = jnp.dot(x_all, wih_ref[...], preferred_element_type=jnp.float32) + b_ref[...]
    gx_ref[...] = gx.reshape(W, R, G)

    # ---- hoisted masked-update validity: a tiny MXU matmul broadcasts each pair's
    # fwd/bwd char mask across its 2H state columns -> no per-step lane selects.
    m_all = mask_ref[...].reshape(W * R, -1)
    valid_ref[...] = jnp.dot(m_all, sel_ref[...],
                             preferred_element_type=jnp.float32).reshape(W, R, S)

    h0 = jnp.zeros((R, S), jnp.float32)
    c0 = jnp.zeros((R, S), jnp.float32)
    hb0 = jnp.zeros((R, S), jnp.bfloat16)                   # bf16 shadow of h for the MXU

    def step(t, carry):
        h, c, h_bf = carry
        gates = gx_ref[t] + jnp.dot(h_bf, whh_ref[...],
                                    preferred_element_type=jnp.float32)   # (R, G) f32
        i = jax.nn.sigmoid(gates[:, 0 * S:1 * S])           # every slice: full 128-lane tiles
        f = jax.nn.sigmoid(gates[:, 1 * S:2 * S])
        g = jnp.tanh(gates[:, 2 * S:3 * S])
        o = jax.nn.sigmoid(gates[:, 3 * S:4 * S])
        c_new = f * c + i * g
        h_new = o * jnp.tanh(c_new)
        v = valid_ref[t] > 0.0                              # pack_padded_sequence semantics
        h = jnp.where(v, h_new, h)
        c = jnp.where(v, c_new, c)
        h_bf = jnp.where(v, h_new.astype(jnp.bfloat16), h_bf)
        return h, c, h_bf

    h, _, _ = lax.fori_loop(0, W, step, (h0, c0, hb0), unroll=True)
    out_ref[...] = h                                        # lane-dense (R, P*2H) store


def _pack_bilstm_weights(params, P):
    """Pack per-direction PyTorch-layout weights into the row-paired fused layout.

    Packed gate-column layout (width P*8H), for each gate k in (i, f, g, o):
        [ pair_0:[fwd_k | bwd_k] | pair_1:[fwd_k | bwd_k] | ... ]   (each half H wide)
    so each gate slice of the fused gates is P*2H lanes wide and matches the row-paired
    [fwd | bwd] state layout; wih/whh become per-gate block-diagonal over the pairs.
    """
    E, H = params["wih_f"].shape[0], params["whh_f"].shape[0]
    H2 = 2 * H

    def fuse_cols(mf, mb):
        parts = []
        for k in range(4):                                  # PyTorch gate order i, f, g, o
            parts.append(mf[..., k * H:(k + 1) * H])
            parts.append(mb[..., k * H:(k + 1) * H])
        return jnp.concatenate(parts, axis=-1)              # (..., 8H)

    zE = jnp.zeros((E, 4 * H), jnp.float32)
    wih2 = fuse_cols(jnp.concatenate([params["wih_f"], zE], 0),
                     jnp.concatenate([zE, params["wih_b"]], 0))          # (2E, 8H)
    zH = jnp.zeros((H, 4 * H), jnp.float32)
    whh2 = fuse_cols(jnp.concatenate([params["whh_f"], zH], 0),
                     jnp.concatenate([zH, params["whh_b"]], 0))          # (2H, 8H)
    b2 = fuse_cols(params["b_f"], params["b_b"])                         # (1, 8H)

    def pair_block_diag(m):                                 # (D, 8H) -> (P*D, P*8H)
        D = m.shape[0]
        m4 = m.reshape(D, 4, H2)
        out = jnp.zeros((P, D, 4, P, H2), m.dtype)
        for p in range(P):
            out = out.at[p, :, :, p, :].set(m4)
        return out.reshape(P * D, 4 * P * H2)

    wih = pair_block_diag(wih2).astype(jnp.bfloat16)                     # (P*2E, P*8H)
    whh = pair_block_diag(whh2).astype(jnp.bfloat16)                     # (P*2H, P*8H)
    b = jnp.broadcast_to(b2.reshape(1, 4, 1, H2),
                         (1, 4, P, H2)).reshape(1, 4 * P * H2).astype(jnp.float32)

    sel = jnp.zeros((P, 2, P, H2), jnp.float32)             # mask -> state-col broadcaster
    for p in range(P):
        sel = sel.at[p, 0, p, :H].set(1.0)                  # fwd-time mask -> fwd columns
        sel = sel.at[p, 1, p, H:].set(1.0)                  # rev-time mask -> bwd columns
    sel = sel.reshape(2 * P, P * H2).astype(jnp.bfloat16)
    return wih, whh, b, sel


def bilstm_last_hidden(x, mask_fb, sel, wih, whh, b, *, block_rows):
    W, Rt, P2E = x.shape
    S, G = whh.shape
    twoP = mask_fb.shape[-1]
    assert Rt % block_rows == 0
    # Per-tile VMEM footprint estimate (gx/valid value + scratch, double-buffered bf16
    # streams, resident packed weights, output) with headroom.
    lane = lambda n: _round_up(n, 128)
    est = (2 * W * block_rows * (G + S) * 4
           + 2 * 2 * W * block_rows * (lane(P2E) + lane(twoP))
           + 2 * block_rows * S * 4
           + 4 * (P2E + S + 8) * G * 2)
    vmem_limit = int(min(112 * 2 ** 20, max(32 * 2 ** 20, est + (8 << 20))))
    return pl.pallas_call(
        _bilstm_last_hidden_kernel,
        out_shape=jax.ShapeDtypeStruct((Rt, S), jnp.float32),
        grid=(Rt // block_rows,),
        in_specs=[
            pl.BlockSpec((W, block_rows, P2E), lambda i: (0, i, 0)),   # streamed packed x
            pl.BlockSpec((W, block_rows, twoP), lambda i: (0, i, 0)),  # streamed fwd/bwd mask
            pl.BlockSpec((twoP, S), lambda i: (0, 0)),                 # mask broadcaster
            pl.BlockSpec((P2E, G), lambda i: (0, 0)),                  # weights stay resident
            pl.BlockSpec((S, G), lambda i: (0, 0)),
            pl.BlockSpec((1, G), lambda i: (0, 0)),
        ],
        out_specs=pl.BlockSpec((block_rows, S), lambda i: (i, 0)),
        scratch_shapes=[pltpu.VMEM((W, block_rows, G), jnp.float32),   # gx staging
                        pltpu.VMEM((W, block_rows, S), jnp.float32)],  # valid staging
        compiler_params=pltpu.CompilerParams(
            dimension_semantics=("parallel",),      # megacore-shard the N/P grid on v7x
            vmem_limit_bytes=vmem_limit),
    )(x, mask_fb, sel, wih, whh, b)


def character_level_embedder_forward(char_ids, params, *, block_n=512, pair=4):
    """char_ids: (B, S, W) int32 -> (B, S, 2*lstm_dim) float32.

    pair = row-pairing factor P: recurrent matmul contraction is P*2H.  Use 4 on
    v6e/v7x (K=256) and 2 on v5e (K=128).  block_n counts original (B*S) rows; keep the
    resulting grid >= ~8 tiles on v7x so both TensorCores get work.
    """
    assert char_ids.ndim == 3
    B, S, W = char_ids.shape
    E = params["embedding"].shape[1]
    H = params["whh_f"].shape[0]
    P = pair
    N = B * S

    ids = char_ids.reshape(N, W)
    nb = max(8 * P, min(_round_up(block_n, 8 * P), _round_up(N, 8 * P)))
    n_pad = _round_up(N, nb)
    if n_pad != N:
        ids = jnp.pad(ids, ((0, n_pad - N), (0, 0)))   # padded rows all-PAD -> mask 0 -> h 0

    # Char embeddings with the backward direction's time reversal baked in:
    # per pair, the feature dim is [E fwd-time | E rev-time].
    x = params["embedding"][ids].astype(jnp.bfloat16)                    # (N_pad, W, E)
    x = jnp.concatenate([x, x[:, ::-1, :]], axis=-1)                     # (N_pad, W, 2E)
    x = x.reshape(n_pad // P, P, W, 2 * E).transpose(2, 0, 1, 3)
    x = x.reshape(W, n_pad // P, P * 2 * E)                              # (W, N/P, P*2E)

    mask = (ids != 0).astype(jnp.bfloat16)                               # (N_pad, W)
    mask_fb = jnp.stack([mask, mask[:, ::-1]], axis=-1)                  # (N_pad, W, 2)
    mask_fb = mask_fb.reshape(n_pad // P, P, W, 2).transpose(2, 0, 1, 3)
    mask_fb = mask_fb.reshape(W, n_pad // P, 2 * P)                      # (W, N/P, 2P)

    wih, whh, b, sel = _pack_bilstm_weights(params, P)

    out = bilstm_last_hidden(x, mask_fb, sel, wih, whh, b, block_rows=nb // P)
    out = out.reshape(n_pad, 2 * H)[:N]                                  # unpack pairs (free)
    return out.reshape(B, S, 2 * H)


def make_params(key, char_count, emb_dim, lstm_dim):
    ks = jax.random.split(key, 7)
    H = lstm_dim
    scale = 1.0 / np.sqrt(H)

    def u(k, shape):
        return jax.random.uniform(k, shape, jnp.float32, -scale, scale)

    return {
        "embedding": jax.random.normal(ks[0], (char_count, emb_dim), jnp.float32),
        # forward direction (PyTorch gate order i, f, g, o; W_ih/W_hh stored transposed)
        "wih_f": u(ks[1], (emb_dim, 4 * H)),
        "whh_f": u(ks[2], (H, 4 * H)),
        "b_f": u(ks[3], (1, 4 * H)),          # b_ih + b_hh folded into one bias
        # backward direction
        "wih_b": u(ks[4], (emb_dim, 4 * H)),
        "whh_b": u(ks[5], (H, 4 * H)),
        "b_b": u(ks[6], (1, 4 * H)),
    }


def reference_forward(char_ids, params):
    """Pure-JAX f32 reference of the same masked BiLSTM semantics."""
    B, S, W = char_ids.shape
    N = B * S
    H = params["whh_f"].shape[0]
    ids = char_ids.reshape(N, W)
    x = params["embedding"][ids]                       # (N, W, E)
    mask = (ids != 0).astype(jnp.float32)              # (N, W)

    def cell(carry, inp, wih, whh, b):
        h, c = carry
        x_t, m_t = inp
        gates = x_t @ wih + h @ whh + b
        i = jax.nn.sigmoid(gates[:, :H])
        f = jax.nn.sigmoid(gates[:, H:2 * H])
        g = jnp.tanh(gates[:, 2 * H:3 * H])
        o = jax.nn.sigmoid(gates[:, 3 * H:])
        c_new = f * c + i * g
        h_new = o * jnp.tanh(c_new)
        m = m_t[:, None]
        return (m * h_new + (1 - m) * h, m * c_new + (1 - m) * c), None

    xs = jnp.transpose(x, (1, 0, 2))                   # (W, N, E)
    ms = mask.T                                        # (W, N)
    h0 = jnp.zeros((N, H), jnp.float32)
    c0 = jnp.zeros((N, H), jnp.float32)

    (hf, _), _ = lax.scan(
        lambda carry, inp: cell(carry, inp, params["wih_f"], params["whh_f"], params["b_f"]),
        (h0, c0), (xs, ms))
    (hb, _), _ = lax.scan(
        lambda carry, inp: cell(carry, inp, params["wih_b"], params["whh_b"], params["b_b"]),
        (h0, c0), (xs[::-1], ms[::-1]))
    return jnp.concatenate([hf, hb], axis=-1).reshape(B, S, 2 * H)


if __name__ == "__main__":
    config = {
        "input_name": "chars",
        "char_count": 50,
        "char_embedding_dim": 16,
        "lstm_dim": 32,
        "lstm_num_layers": 1,
    }
    B, S, W = 2, 3, 8

    key = jax.random.PRNGKey(0)
    k_ids, k_len, k_params = jax.random.split(key, 3)

    # Padded char ids: nonzero chars up to a per-word length, 0 = padding.
    raw_ids = jax.random.randint(k_ids, (B, S, W), 1, config["char_count"])
    lens = jax.random.randint(k_len, (B, S), 1, W + 1)
    pos = jnp.arange(W)
    char_ids = jnp.where(pos[None, None, :] < lens[..., None], raw_ids, 0).astype(jnp.int32)

    params = make_params(k_params, config["char_count"],
                         config["char_embedding_dim"], config["lstm_dim"])

    out = character_level_embedder_forward(char_ids, params)
    out = jax.block_until_ready(out)

    expected_shape = (B, S, 2 * config["lstm_dim"])
    assert out.shape == expected_shape, (out.shape, expected_shape)

    ref = jax.block_until_ready(reference_forward(char_ids, params))
    # Kernel uses bf16 MXU operands (f32 accumulate, f32 activations/state), so compare
    # against the pure-f32 reference with a correspondingly wider tolerance.
    err = float(jnp.max(jnp.abs(out - ref)))
    assert err < 2.5e-2, err

    print("KERNEL_OK")
</pallas_src>

<mosaic_0001>
module attributes {stable_mosaic.version = 11 : i64} {
  func.func @_bilstm_last_hidden_kernel(%arg0: i32, %arg1: memref<8x8x128xbf16, #tpu.memory_space<vmem>>, %arg2: memref<8x8x8xbf16, #tpu.memory_space<vmem>>, %arg3: memref<8x256xbf16, #tpu.memory_space<vmem>>, %arg4: memref<128x1024xbf16, #tpu.memory_space<vmem>>, %arg5: memref<256x1024xbf16, #tpu.memory_space<vmem>>, %arg6: memref<1x1024xf32, #tpu.memory_space<vmem>>, %arg7: memref<8x256xf32, #tpu.memory_space<vmem>>, %arg8: memref<8x8x1024xf32, #tpu.memory_space<vmem>>, %arg9: memref<8x8x256xf32, #tpu.memory_space<vmem>>) attributes {dimension_semantics = [#tpu.dimension_semantics<parallel>], iteration_bounds = array<i64: 1>, scalar_prefetch = 0 : i64, scratch_operands = 2 : i64, tpu.core_type = #tpu.core_type<tc>, window_params = [{transform_indices = @transform_0, window_bounds = array<i64: 8, 8, 128>}, {transform_indices = @transform_1, window_bounds = array<i64: 8, 8, 8>}, {pipeline_mode = #tpu.pipeline_mode<synchronous>, transform_indices = @transform_2, window_bounds = array<i64: 8, 256>}, {pipeline_mode = #tpu.pipeline_mode<synchronous>, transform_indices = @transform_3, window_bounds = array<i64: 128, 1024>}, {pipeline_mode = #tpu.pipeline_mode<synchronous>, transform_indices = @transform_4, window_bounds = array<i64: 256, 1024>}, {pipeline_mode = #tpu.pipeline_mode<synchronous>, transform_indices = @transform_5, window_bounds = array<i64: 1, 1024>}, {transform_indices = @transform_6, window_bounds = array<i64: 8, 256>}]} {
    %c0 = arith.constant 0 : index
    %c0_0 = arith.constant 0 : index
    %c0_1 = arith.constant 0 : index
    %0 = vector.load %arg1[%c0, %c0_0, %c0_1] : memref<8x8x128xbf16, #tpu.memory_space<vmem>>, vector<8x8x128xbf16>
    %1 = vector.shape_cast %0 : vector<8x8x128xbf16> to vector<64x128xbf16>
    %c0_2 = arith.constant 0 : index
    %c0_3 = arith.constant 0 : index
    %2 = vector.load %arg4[%c0_2, %c0_3] : memref<128x1024xbf16, #tpu.memory_space<vmem>>, vector<128x1024xbf16>
    %cst = arith.constant dense<0.000000e+00> : vector<64x1024xf32>
    %3 = tpu.matmul %1, %2, %cst {dimension_numbers = #tpu.dot_dimension_numbers<[1], [0], [0], [1], [0, 0, 1, 1], [], []>} : vector<64x128xbf16>, vector<128x1024xbf16>, vector<64x1024xf32> -> vector<64x1024xf32>
    %c0_4 = arith.constant 0 : index
    %c0_5 = arith.constant 0 : index
    %4 = vector.load %arg6[%c0_4, %c0_5] : memref<1x1024xf32, #tpu.memory_space<vmem>>, vector<1x1024xf32>
    %5 = vector.broadcast %4 : vector<1x1024xf32> to vector<64x1024xf32>
    %6 = arith.addf %3, %5 : vector<64x1024xf32>
    %7 = vector.shape_cast %6 : vector<64x1024xf32> to vector<8x8x1024xf32>
    %c0_6 = arith.constant 0 : index
    %c0_7 = arith.constant 0 : index
    %c0_8 = arith.constant 0 : index
    %8 = vector.load %arg8[%c0_6, %c0_7, %c0_8] : memref<8x8x1024xf32, #tpu.memory_space<vmem>>, vector<8x8x1024xf32>
    tpu.vector_store %arg8[%c0_6, %c0_7, %c0_8], %7 {strides = array<i32>} : memref<8x8x1024xf32, #tpu.memory_space<vmem>>, vector<8x8x1024xf32>,
    %c0_9 = arith.constant 0 : index
    %c0_10 = arith.constant 0 : index
    %c0_11 = arith.constant 0 : index
    %9 = vector.load %arg2[%c0_9, %c0_10, %c0_11] : memref<8x8x8xbf16, #tpu.memory_space<vmem>>, vector<8x8x8xbf16>
    %10 = vector.shape_cast %9 : vector<8x8x8xbf16> to vector<64x8xbf16>
    %c0_12 = arith.constant 0 : index
    %c0_13 = arith.constant 0 : index
    %11 = vector.load %arg3[%c0_12, %c0_13] : memref<8x256xbf16, #tpu.memory_space<vmem>>, vector<8x256xbf16>
    %cst_14 = arith.constant dense<0.000000e+00> : vector<64x256xf32>
    %12 = tpu.matmul %10, %11, %cst_14 {dimension_numbers = #tpu.dot_dimension_numbers<[1], [0], [0], [1], [0, 0, 1, 1], [], []>} : vector<64x8xbf16>, vector<8x256xbf16>, vector<64x256xf32> -> vector<64x256xf32>
    %13 = vector.shape_cast %12 : vector<64x256xf32> to vector<8x8x256xf32>
    %c0_15 = arith.constant 0 : index
    %c0_16 = arith.constant 0 : index
    %c0_17 = arith.constant 0 : index
    %14 = vector.load %arg9[%c0_15, %c0_16, %c0_17] : memref<8x8x256xf32, #tpu.memory_space<vmem>>, vector<8x8x256xf32>
    tpu.vector_store %arg9[%c0_15, %c0_16, %c0_17], %13 {strides = array<i32>} : memref<8x8x256xf32, #tpu.memory_space<vmem>>, vector<8x8x256xf32>,
    %cst_18 = arith.constant 0.000000e+00 : f32
    %15 = vector.broadcast %cst_18 : f32 to vector<8x256xf32>
    %cst_19 = arith.constant 0.000000e+00 : f32
    %16 = vector.broadcast %cst_19 : f32 to vector<8x256xf32>
    %cst_20 = arith.constant 0.000000e+00 : bf16
    %17 = vector.broadcast %cst_20 : bf16 to vector<8x256xbf16>
    %c0_i32 = arith.constant 0 : i32
    %18 = arith.index_cast %c0_i32 : i32 to index
    %c0_21 = arith.constant 0 : index
    %c0_22 = arith.constant 0 : index
    %19 = vector.load %arg8[%18, %c0_21, %c0_22] : memref<8x8x1024xf32, #tpu.memory_space<vmem>>, vector<1x8x1024xf32>
    %20 = vector.shape_cast %19 : vector<1x8x1024xf32> to vector<8x1024xf32>
    %c0_23 = arith.constant 0 : index
    %c0_24 = arith.constant 0 : index
    %21 = vector.load %arg5[%c0_23, %c0_24] : memref<256x1024xbf16, #tpu.memory_space<vmem>>, vector<256x1024xbf16>
    %cst_25 = arith.constant dense<0.000000e+00> : vector<8x1024xf32>
    %22 = tpu.matmul %17, %21, %cst_25 {dimension_numbers = #tpu.dot_dimension_numbers<[1], [0], [0], [1], [0, 0, 1, 1], [], []>} : vector<8x256xbf16>, vector<256x1024xbf16>, vector<8x1024xf32> -> vector<8x1024xf32>
    %23 = arith.addf %20, %22 : vector<8x1024xf32>
    %24 = vector.extract_strided_slice %23 {offsets = [0, 0], sizes = [8, 256], strides = [1, 1]} : vector<8x1024xf32> to vector<8x256xf32>
    %25 = arith.negf %24 : vector<8x256xf32>
    %26 = math.exp %25 : vector<8x256xf32>
    %cst_26 = arith.constant 1.000000e+00 : f32
    %27 = vector.broadcast %cst_26 : f32 to vector<8x256xf32>
    %28 = arith.addf %27, %26 : vector<8x256xf32>
    %29 = arith.divf %27, %28 : vector<8x256xf32>
    %30 = vector.extract_strided_slice %23 {offsets = [0, 256], sizes = [8, 256], strides = [1, 1]} : vector<8x1024xf32> to vector<8x256xf32>
    %31 = arith.negf %30 : vector<8x256xf32>
    %32 = math.exp %31 : vector<8x256xf32>
    %cst_27 = arith.constant 1.000000e+00 : f32
    %33 = vector.broadcast %cst_27 : f32 to vector<8x256xf32>
    %34 = arith.addf %33, %32 : vector<8x256xf32>
    %35 = arith.divf %33, %34 : vector<8x256xf32>
    %36 = vector.extract_strided_slice %23 {offsets = [0, 512], sizes = [8, 256], strides = [1, 1]} : vector<8x1024xf32> to vector<8x256xf32>
    %37 = math.tanh %36 : vector<8x256xf32>
    %38 = vector.extract_strided_slice %23 {offsets = [0, 768], sizes = [8, 256], strides = [1, 1]} : vector<8x1024xf32> to vector<8x256xf32>
    %39 = arith.negf %38 : vector<8x256xf32>
    %40 = math.exp %39 : vector<8x256xf32>
    %cst_28 = arith.constant 1.000000e+00 : f32
    %41 = vector.broadcast %cst_28 : f32 to vector<8x256xf32>
    %42 = arith.addf %41, %40 : vector<8x256xf32>
    %43 = arith.divf %41, %42 : vector<8x256xf32>
    %44 = arith.mulf %35, %16 : vector<8x256xf32>
    %45 = arith.mulf %29, %37 : vector<8x256xf32>
    %46 = arith.addf %44, %45 : vector<8x256xf32>
    %47 = math.tanh %46 : vector<8x256xf32>
    %48 = arith.mulf %43, %47 : vector<8x256xf32>
    %49 = arith.index_cast %c0_i32 : i32 to index
    %c0_29 = arith.constant 0 : index
    %c0_30 = arith.constant 0 : index
    %50 = vector.load %arg9[%49, %c0_29, %c0_30] : memref<8x8x256xf32, #tpu.memory_space<vmem>>, vector<1x8x256xf32>
    %51 = vector.shape_cast %50 : vector<1x8x256xf32> to vector<8x256xf32>
    %cst_31 = arith.constant 0.000000e+00 : f32
    %52 = vector.broadcast %cst_31 : f32 to vector<8x256xf32>
    %53 = arith.cmpf ogt, %51, %52 : vector<8x256xf32>
    %54 = arith.select %53, %48, %15 : vector<8x256xi1>, vector<8x256xf32>
    %55 = arith.select %53, %46, %16 : vector<8x256xi1>, vector<8x256xf32>
    %56 = arith.truncf %48 : vector<8x256xf32> to vector<8x256xbf16>
    %57 = arith.select %53, %56, %17 : vector<8x256xi1>, vector<8x256xbf16>
    %c1_i32 = arith.constant 1 : i32
    %58 = arith.index_cast %c1_i32 : i32 to index
    %c0_32 = arith.constant 0 : index
    %c0_33 = arith.constant 0 : index
    %59 = vector.load %arg8[%58, %c0_32, %c0_33] : memref<8x8x1024xf32, #tpu.memory_space<vmem>>, vector<1x8x1024xf32>
    %60 = vector.shape_cast %59 : vector<1x8x1024xf32> to vector<8x1024xf32>
    %c0_34 = arith.constant 0 : index
    %c0_35 = arith.constant 0 : index
    %61 = vector.load %arg5[%c0_34, %c0_35] : memref<256x1024xbf16, #tpu.memory_space<vmem>>, vector<256x1024xbf16>
    %cst_36 = arith.constant dense<0.000000e+00> : vector<8x1024xf32>
    %62 = tpu.matmul %57, %61, %cst_36 {dimension_numbers = #tpu.dot_dimension_numbers<[1], [0], [0], [1], [0, 0, 1, 1], [], []>} : vector<8x256xbf16>, vector<256x1024xbf16>, vector<8x1024xf32> -> vector<8x1024xf32>
    %63 = arith.addf %60, %62 : vector<8x1024xf32>
    %64 = vector.extract_strided_slice %63 {offsets = [0, 0], sizes = [8, 256], strides = [1, 1]} : vector<8x1024xf32> to vector<8x256xf32>
    %65 = arith.negf %64 : vector<8x256xf32>
    %66 = math.exp %65 : vector<8x256xf32>
    %cst_37 = arith.constant 1.000000e+00 : f32
    %67 = vector.broadcast %cst_37 : f32 to vector<8x256xf32>
    %68 = arith.addf %67, %66 : vector<8x256xf32>
    %69 = arith.divf %67, %68 : vector<8x256xf32>
    %70 = vector.extract_strided_slice %63 {offsets = [0, 256], sizes = [8, 256], strides = [1, 1]} : vector<8x1024xf32> to vector<8x256xf32>
    %71 = arith.negf %70 : vector<8x256xf32>
    %72 = math.exp %71 : vector<8x256xf32>
    %cst_38 = arith.constant 1.000000e+00 : f32
    %73 = vector.broadcast %cst_38 : f32 to vector<8x256xf32>
    %74 = arith.addf %73, %72 : vector<8x256xf32>
    %75 = arith.divf %73, %74 : vector<8x256xf32>
    %76 = vector.extract_strided_slice %63 {offsets = [0, 512], sizes = [8, 256], strides = [1, 1]} : vector<8x1024xf32> to vector<8x256xf32>
    %77 = math.tanh %76 : vector<8x256xf32>
    %78 = vector.extract_strided_slice %63 {offsets = [0, 768], sizes = [8, 256], strides = [1, 1]} : vector<8x1024xf32> to vector<8x256xf32>
    %79 = arith.negf %78 : vector<8x256xf32>
    %80 = math.exp %79 : vector<8x256xf32>
    %cst_39 = arith.constant 1.000000e+00 : f32
    %81 = vector.broadcast %cst_39 : f32 to vector<8x256xf32>
    %82 = arith.addf %81, %80 : vector<8x256xf32>
    %83 = arith.divf %81, %82 : vector<8x256xf32>
    %84 = arith.mulf %75, %55 : vector<8x256xf32>
    %85 = arith.mulf %69, %77 : vector<8x256xf32>
    %86 = arith.addf %84, %85 : vector<8x256xf32>
    %87 = math.tanh %86 : vector<8x256xf32>
    %88 = arith.mulf %83, %87 : vector<8x256xf32>
    %89 = arith.index_cast %c1_i32 : i32 to index
    %c0_40 = arith.constant 0 : index
    %c0_41 = arith.constant 0 : index
    %90 = vector.load %arg9[%89, %c0_40, %c0_41] : memref<8x8x256xf32, #tpu.memory_space<vmem>>, vector<1x8x256xf32>
    %91 = vector.shape_cast %90 : vector<1x8x256xf32> to vector<8x256xf32>
    %cst_42 = arith.constant 0.000000e+00 : f32
    %92 = vector.broadcast %cst_42 : f32 to vector<8x256xf32>
    %93 = arith.cmpf ogt, %91, %92 : vector<8x256xf32>
    %94 = arith.select %93, %88, %54 : vector<8x256xi1>, vector<8x256xf32>
    %95 = arith.select %93, %86, %55 : vector<8x256xi1>, vector<8x256xf32>
    %96 = arith.truncf %88 : vector<8x256xf32> to vector<8x256xbf16>
    %97 = arith.select %93, %96, %57 : vector<8x256xi1>, vector<8x256xbf16>
    %c2_i32 = arith.constant 2 : i32
    %98 = arith.index_cast %c2_i32 : i32 to index
    %c0_43 = arith.constant 0 : index
    %c0_44 = arith.constant 0 : index
    %99 = vector.load %arg8[%98, %c0_43, %c0_44] : memref<8x8x1024xf32, #tpu.memory_space<vmem>>, vector<1x8x1024xf32>
    %100 = vector.shape_cast %99 : vector<1x8x1024xf32> to vector<8x1024xf32>
    %c0_45 = arith.constant 0 : index
    %c0_46 = arith.constant 0 : index
    %101 = vector.load %arg5[%c0_45, %c0_46] : memref<256x1024xbf16, #tpu.memory_space<vmem>>, vector<256x1024xbf16>
    %cst_47 = arith.constant dense<0.000000e+00> : vector<8x1024xf32>
    %102 = tpu.matmul %97, %101, %cst_47 {dimension_numbers = #tpu.dot_dimension_numbers<[1], [0], [0], [1], [0, 0, 1, 1], [], []>} : vector<8x256xbf16>, vector<256x1024xbf16>, vector<8x1024xf32> -> vector<8x1024xf32>
    %103 = arith.addf %100, %102 : vector<8x1024xf32>
    %104 = vector.extract_strided_slice %103 {offsets = [0, 0], sizes = [8, 256], strides = [1, 1]} : vector<8x1024xf32> to vector<8x256xf32>
    %105 = arith.negf %104 : vector<8x256xf32>
    %106 = math.exp %105 : vector<8x256xf32>
    %cst_48 = arith.constant 1.000000e+00 : f32
    %107 = vector.broadcast %cst_48 : f32 to vector<8x256xf32>
    %108 = arith.addf %107, %106 : vector<8x256xf32>
    %109 = arith.divf %107, %108 : vector<8x256xf32>
    %110 = vector.extract_strided_slice %103 {offsets = [0, 256], sizes = [8, 256], strides = [1, 1]} : vector<8x1024xf32> to vector<8x256xf32>
    %111 = arith.negf %110 : vector<8x256xf32>
    %112 = math.exp %111 : vector<8x256xf32>
    %cst_49 = arith.constant 1.000000e+00 : f32
    %113 = vector.broadcast %cst_49 : f32 to vector<8x256xf32>
    %114 = arith.addf %113, %112 : vector<8x256xf32>
    %115 = arith.divf %113, %114 : vector<8x256xf32>
    %116 = vector.extract_strided_slice %103 {offsets = [0, 512], sizes = [8, 256], strides = [1, 1]} : vector<8x1024xf32> to vector<8x256xf32>
    %117 = math.tanh %116 : vector<8x256xf32>
    %118 = vector.extract_strided_slice %103 {offsets = [0, 768], sizes = [8, 256], strides = [1, 1]} : vector<8x1024xf32> to vector<8x256xf32>
    %119 = arith.negf %118 : vector<8x256xf32>
    %120 = math.exp %119 : vector<8x256xf32>
    %cst_50 = arith.constant 1.000000e+00 : f32
    %121 = vector.broadcast %cst_50 : f32 to vector<8x256xf32>
    %122 = arith.addf %121, %120 : vector<8x256xf32>
    %123 = arith.divf %121, %122 : vector<8x256xf32>
    %124 = arith.mulf %115, %95 : vector<8x256xf32>
    %125 = arith.mulf %109, %117 : vector<8x256xf32>
    %126 = arith.addf %124, %125 : vector<8x256xf32>
    %127 = math.tanh %126 : vector<8x256xf32>
    %128 = arith.mulf %123, %127 : vector<8x256xf32>
    %129 = arith.index_cast %c2_i32 : i32 to index
    %c0_51 = arith.constant 0 : index
    %c0_52 = arith.constant 0 : index
    %130 = vector.load %arg9[%129, %c0_51, %c0_52] : memref<8x8x256xf32, #tpu.memory_space<vmem>>, vector<1x8x256xf32>
    %131 = vector.shape_cast %130 : vector<1x8x256xf32> to vector<8x256xf32>
    %cst_53 = arith.constant 0.000000e+00 : f32
    %132 = vector.broadcast %cst_53 : f32 to vector<8x256xf32>
    %133 = arith.cmpf ogt, %131, %132 : vector<8x256xf32>
    %134 = arith.select %133, %128, %94 : vector<8x256xi1>, vector<8x256xf32>
    %135 = arith.select %133, %126, %95 : vector<8x256xi1>, vector<8x256xf32>
    %136 = arith.truncf %128 : vector<8x256xf32> to vector<8x256xbf16>
    %137 = arith.select %133, %136, %97 : vector<8x256xi1>, vector<8x256xbf16>
    %c3_i32 = arith.constant 3 : i32
    %138 = arith.index_cast %c3_i32 : i32 to index
    %c0_54 = arith.constant 0 : index
    %c0_55 = arith.constant 0 : index
    %139 = vector.load %arg8[%138, %c0_54, %c0_55] : memref<8x8x1024xf32, #tpu.memory_space<vmem>>, vector<1x8x1024xf32>
    %140 = vector.shape_cast %139 : vector<1x8x1024xf32> to vector<8x1024xf32>
    %c0_56 = arith.constant 0 : index
    %c0_57 = arith.constant 0 : index
    %141 = vector.load %arg5[%c0_56, %c0_57] : memref<256x1024xbf16, #tpu.memory_space<vmem>>, vector<256x1024xbf16>
    %cst_58 = arith.constant dense<0.000000e+00> : vector<8x1024xf32>
    %142 = tpu.matmul %137, %141, %cst_58 {dimension_numbers = #tpu.dot_dimension_numbers<[1], [0], [0], [1], [0, 0, 1, 1], [], []>} : vector<8x256xbf16>, vector<256x1024xbf16>, vector<8x1024xf32> -> vector<8x1024xf32>
    %143 = arith.addf %140, %142 : vector<8x1024xf32>
    %144 = vector.extract_strided_slice %143 {offsets = [0, 0], sizes = [8, 256], strides = [1, 1]} : vector<8x1024xf32> to vector<8x256xf32>
    %145 = arith.negf %144 : vector<8x256xf32>
    %146 = math.exp %145 : vector<8x256xf32>
    %cst_59 = arith.constant 1.000000e+00 : f32
    %147 = vector.broadcast %cst_59 : f32 to vector<8x256xf32>
    %148 = arith.addf %147, %146 : vector<8x256xf32>
    %149 = arith.divf %147, %148 : vector<8x256xf32>
    %150 = vector.extract_strided_slice %143 {offsets = [0, 256], sizes = [8, 256], strides = [1, 1]} : vector<8x1024xf32> to vector<8x256xf32>
    %151 = arith.negf %150 : vector<8x256xf32>
    %152 = math.exp %151 : vector<8x256xf32>
    %cst_60 = arith.constant 1.000000e+00 : f32
    %153 = vector.broadcast %cst_60 : f32 to vector<8x256xf32>
    %154 = arith.addf %153, %152 : vector<8x256xf32>
    %155 = arith.divf %153, %154 : vector<8x256xf32>
    %156 = vector.extract_strided_slice %143 {offsets = [0, 512], sizes = [8, 256], strides = [1, 1]} : vector<8x1024xf32> to vector<8x256xf32>
    %157 = math.tanh %156 : vector<8x256xf32>
    %158 = vector.extract_strided_slice %143 {offsets = [0, 768], sizes = [8, 256], strides = [1, 1]} : vector<8x1024xf32> to vector<8x256xf32>
    %159 = arith.negf %158 : vector<8x256xf32>
    %160 = math.exp %159 : vector<8x256xf32>
    %cst_61 = arith.constant 1.000000e+00 : f32
    %161 = vector.broadcast %cst_61 : f32 to vector<8x256xf32>
    %162 = arith.addf %161, %160 : vector<8x256xf32>
    %163 = arith.divf %161, %162 : vector<8x256xf32>
    %164 = arith.mulf %155, %135 : vector<8x256xf32>
    %165 = arith.mulf %149, %157 : vector<8x256xf32>
    %166 = arith.addf %164, %165 : vector<8x256xf32>
    %167 = math.tanh %166 : vector<8x256xf32>
    %168 = arith.mulf %163, %167 : vector<8x256xf32>
    %169 = arith.index_cast %c3_i32 : i32 to index
    %c0_62 = arith.constant 0 : index
    %c0_63 = arith.constant 0 : index
    %170 = vector.load %arg9[%169, %c0_62, %c0_63] : memref<8x8x256xf32, #tpu.memory_space<vmem>>, vector<1x8x256xf32>
    %171 = vector.shape_cast %170 : vector<1x8x256xf32> to vector<8x256xf32>
    %cst_64 = arith.constant 0.000000e+00 : f32
    %172 = vector.broadcast %cst_64 : f32 to vector<8x256xf32>
    %173 = arith.cmpf ogt, %171, %172 : vector<8x256xf32>
    %174 = arith.select %173, %168, %134 : vector<8x256xi1>, vector<8x256xf32>
    %175 = arith.select %173, %166, %135 : vector<8x256xi1>, vector<8x256xf32>
    %176 = arith.truncf %168 : vector<8x256xf32> to vector<8x256xbf16>
    %177 = arith.select %173, %176, %137 : vector<8x256xi1>, vector<8x256xbf16>
    %c4_i32 = arith.constant 4 : i32
    %178 = arith.index_cast %c4_i32 : i32 to index
    %c0_65 = arith.constant 0 : index
    %c0_66 = arith.constant 0 : index
    %179 = vector.load %arg8[%178, %c0_65, %c0_66] : memref<8x8x1024xf32, #tpu.memory_space<vmem>>, vector<1x8x1024xf32>
    %180 = vector.shape_cast %179 : vector<1x8x1024xf32> to vector<8x1024xf32>
    %c0_67 = arith.constant 0 : index
    %c0_68 = arith.constant 0 : index
    %181 = vector.load %arg5[%c0_67, %c0_68] : memref<256x1024xbf16, #tpu.memory_space<vmem>>, vector<256x1024xbf16>
    %cst_69 = arith.constant dense<0.000000e+00> : vector<8x1024xf32>
    %182 = tpu.matmul %177, %181, %cst_69 {dimension_numbers = #tpu.dot_dimension_numbers<[1], [0], [0], [1], [0, 0, 1, 1], [], []>} : vector<8x256xbf16>, vector<256x1024xbf16>, vector<8x1024xf32> -> vector<8x1024xf32>
    %183 = arith.addf %180, %182 : vector<8x1024xf32>
    %184 = vector.extract_strided_slice %183 {offsets = [0, 0], sizes = [8, 256], strides = [1, 1]} : vector<8x1024xf32> to vector<8x256xf32>
    %185 = arith.negf %184 : vector<8x256xf32>
    %186 = math.exp %185 : vector<8x256xf32>
    %cst_70 = arith.constant 1.000000e+00 : f32
    %187 = vector.broadcast %cst_70 : f32 to vector<8x256xf32>
    %188 = arith.addf %187, %186 : vector<8x256xf32>
    %189 = arith.divf %187, %188 : vector<8x256xf32>
    %190 = vector.extract_strided_slice %183 {offsets = [0, 256], sizes = [8, 256], strides = [1, 1]} : vector<8x1024xf32> to vector<8x256xf32>
    %191 = arith.negf %190 : vector<8x256xf32>
    %192 = math.exp %191 : vector<8x256xf32>
    %cst_71 = arith.constant 1.000000e+00 : f32
    %193 = vector.broadcast %cst_71 : f32 to vector<8x256xf32>
    %194 = arith.addf %193, %192 : vector<8x256xf32>
    %195 = arith.divf %193, %194 : vector<8x256xf32>
    %196 = vector.extract_strided_slice %183 {offsets = [0, 512], sizes = [8, 256], strides = [1, 1]} : vector<8x1024xf32> to vector<8x256xf32>
    %197 = math.tanh %196 : vector<8x256xf32>
    %198 = vector.extract_strided_slice %183 {offsets = [0, 768], sizes = [8, 256], strides = [1, 1]} : vector<8x1024xf32> to vector<8x256xf32>
    %199 = arith.negf %198 : vector<8x256xf32>
    %200 = math.exp %199 : vector<8x256xf32>
    %cst_72 = arith.constant 1.000000e+00 : f32
    %201 = vector.broadcast %cst_72 : f32 to vector<8x256xf32>
    %202 = arith.addf %201, %200 : vector<8x256xf32>
    %203 = arith.divf %201, %202 : vector<8x256xf32>
    %204 = arith.mulf %195, %175 : vector<8x256xf32>
    %205 = arith.mulf %189, %197 : vector<8x256xf32>
    %206 = arith.addf %204, %205 : vector<8x256xf32>
    %207 = math.tanh %206 : vector<8x256xf32>
    %208 = arith.mulf %203, %207 : vector<8x256xf32>
    %209 = arith.index_cast %c4_i32 : i32 to index
    %c0_73 = arith.constant 0 : index
    %c0_74 = arith.constant 0 : index
    %210 = vector.load %arg9[%209, %c0_73, %c0_74] : memref<8x8x256xf32, #tpu.memory_space<vmem>>, vector<1x8x256xf32>
    %211 = vector.shape_cast %210 : vector<1x8x256xf32> to vector<8x256xf32>
    %cst_75 = arith.constant 0.000000e+00 : f32
    %212 = vector.broadcast %cst_75 : f32 to vector<8x256xf32>
    %213 = arith.cmpf ogt, %211, %212 : vector<8x256xf32>
    %214 = arith.select %213, %208, %174 : vector<8x256xi1>, vector<8x256xf32>
    %215 = arith.select %213, %206, %175 : vector<8x256xi1>, vector<8x256xf32>
    %216 = arith.truncf %208 : vector<8x256xf32> to vector<8x256xbf16>
    %217 = arith.select %213, %216, %177 : vector<8x256xi1>, vector<8x256xbf16>
    %c5_i32 = arith.constant 5 : i32
    %218 = arith.index_cast %c5_i32 : i32 to index
    %c0_76 = arith.constant 0 : index
    %c0_77 = arith.constant 0 : index
    %219 = vector.load %arg8[%218, %c0_76, %c0_77] : memref<8x8x1024xf32, #tpu.memory_space<vmem>>, vector<1x8x1024xf32>
    %220 = vector.shape_cast %219 : vector<1x8x1024xf32> to vector<8x1024xf32>
    %c0_78 = arith.constant 0 : index
    %c0_79 = arith.constant 0 : index
    %221 = vector.load %arg5[%c0_78, %c0_79] : memref<256x1024xbf16, #tpu.memory_space<vmem>>, vector<256x1024xbf16>
    %cst_80 = arith.constant dense<0.000000e+00> : vector<8x1024xf32>
    %222 = tpu.matmul %217, %221, %cst_80 {dimension_numbers = #tpu.dot_dimension_numbers<[1], [0], [0], [1], [0, 0, 1, 1], [], []>} : vector<8x256xbf16>, vector<256x1024xbf16>, vector<8x1024xf32> -> vector<8x1024xf32>
    %223 = arith.addf %220, %222 : vector<8x1024xf32>
    %224 = vector.extract_strided_slice %223 {offsets = [0, 0], sizes = [8, 256], strides = [1, 1]} : vector<8x1024xf32> to vector<8x256xf32>
    %225 = arith.negf %224 : vector<8x256xf32>
    %226 = math.exp %225 : vector<8x256xf32>
    %cst_81 = arith.constant 1.000000e+00 : f32
    %227 = vector.broadcast %cst_81 : f32 to vector<8x256xf32>
    %228 = arith.addf %227, %226 : vector<8x256xf32>
    %229 = arith.divf %227, %228 : vector<8x256xf32>
    %230 = vector.extract_strided_slice %223 {offsets = [0, 256], sizes = [8, 256], strides = [1, 1]} : vector<8x1024xf32> to vector<8x256xf32>
    %231 = arith.negf %230 : vector<8x256xf32>
    %232 = math.exp %231 : vector<8x256xf32>
    %cst_82 = arith.constant 1.000000e+00 : f32
    %233 = vector.broadcast %cst_82 : f32 to vector<8x256xf32>
    %234 = arith.addf %233, %232 : vector<8x256xf32>
    %235 = arith.divf %233, %234 : vector<8x256xf32>
    %236 = vector.extract_strided_slice %223 {offsets = [0, 512], sizes = [8, 256], strides = [1, 1]} : vector<8x1024xf32> to vector<8x256xf32>
    %237 = math.tanh %236 : vector<8x256xf32>
    %238 = vector.extract_strided_slice %223 {offsets = [0, 768], sizes = [8, 256], strides = [1, 1]} : vector<8x1024xf32> to vector<8x256xf32>
    %239 = arith.negf %238 : vector<8x256xf32>
    %240 = math.exp %239 : vector<8x256xf32>
    %cst_83 = arith.constant 1.000000e+00 : f32
    %241 = vector.broadcast %cst_83 : f32 to vector<8x256xf32>
    %242 = arith.addf %241, %240 : vector<8x256xf32>
    %243 = arith.divf %241, %242 : vector<8x256xf32>
    %244 = arith.mulf %235, %215 : vector<8x256xf32>
    %245 = arith.mulf %229, %237 : vector<8x256xf32>
    %246 = arith.addf %244, %245 : vector<8x256xf32>
    %247 = math.tanh %246 : vector<8x256xf32>
    %248 = arith.mulf %243, %247 : vector<8x256xf32>
    %249 = arith.index_cast %c5_i32 : i32 to index
    %c0_84 = arith.constant 0 : index
    %c0_85 = arith.constant 0 : index
    %250 = vector.load %arg9[%249, %c0_84, %c0_85] : memref<8x8x256xf32, #tpu.memory_space<vmem>>, vector<1x8x256xf32>
    %251 = vector.shape_cast %250 : vector<1x8x256xf32> to vector<8x256xf32>
    %cst_86 = arith.constant 0.000000e+00 : f32
    %252 = vector.broadcast %cst_86 : f32 to vector<8x256xf32>
    %253 = arith.cmpf ogt, %251, %252 : vector<8x256xf32>
    %254 = arith.select %253, %248, %214 : vector<8x256xi1>, vector<8x256xf32>
    %255 = arith.select %253, %246, %215 : vector<8x256xi1>, vector<8x256xf32>
    %256 = arith.truncf %248 : vector<8x256xf32> to vector<8x256xbf16>
    %257 = arith.select %253, %256, %217 : vector<8x256xi1>, vector<8x256xbf16>
    %c6_i32 = arith.constant 6 : i32
    %258 = arith.index_cast %c6_i32 : i32 to index
    %c0_87 = arith.constant 0 : index
    %c0_88 = arith.constant 0 : index
    %259 = vector.load %arg8[%258, %c0_87, %c0_88] : memref<8x8x1024xf32, #tpu.memory_space<vmem>>, vector<1x8x1024xf32>
    %260 = vector.shape_cast %259 : vector<1x8x1024xf32> to vector<8x1024xf32>
    %c0_89 = arith.constant 0 : index
    %c0_90 = arith.constant 0 : index
    %261 = vector.load %arg5[%c0_89, %c0_90] : memref<256x1024xbf16, #tpu.memory_space<vmem>>, vector<256x1024xbf16>
    %cst_91 = arith.constant dense<0.000000e+00> : vector<8x1024xf32>
    %262 = tpu.matmul %257, %261, %cst_91 {dimension_numbers = #tpu.dot_dimension_numbers<[1], [0], [0], [1], [0, 0, 1, 1], [], []>} : vector<8x256xbf16>, vector<256x1024xbf16>, vector<8x1024xf32> -> vector<8x1024xf32>
    %263 = arith.addf %260, %262 : vector<8x1024xf32>
    %264 = vector.extract_strided_slice %263 {offsets = [0, 0], sizes = [8, 256], strides = [1, 1]} : vector<8x1024xf32> to vector<8x256xf32>
    %265 = arith.negf %264 : vector<8x256xf32>
    %266 = math.exp %265 : vector<8x256xf32>
    %cst_92 = arith.constant 1.000000e+00 : f32
    %267 = vector.broadcast %cst_92 : f32 to vector<8x256xf32>
    %268 = arith.addf %267, %266 : vector<8x256xf32>
    %269 = arith.divf %267, %268 : vector<8x256xf32>
    %270 = vector.extract_strided_slice %263 {offsets = [0, 256], sizes = [8, 256], strides = [1, 1]} : vector<8x1024xf32> to vector<8x256xf32>
    %271 = arith.negf %270 : vector<8x256xf32>
    %272 = math.exp %271 : vector<8x256xf32>
    %cst_93 = arith.constant 1.000000e+00 : f32
    %273 = vector.broadcast %cst_93 : f32 to vector<8x256xf32>
    %274 = arith.addf %273, %272 : vector<8x256xf32>
    %275 = arith.divf %273, %274 : vector<8x256xf32>
    %276 = vector.extract_strided_slice %263 {offsets = [0, 512], sizes = [8, 256], strides = [1, 1]} : vector<8x1024xf32> to vector<8x256xf32>
    %277 = math.tanh %276 : vector<8x256xf32>
    %278 = vector.extract_strided_slice %263 {offsets = [0, 768], sizes = [8, 256], strides = [1, 1]} : vector<8x1024xf32> to vector<8x256xf32>
    %279 = arith.negf %278 : vector<8x256xf32>
    %280 = math.exp %279 : vector<8x256xf32>
    %cst_94 = arith.constant 1.000000e+00 : f32
    %281 = vector.broadcast %cst_94 : f32 to vector<8x256xf32>
    %282 = arith.addf %281, %280 : vector<8x256xf32>
    %283 = arith.divf %281, %282 : vector<8x256xf32>
    %284 = arith.mulf %275, %255 : vector<8x256xf32>
    %285 = arith.mulf %269, %277 : vector<8x256xf32>
    %286 = arith.addf %284, %285 : vector<8x256xf32>
    %287 = math.tanh %286 : vector<8x256xf32>
    %288 = arith.mulf %283, %287 : vector<8x256xf32>
    %289 = arith.index_cast %c6_i32 : i32 to index
    %c0_95 = arith.constant 0 : index
    %c0_96 = arith.constant 0 : index
    %290 = vector.load %arg9[%289, %c0_95, %c0_96] : memref<8x8x256xf32, #tpu.memory_space<vmem>>, vector<1x8x256xf32>
    %291 = vector.shape_cast %290 : vector<1x8x256xf32> to vector<8x256xf32>
    %cst_97 = arith.constant 0.000000e+00 : f32
    %292 = vector.broadcast %cst_97 : f32 to vector<8x256xf32>
    %293 = arith.cmpf ogt, %291, %292 : vector<8x256xf32>
    %294 = arith.select %293, %288, %254 : vector<8x256xi1>, vector<8x256xf32>
    %295 = arith.select %293, %286, %255 : vector<8x256xi1>, vector<8x256xf32>
    %296 = arith.truncf %288 : vector<8x256xf32> to vector<8x256xbf16>
    %297 = arith.select %293, %296, %257 : vector<8x256xi1>, vector<8x256xbf16>
    %c7_i32 = arith.constant 7 : i32
    %298 = arith.index_cast %c7_i32 : i32 to index
    %c0_98 = arith.constant 0 : index
    %c0_99 = arith.constant 0 : index
    %299 = vector.load %arg8[%298, %c0_98, %c0_99] : memref<8x8x1024xf32, #tpu.memory_space<vmem>>, vector<1x8x1024xf32>
    %300 = vector.shape_cast %299 : vector<1x8x1024xf32> to vector<8x1024xf32>
    %c0_100 = arith.constant 0 : index
    %c0_101 = arith.constant 0 : index
    %301 = vector.load %arg5[%c0_100, %c0_101] : memref<256x1024xbf16, #tpu.memory_space<vmem>>, vector<256x1024xbf16>
    %cst_102 = arith.constant dense<0.000000e+00> : vector<8x1024xf32>
    %302 = tpu.matmul %297, %301, %cst_102 {dimension_numbers = #tpu.dot_dimension_numbers<[1], [0], [0], [1], [0, 0, 1, 1], [], []>} : vector<8x256xbf16>, vector<256x1024xbf16>, vector<8x1024xf32> -> vector<8x1024xf32>
    %303 = arith.addf %300, %302 : vector<8x1024xf32>
    %304 = vector.extract_strided_slice %303 {offsets = [0, 0], sizes = [8, 256], strides = [1, 1]} : vector<8x1024xf32> to vector<8x256xf32>
    %305 = arith.negf %304 : vector<8x256xf32>
    %306 = math.exp %305 : vector<8x256xf32>
    %cst_103 = arith.constant 1.000000e+00 : f32
    %307 = vector.broadcast %cst_103 : f32 to vector<8x256xf32>
    %308 = arith.addf %307, %306 : vector<8x256xf32>
    %309 = arith.divf %307, %308 : vector<8x256xf32>
    %310 = vector.extract_strided_slice %303 {offsets = [0, 256], sizes = [8, 256], strides = [1, 1]} : vector<8x1024xf32> to vector<8x256xf32>
    %311 = arith.negf %310 : vector<8x256xf32>
    %312 = math.exp %311 : vector<8x256xf32>
    %cst_104 = arith.constant 1.000000e+00 : f32
    %313 = vector.broadcast %cst_104 : f32 to vector<8x256xf32>
    %314 = arith.addf %313, %312 : vector<8x256xf32>
    %315 = arith.divf %313, %314 : vector<8x256xf32>
    %316 = vector.extract_strided_slice %303 {offsets = [0, 512], sizes = [8, 256], strides = [1, 1]} : vector<8x1024xf32> to vector<8x256xf32>
    %317 = math.tanh %316 : vector<8x256xf32>
    %318 = vector.extract_strided_slice %303 {offsets = [0, 768], sizes = [8, 256], strides = [1, 1]} : vector<8x1024xf32> to vector<8x256xf32>
    %319 = arith.negf %318 : vector<8x256xf32>
    %320 = math.exp %319 : vector<8x256xf32>
    %cst_105 = arith.constant 1.000000e+00 : f32
    %321 = vector.broadcast %cst_105 : f32 to vector<8x256xf32>
    %322 = arith.addf %321, %320 : vector<8x256xf32>
    %323 = arith.divf %321, %322 : vector<8x256xf32>
    %324 = arith.mulf %315, %295 : vector<8x256xf32>
    %325 = arith.mulf %309, %317 : vector<8x256xf32>
    %326 = arith.addf %324, %325 : vector<8x256xf32>
    %327 = math.tanh %326 : vector<8x256xf32>
    %328 = arith.mulf %323, %327 : vector<8x256xf32>
    %329 = arith.index_cast %c7_i32 : i32 to index
    %c0_106 = arith.constant 0 : index
    %c0_107 = arith.constant 0 : index
    %330 = vector.load %arg9[%329, %c0_106, %c0_107] : memref<8x8x256xf32, #tpu.memory_space<vmem>>, vector<1x8x256xf32>
    %331 = vector.shape_cast %330 : vector<1x8x256xf32> to vector<8x256xf32>
    %cst_108 = arith.constant 0.000000e+00 : f32
    %332 = vector.broadcast %cst_108 : f32 to vector<8x256xf32>
    %333 = arith.cmpf ogt, %331, %332 : vector<8x256xf32>
    %334 = arith.select %333, %328, %294 : vector<8x256xi1>, vector<8x256xf32>
    %335 = arith.select %333, %326, %295 : vector<8x256xi1>, vector<8x256xf32>
    %336 = arith.truncf %328 : vector<8x256xf32> to vector<8x256xbf16>
    %337 = arith.select %333, %336, %297 : vector<8x256xi1>, vector<8x256xbf16>
    %c8_i32 = arith.constant 8 : i32
    %c0_109 = arith.constant 0 : index
    %c0_110 = arith.constant 0 : index
    %338 = vector.load %arg7[%c0_109, %c0_110] : memref<8x256xf32, #tpu.memory_space<vmem>>, vector<8x256xf32>
    tpu.vector_store %arg7[%c0_109, %c0_110], %334 {strides = array<i32>} : memref<8x256xf32, #tpu.memory_space<vmem>>, vector<8x256xf32>,
    return
  }
  func.func @transform_0(%arg0: i32) -> (i32, i32, i32) {
    %c0_i32 = arith.constant 0 : i32
    %c0_i32_0 = arith.constant 0 : i32
    %c0_i32_1 = arith.constant 0 : i32
    return %c0_i32, %arg0, %c0_i32_0 : i32, i32, i32
  }
  func.func @transform_1(%arg0: i32) -> (i32, i32, i32) {
    %c0_i32 = arith.constant 0 : i32
    %c0_i32_0 = arith.constant 0 : i32
    %c0_i32_1 = arith.constant 0 : i32
    return %c0_i32, %arg0, %c0_i32_0 : i32, i32, i32
  }
  func.func @transform_2(%arg0: i32) -> (i32, i32) {
    %c0_i32 = arith.constant 0 : i32
    %c0_i32_0 = arith.constant 0 : i32
    %c0_i32_1 = arith.constant 0 : i32
    return %c0_i32, %c0_i32_0 : i32, i32
  }
  func.func @transform_3(%arg0: i32) -> (i32, i32) {
    %c0_i32 = arith.constant 0 : i32
    %c0_i32_0 = arith.constant 0 : i32
    %c0_i32_1 = arith.constant 0 : i32
    return %c0_i32, %c0_i32_0 : i32, i32
  }
  func.func @transform_4(%arg0: i32) -> (i32, i32) {
    %c0_i32 = arith.constant 0 : i32
    %c0_i32_0 = arith.constant 0 : i32
    %c0_i32_1 = arith.constant 0 : i32
    return %c0_i32, %c0_i32_0 : i32, i32
  }
  func.func @transform_5(%arg0: i32) -> (i32, i32) {
    %c0_i32 = arith.constant 0 : i32
    %c0_i32_0 = arith.constant 0 : i32
    %c0_i32_1 = arith.constant 0 : i32
    return %c0_i32, %c0_i32_0 : i32, i32
  }
  func.func @transform_6(%arg0: i32) -> (i32, i32) {
    %c0_i32 = arith.constant 0 : i32
    %c0_i32_0 = arith.constant 0 : i32
    return %arg0, %c0_i32 : i32, i32
  }
}

</mosaic_0001>

<bundles_post_ra>
// kernel: tpu_custom_call.1
= control target key start
LH: loop header
LB: loop body
LE: loop exit
PB: predicated region body
PF: predicated region fallthrough
CT: control target
= control target key end

     0   :  { %11 = vsyncpa [#allocation5], 0  ;;  %s6561_s0 = inlined_call_operand.hbm [shape: bf16[8,8,128], index: 0, kind: input, shape index: {}]   ;;  %s6562_s1 = inlined_call_operand.hbm [shape: bf16[8,8,8], index: 1, kind: input, shape index: {}]   ;;  %s6563_s2 = inlined_call_operand.hbm [shape: bf16[8,256], index: 2, kind: input, shape index: {}]   ;;  %s6564_s3 = inlined_call_operand.hbm [shape: bf16[128,1024], index: 3, kind: input, shape index: {}]   ;;  %s6565_s4 = inlined_call_operand.hbm [shape: bf16[256,1024], index: 4, kind: input, shape index: {}]   ;;  %s6566_s5 = inlined_call_operand.vmem [shape: f32[1,1024], index: 5, kind: input, shape index: {}]   ;;  %s6567_s6 = inlined_call_operand.hbm [shape: f32[8,256], index: 6, kind: output, shape index: {}]  }
   0x1   :  { %12 = vsyncpa [#allocation8], 0 }
   0x2   :  { %13 = vsyncpa [#allocation11], 0 }
   0x3   :  { %14 = vsyncpa [#allocation6], 0  ;;  %s4449_s21 = smov [#allocation7]   ;;  %s4450_s23 = smov [#allocation10]  }
   0x4   :  { %s32_s22 = sshll.u32 %s4449_s21, 4  ;;  %s54_s24 = sshll.u32 %s4450_s23, 4  ;;  %s33_s22 = int_to_ptr.vmem [resolvable:$true] %s32_s22  ;;  %s4495_s24 = int_to_ptr.vmem [resolvable:$true] %s54_s24 }
   0x5   :  { %s4309_s27 = scalar_lea.hbm %s6562_s1, 512 }
   0x6   :  { %p4310_p0 = scmp.ne.s32.totalorder %s6562_s1, %s4309_s27  ;;  %p4313_p1 = scmp.lt.u32.totalorder %s4309_s27, %s6562_s1 }
   0x8   :  { %p4315_p2 = pnand %p4313_p1, %p4310_p0 }
   0xa   :  { %4318 = shalt.err (!%p4315_p2)
}
   0xb   :  { %s4319_s8 = scalar_lea.vmem %s33_s22, 512  ;;  %p4324_p4 = scmp.lt.s32.totalorder %s33_s22, %s33_s22 }
   0xc   :  { %p4320_p3 = scmp.ne.s32.totalorder %s33_s22, %s4319_s8  ;;  %p4325_p5 = scmp.lt.s32.totalorder %s4319_s8, %s4319_s8 }
   0xe   :  { %p4326_p6 = por %p4325_p5, %p4324_p4 }
  0x10   :  { %p4327_p7 = pnand %p4326_p6, %p4320_p3 }
  0x12   :  { %4330 = shalt.err (!%p4327_p7)
}
  0x13   :  { %s4451_s9 = smov 64   ;;  %s4452_s10 = smov 4  }
  0x14   :  { %38 = dma.hbm_to_vmem [thread:$0]  %s6562_s1, 512, %s33_s22, [#allocation8], %s4451_s9, %s4451_s9, %s4452_s10  }
  0x15   :  { %s4331_s15 = scalar_lea.hbm %s6564_s3, 8192 }
  0x16   :  { %p4332_p8 = scmp.ne.s32.totalorder %s6564_s3, %s4331_s15  ;;  %p4335_p9 = scmp.lt.u32.totalorder %s4331_s15, %s6564_s3 }
  0x18   :  { %p4337_p10 = pnand %p4335_p9, %p4332_p8 }
  0x1a   :  { %4340 = shalt.err (!%p4337_p10)
}
  0x1b   :  { %s4341_s20 = scalar_lea.vmem %s4495_s24, 8192  ;;  %p4346_p12 = scmp.lt.s32.totalorder %s4495_s24, %s4495_s24 }
  0x1c   :  { %p4342_p11 = scmp.ne.s32.totalorder %s4495_s24, %s4341_s20  ;;  %p4347_p13 = scmp.lt.s32.totalorder %s4341_s20, %s4341_s20 }
  0x1e   :  { %p4348_p0 = por %p4347_p13, %p4346_p12 }
  0x20   :  { %p4349_p1 = pnand %p4348_p0, %p4342_p11 }
  0x22   :  { %4352 = shalt.err (!%p4349_p1)
}
  0x23   :  { %s4453_s1 = smov 512   ;;  %s4454_s21 = smov 32  }
  0x24   :  { %60 = dma.hbm_to_vmem [thread:$0]  %s6564_s3, 8192, %s4495_s24, [#allocation11], %s4453_s1, %s4453_s1, %s4454_s21  }
  0x25   :  { %s4455_s25 = smov [#allocation4]   ;;  %s4456_s27 = smov [#allocation9]  }
  0x26   :  { %s20_s26 = sshll.u32 %s4455_s25, 4  ;;  %s45_s28 = sshll.u32 %s4456_s27, 4  ;;  %s21_s26 = int_to_ptr.vmem [resolvable:$true] %s20_s26  ;;  %s46_s28 = int_to_ptr.vmem [resolvable:$true] %s45_s28 }
  0x27   :  { %s4353_s7 = scalar_lea.hbm %s6561_s0, 512 }
  0x28   :  { %p4354_p2 = scmp.ne.s32.totalorder %s6561_s0, %s4353_s7  ;;  %p4357_p3 = scmp.lt.u32.totalorder %s4353_s7, %s6561_s0 }
  0x2a   :  { %p4359_p4 = pnand %p4357_p3, %p4354_p2 }
  0x2c   :  { %4362 = shalt.err (!%p4359_p4)
}
  0x2d   :  { %s4363_s3 = scalar_lea.vmem %s21_s26, 512  ;;  %p4368_p6 = scmp.lt.s32.totalorder %s21_s26, %s21_s26 }
  0x2e   :  { %p4364_p5 = scmp.ne.s32.totalorder %s21_s26, %s4363_s3  ;;  %p4369_p7 = scmp.lt.s32.totalorder %s4363_s3, %s4363_s3 }
  0x30   :  { %p4370_p8 = por %p4369_p7, %p4368_p6 }
  0x32   :  { %p4371_p9 = pnand %p4370_p8, %p4364_p5 }
  0x34   :  { %4374 = shalt.err (!%p4371_p9)
}
  0x35   :  { %26 = dma.hbm_to_vmem [thread:$0]  %s6561_s0, 512, %s21_s26, [#allocation5], %s4451_s9, %s4451_s9, %s4452_s10  }
  0x36   :  { %s4375_s17 = scalar_lea.hbm %s6563_s2, 128 }
  0x37   :  { %p4376_p10 = scmp.ne.s32.totalorder %s6563_s2, %s4375_s17  ;;  %p4379_p11 = scmp.lt.u32.totalorder %s4375_s17, %s6563_s2 }
  0x39   :  { %p4381_p12 = pnand %p4379_p11, %p4376_p10 }
  0x3b   :  { %4384 = shalt.err (!%p4381_p12)
}
  0x3c   :  { %s4385_s23 = scalar_lea.vmem %s46_s28, 128  ;;  %p4390_p0 = scmp.lt.s32.totalorder %s46_s28, %s46_s28 }
  0x3d   :  { %p4386_p13 = scmp.ne.s32.totalorder %s46_s28, %s4385_s23  ;;  %p4391_p1 = scmp.lt.s32.totalorder %s4385_s23, %s4385_s23 }
  0x3f   :  { %p4392_p2 = por %p4391_p1, %p4390_p0 }
  0x41   :  { %p4393_p3 = pnand %p4392_p2, %p4386_p13 }
  0x43   :  { %4396 = shalt.err (!%p4393_p3)
}
  0x44   :  { %48 = dma.hbm_to_vmem [thread:$0]  %s6563_s2, 128, %s46_s28, [#allocation8]  }
  0x45   :  { %s4457_s10 = smov [#allocation12]   ;;  %s4397_s29 = scalar_lea.hbm %s6565_s4, 16384 }
  0x46   :  { %s66_s25 = sshll.u32 %s4457_s10, 4  ;;  %p4398_p4 = scmp.ne.s32.totalorder %s6565_s4, %s4397_s29  ;;  %s67_s25 = int_to_ptr.vmem [resolvable:$true] %s66_s25 }
  0x47   :  { %p4401_p5 = scmp.lt.u32.totalorder %s4397_s29, %s6565_s4 }
  0x49   :  { %p4403_p6 = pnand %p4401_p5, %p4398_p4 }
  0x4b   :  { %4406 = shalt.err (!%p4403_p6)
}
  0x4c   :  { %s4407_s12 = scalar_lea.vmem %s67_s25, 16384  ;;  %p4412_p8 = scmp.lt.s32.totalorder %s67_s25, %s67_s25 }
  0x4d   :  { %p4408_p7 = scmp.ne.s32.totalorder %s67_s25, %s4407_s12  ;;  %p4413_p9 = scmp.lt.s32.totalorder %s4407_s12, %s4407_s12 }
  0x4f   :  { %p4414_p10 = por %p4413_p9, %p4412_p8 }
  0x51   :  { %p4415_p11 = pnand %p4414_p10, %p4408_p7 }
  0x53   :  { %4418 = shalt.err (!%p4415_p11)
}
  0x54   :  { %72 = dma.hbm_to_vmem [thread:$0]  %s6565_s4, 16384, %s67_s25, [#allocation11], %s4453_s1, %s4453_s1, %s4454_s21  }
  0x55   :  { %4441 = dma.done.wait [#allocation5], 512  }
  0x56   :  { %4442 = vsyncadd [#allocation5], 4294966784 }
  0x57   :  { %4443 = dma.done.wait [#allocation8], 640  }
  0x58   :  { %4444 = vsyncadd [#allocation8], 4294966656 }
  0x59   :  { %4445 = dma.done.wait [#allocation11], 24576  }
  0x5a   :  { %4446 = vsyncadd [#allocation11], 4294942720  ;;  %v6568_v0 = vmov 0   ;;  %v99_v1 = vld [vmem:[#allocation10] sm:$0xff]  ;;  %v100_v3 = vld [vmem:[#allocation10 + $0x8] sm:$0xff]  ;;  %vm952_vm0 = vcmask 1043456  }
  0x5b   :  { %581 = vmatprep.mubr.bf16.mxu0 %v6568_v0  ;;  %654 = vmatprep.mubr.bf16.mxu1 %v6568_v0  ;;  %v103_v2 = vld [vmem:[#allocation10 + $0x20] sm:$0xff]  ;;  %v104_v5 = vld [vmem:[#allocation10 + $0x28] sm:$0xff]  ;;  %v101_v63 = vld [vmem:[#allocation10 + $0x10] sm:$0xff]  ;;  %vm939_vm1 = vcmask 64512  }
  0x5c   :  { %v3782_v4 = vcombine.high %v99_v1, %v103_v2  ;;  %v3781_v6 = vcombine.low %v99_v1, %v103_v2  ;;  %v107_v7 = vld [vmem:[#allocation10 + $0x40] sm:$0xff]  ;;  %v3784_v9 = vcombine.high %v100_v3, %v104_v5  ;;  %v3783_v10 = vcombine.low %v100_v3, %v104_v5  ;;  %v108_v12 = vld [vmem:[#allocation10 + $0x48] sm:$0xff]  ;;  %v105_v1 = vld [vmem:[#allocation10 + $0x30] sm:$0xff] }
  0x5d   :  { %v111_v8 = vld [vmem:[#allocation10 + $0x60] sm:$0xff]  ;;  %v112_v13 = vld [vmem:[#allocation10 + $0x68] sm:$0xff]  ;;  %v102_v2 = vld [vmem:[#allocation10 + $0x18] sm:$0xff] }
  0x5e   :  { %v3790_v11 = vcombine.high %v107_v7, %v111_v8  ;;  %v115_v14 = vld [vmem:[#allocation10 + $0x80] sm:$0xff]  ;;  %549 = vmatprep.subr.bf16.mxu0 %v3782_v4  ;;  %v3792_v15 = vcombine.high %v108_v12, %v112_v13  ;;  %v116_v17 = vld [vmem:[#allocation10 + $0x88] sm:$0xff]  ;;  %622 = vmatprep.subr.bf16.mxu1 %v3784_v9  ;;  %v3789_v19 = vcombine.low %v107_v7, %v111_v8  ;;  %v106_v3 = vld [vmem:[#allocation10 + $0x38] sm:$0xff] }
  0x5f   :  { %v119_v16 = vld [vmem:[#allocation10 + $0xa0] sm:$0xff]  ;;  %v120_v18 = vld [vmem:[#allocation10 + $0xa8] sm:$0xff]  ;;  %550 = vmatpush1.bf16.msra.mxu0 %v3781_v6  ;;  %623 = vmatpush1.bf16.msra.mxu1 %v3783_v10  ;;  %v3791_v20 = vcombine.low %v108_v12, %v112_v13  ;;  %v3786_v6 = vcombine.high %v101_v63, %v105_v1  ;;  %v4576_v7 = vld [vmem:[#allocation4] sm:$0xff]   ;;  %v3788_v8 = vcombine.high %v102_v2, %v106_v3 }
  0x60   :  { %551 = vmatprep.subr.bf16.mxu0 %v3790_v11  ;;  %v3798_v21 = vcombine.high %v115_v14, %v119_v16  ;;  %624 = vmatprep.subr.bf16.mxu1 %v3792_v15  ;;  %v3800_v22 = vcombine.high %v116_v17, %v120_v18  ;;  %v123_v23 = vld [vmem:[#allocation10 + $0xc0] sm:$0xff]  ;;  %v124_v25 = vld [vmem:[#allocation10 + $0xc8] sm:$0xff]  ;;  %v3797_v27 = vcombine.low %v115_v14, %v119_v16  ;;  %v109_v9 = vld [vmem:[#allocation10 + $0x50] sm:$0xff] }
  0x61   :  { %v127_v24 = vld [vmem:[#allocation10 + $0xe0] sm:$0xff]  ;;  %v128_v26 = vld [vmem:[#allocation10 + $0xe8] sm:$0xff]  ;;  %v3799_v28 = vcombine.low %v116_v17, %v120_v18  ;;  %v113_v10 = vld [vmem:[#allocation10 + $0x70] sm:$0xff]  ;;  %v3785_v13 = vcombine.low %v101_v63, %v105_v1  ;;  %v3787_v14 = vcombine.low %v102_v2, %v106_v3 }
  0x62   :  { %v3806_v29 = vcombine.high %v123_v23, %v127_v24  ;;  %v3808_v30 = vcombine.high %v124_v25, %v128_v26  ;;  %v131_v31 = vld [vmem:[#allocation10 + $0x100] sm:$0xff]  ;;  %v132_v33 = vld [vmem:[#allocation10 + $0x108] sm:$0xff]  ;;  %v3805_v35 = vcombine.low %v123_v23, %v127_v24  ;;  %v3807_v36 = vcombine.low %v124_v25, %v128_v26  ;;  %v110_v11 = vld [vmem:[#allocation10 + $0x58] sm:$0xff] }
  0x63   :  { %552 = vmatpush1.bf16.msra.mxu0 %v3789_v19  ;;  %625 = vmatpush1.bf16.msra.mxu1 %v3791_v20  ;;  %v135_v32 = vld [vmem:[#allocation10 + $0x120] sm:$0xff]  ;;  %v136_v34 = vld [vmem:[#allocation10 + $0x128] sm:$0xff]  ;;  %v114_v12 = vld [vmem:[#allocation10 + $0x78] sm:$0xff]  ;;  %v3794_v15 = vcombine.high %v109_v9, %v113_v10 }
  0x64   :  { %553 = vmatprep.subr.bf16.mxu0 %v3798_v21  ;;  %626 = vmatprep.subr.bf16.mxu1 %v3800_v22  ;;  %v3814_v37 = vcombine.high %v131_v31, %v135_v32  ;;  %v139_v38 = vld [vmem:[#allocation10 + $0x140] sm:$0xff]  ;;  %v3816_v39 = vcombine.high %v132_v33, %v136_v34  ;;  %v140_v41 = vld [vmem:[#allocation10 + $0x148] sm:$0xff]  ;;  %v3813_v43 = vcombine.low %v131_v31, %v135_v32  ;;  %v117_v17 = vld [vmem:[#allocation10 + $0x90] sm:$0xff] }
  0x65   :  { %v143_v40 = vld [vmem:[#allocation10 + $0x160] sm:$0xff]  ;;  %v144_v42 = vld [vmem:[#allocation10 + $0x168] sm:$0xff]  ;;  %v3815_v44 = vcombine.low %v132_v33, %v136_v34  ;;  %v3796_v16 = vcombine.high %v110_v11, %v114_v12  ;;  %v121_v18 = vld [vmem:[#allocation10 + $0xb0] sm:$0xff]  ;;  %v3793_v21 = vcombine.low %v109_v9, %v113_v10  ;;  %v3795_v22 = vcombine.low %v110_v11, %v114_v12 }
  0x66   :  { %v3822_v45 = vcombine.high %v139_v38, %v143_v40  ;;  %v147_v46 = vld [vmem:[#allocation10 + $0x180] sm:$0xff]  ;;  %v3824_v47 = vcombine.high %v140_v41, %v144_v42  ;;  %v148_v49 = vld [vmem:[#allocation10 + $0x188] sm:$0xff]  ;;  %v3821_v51 = vcombine.low %v139_v38, %v143_v40  ;;  %v3823_v52 = vcombine.low %v140_v41, %v144_v42  ;;  %v118_v19 = vld [vmem:[#allocation10 + $0x98] sm:$0xff] }
  0x67   :  { %554 = vmatpush1.bf16.msra.mxu0 %v3797_v27  ;;  %627 = vmatpush1.bf16.msra.mxu1 %v3799_v28  ;;  %v151_v48 = vld [vmem:[#allocation10 + $0x1a0] sm:$0xff]  ;;  %v152_v50 = vld [vmem:[#allocation10 + $0x1a8] sm:$0xff]  ;;  %v122_v20 = vld [vmem:[#allocation10 + $0xb8] sm:$0xff]  ;;  %v3802_v23 = vcombine.high %v117_v17, %v121_v18 }
  0x68   :  { %555 = vmatprep.subr.bf16.mxu0 %v3806_v29  ;;  %628 = vmatprep.subr.bf16.mxu1 %v3808_v30  ;;  %v3830_v53 = vcombine.high %v147_v46, %v151_v48  ;;  %v3832_v54 = vcombine.high %v148_v49, %v152_v50  ;;  %v155_v55 = vld [vmem:[#allocation10 + $0x1c0] sm:$0xff]  ;;  %v156_v57 = vld [vmem:[#allocation10 + $0x1c8] sm:$0xff]  ;;  %v3829_v59 = vcombine.low %v147_v46, %v151_v48  ;;  %v125_v25 = vld [vmem:[#allocation10 + $0xd0] sm:$0xff] }
  0x69   :  { %v159_v56 = vld [vmem:[#allocation10 + $0x1e0] sm:$0xff]  ;;  %v160_v58 = vld [vmem:[#allocation10 + $0x1e8] sm:$0xff]  ;;  %v3831_v60 = vcombine.low %v148_v49, %v152_v50  ;;  %v3804_v24 = vcombine.high %v118_v19, %v122_v20  ;;  %v129_v26 = vld [vmem:[#allocation10 + $0xf0] sm:$0xff]  ;;  %v3801_v30 = vcombine.low %v117_v17, %v121_v18  ;;  %v3803_v31 = vcombine.low %v118_v19, %v122_v20 }
  0x6a   :  { %v3838_v61 = vcombine.high %v155_v55, %v159_v56  ;;  %v3840_v62 = vcombine.high %v156_v57, %v160_v58  ;;  %v3837_v4 = vcombine.low %v155_v55, %v159_v56  ;;  %v3839_v5 = vcombine.low %v156_v57, %v160_v58  ;;  %v4581_v27 = vld [vmem:[#allocation4 + $0x8] sm:$0xff]   ;;  %v126_v28 = vld [vmem:[#allocation10 + $0xd8] sm:$0xff]  ;;  %v133_v34 = vld [vmem:[#allocation10 + $0x110] sm:$0xff] }
  0x6b   :  { %556 = vmatpush1.bf16.msra.mxu0 %v3805_v35  ;;  %629 = vmatpush1.bf16.msra.mxu1 %v3807_v36  ;;  %v130_v29 = vld [vmem:[#allocation10 + $0xf8] sm:$0xff]  ;;  %v3810_v32 = vcombine.high %v125_v25, %v129_v26  ;;  %v137_v35 = vld [vmem:[#allocation10 + $0x130] sm:$0xff]  ;;  %v3809_v38 = vcombine.low %v125_v25, %v129_v26  ;;  %v4604_v17 = vld [vmem:[#allocation12 + $0x28] sm:$0xff] }
  0x6c   :  { %557 = vmatprep.subr.bf16.mxu0 %v3814_v37  ;;  %630 = vmatprep.subr.bf16.mxu1 %v3816_v39  ;;  %v3812_v33 = vcombine.high %v126_v28, %v130_v29  ;;  %v134_v36 = vld [vmem:[#allocation10 + $0x118] sm:$0xff]  ;;  %v3811_v39 = vcombine.low %v126_v28, %v130_v29  ;;  %v3818_v40 = vcombine.high %v133_v34, %v137_v35  ;;  %v141_v42 = vld [vmem:[#allocation10 + $0x150] sm:$0xff]  ;;  %v1080_v26 = vld [vmem:[#allocation12 + $0xc0] sm:$0xff] }
  0x6d   :  { %v138_v37 = vld [vmem:[#allocation10 + $0x138] sm:$0xff]  ;;  %v1084_v28 = vld [vmem:[#allocation12 + $0xe0] sm:$0xff] }
  0x6e   :  { %v3820_v41 = vcombine.high %v134_v36, %v138_v37  ;;  %v146_v46 = vld [vmem:[#allocation10 + $0x178] sm:$0xff]  ;;  %v3819_v48 = vcombine.low %v134_v36, %v138_v37  ;;  %v4630_v29 = vcombine.high %v1080_v26, %v1084_v28 }
  0x6f   :  { %558 = vmatpush1.bf16.msra.mxu0 %v3813_v43  ;;  %631 = vmatpush1.bf16.msra.mxu1 %v3815_v44  ;;  %v145_v43 = vld [vmem:[#allocation10 + $0x170] sm:$0xff]  ;;  %v4587_v44 = vld [vmem:[#allocation4 + $0x10] sm:$0xff]   ;;  %v162_v63 = vld [vmem:[#allocation10 + $0x1f8] sm:$0xff] }
  0x70   :  { %559 = vmatprep.subr.bf16.mxu0 %v3822_v45  ;;  %632 = vmatprep.subr.bf16.mxu1 %v3824_v47  ;;  %v142_v45 = vld [vmem:[#allocation10 + $0x158] sm:$0xff]  ;;  %v3817_v47 = vcombine.low %v133_v34, %v137_v35  ;;  %v3826_v49 = vcombine.high %v141_v42, %v145_v43  ;;  %v3825_v55 = vcombine.low %v141_v42, %v145_v43  ;;  %v1096_v34 = vld [vmem:[#allocation12 + $0x140] sm:$0xff] }
  0x71   :  { %v3828_v50 = vcombine.high %v142_v45, %v146_v46  ;;  %v3827_v56 = vcombine.low %v142_v45, %v146_v46  ;;  %6847 = vst [vmem:[#allocation25_spill] sm:$0xff] %v4630_v29  ;;  %v1100_v35 = vld [vmem:[#allocation12 + $0x160] sm:$0xff] }
  0x72   :  { %v4646_v37 = vcombine.high %v1096_v34, %v1100_v35  ;;  %v1116_v42 = vld [vmem:[#allocation12 + $0x1e0] sm:$0xff] }
  0x73   :  { %560 = vmatpush1.bf16.msra.mxu0 %v3821_v51  ;;  %633 = vmatpush1.bf16.msra.mxu1 %v3823_v52  ;;  %v149_v51 = vld [vmem:[#allocation10 + $0x190] sm:$0xff]  ;;  %v1124_v46 = vld [vmem:[#allocation12 + $0x220] sm:$0xff] }
  0x74   :  { %561 = vmatprep.subr.bf16.mxu0 %v3830_v53  ;;  %634 = vmatprep.subr.bf16.mxu1 %v3832_v54  ;;  %v153_v52 = vld [vmem:[#allocation10 + $0x1b0] sm:$0xff]  ;;  %v150_v53 = vld [vmem:[#allocation10 + $0x198] sm:$0xff]  ;;  %6851 = vst [vmem:[#allocation29_spill] sm:$0xff] %v4646_v37 }
  0x75   :  { %v154_v54 = vld [vmem:[#allocation10 + $0x1b8] sm:$0xff]  ;;  %v3834_v57 = vcombine.high %v149_v51, %v153_v52  ;;  %v3833_v1 = vcombine.low %v149_v51, %v153_v52  ;;  %v1128_v52 = vld [vmem:[#allocation12 + $0x240] sm:$0xff] }
  0x76   :  { %v3836_v58 = vcombine.high %v150_v53, %v154_v54  ;;  %v3835_v2 = vcombine.low %v150_v53, %v154_v54  ;;  %v4049_v51 = vld [vmem:[#allocation7] sm:$0xff]   ;;  %v1132_v53 = vld [vmem:[#allocation12 + $0x260] sm:$0xff] }
  0x77   :  { %562 = vmatpush1.bf16.msra.mxu0 %v3829_v59  ;;  %635 = vmatpush1.bf16.msra.mxu1 %v3831_v60  ;;  %v157_v59 = vld [vmem:[#allocation10 + $0x1d0] sm:$0xff] }
  0x78   :  { %563 = vmatprep.subr.bf16.mxu0 %v3838_v61  ;;  %636 = vmatprep.subr.bf16.mxu1 %v3840_v62  ;;  %v161_v60 = vld [vmem:[#allocation10 + $0x1f0] sm:$0xff]  ;;  %v158_v62 = vld [vmem:[#allocation10 + $0x1d8] sm:$0xff] }
  0x79   :  { %v4593_v61 = vld [vmem:[#allocation4 + $0x18] sm:$0xff]   ;;  %v3842_v3 = vcombine.high %v157_v59, %v161_v60  ;;  %v3841_v9 = vcombine.low %v157_v59, %v161_v60  ;;  %v3843_v10 = vcombine.low %v158_v62, %v162_v63  ;;  %v1077_v59 = vld [vmem:[#allocation12 + $0xa8] sm:$0xff]  ;;  %v1136_v60 = vld [vmem:[#allocation12 + $0x280] sm:$0xff] }
  0x7b   :  { %564 = vmatpush1.bf16.msra.mxu0 %v3837_v4  ;;  %637 = vmatpush1.bf16.msra.mxu1 %v3839_v5  ;;  %v3844_v4 = vcombine.high %v158_v62, %v162_v63  ;;  %v913_v5 = vld [vmem:[#allocation9] sm:$0xff]  ;;  %v4693_v63 = vcombine.low %v1128_v52, %v1132_v53 }
  0x7c   :  { %695 = vmatprep.subr.bf16.mxu0 %v3786_v6  ;;  %768 = vmatprep.subr.bf16.mxu1 %v3788_v8  ;;  %v1056_v6 = vld [vmem:[#allocation12] sm:$0xff]  ;;  %v3850_v11 = vcombine.high %v913_v5, %v913_v5  ;;  %v3849_v12 = vcombine.low %v913_v5, %v913_v5 }
  0x7d   :  { %v1060_v8 = vld [vmem:[#allocation12 + $0x20] sm:$0xff]  ;;  %6863 = vst [vmem:[#allocation41_spill] sm:$0xff] %v4693_v63 }
  0x7e   :  { %582 = vmatmul.mubr.bf16.vlgmr.msra.gmra.mrb[0].mxu0 %v4576_v7  ;;  %655 = vmatmul.mubr.bf16.vlgmr.msra.gmra.mrb[0].mxu1 %v4576_v7  ;;  %v954_v18 = vsel %vm952_vm0, %v3849_v12, 0  ;;  %v4606_v19 = vcombine.low %v1056_v6, %v1060_v8  ;;  %v1144_v5 = vld [vmem:[#allocation12 + $0x2c0] sm:$0xff] }
  0x7f   :  { %696 = vmatpush1.bf16.msra.mxu0 %v3785_v13  ;;  %769 = vmatpush1.bf16.msra.mxu1 %v3787_v14  ;;  %v4599_v13 = vcombine.high %v1056_v6, %v1060_v8  ;;  %v1064_v14 = vld [vmem:[#allocation12 + $0x40] sm:$0xff] }
  0x80   :  { %697 = vmatprep.subr.bf16.mxu0 %v3794_v15  ;;  %770 = vmatprep.subr.bf16.mxu1 %v3796_v16  ;;  %v1068_v15 = vld [vmem:[#allocation12 + $0x60] sm:$0xff]  ;;  %v4602_v16 = vld [vmem:[#allocation12 + $0x8] sm:$0xff]  ;;  %6841 = vst [vmem:[#allocation19_spill] sm:$0xff] %v4606_v19 }
  0x81   :  { %591 = vmatprep.mubr.bf16.mxu0 %v6568_v0  ;;  %664 = vmatprep.mubr.bf16.mxu1 %v6568_v0  ;;  %6840 = vst [vmem:[#allocation18_spill] sm:$0xff] %v4599_v13  ;;  %v4609_v20 = vcombine.high %v1064_v14, %v1068_v15  ;;  %v4676_v54 = vcombine.low %v4602_v16, %v4604_v17  ;;  %v1148_v6 = vld [vmem:[#allocation12 + $0x2e0] sm:$0xff] }
  0x82   :  { %v4050_v8 = vld [vmem:[#allocation7 + $0x8] sm:$0xff]   ;;  %v4710_v12 = vcombine.high %v1144_v5, %v1148_v6 }
  0x83   :  { %698 = vmatpush1.bf16.msra.mxu0 %v3793_v21  ;;  %771 = vmatpush1.bf16.msra.mxu1 %v3795_v22  ;;  %6842 = vst [vmem:[#allocation20_spill] sm:$0xff] %v4609_v20  ;;  %v4613_v21 = vcombine.high %v4602_v16, %v4604_v17  ;;  %v1072_v22 = vld [vmem:[#allocation12 + $0x80] sm:$0xff]  ;;  %6858 = vst [vmem:[#allocation36_spill] sm:$0xff] %v4676_v54 }
  0x84   :  { %699 = vmatprep.subr.bf16.mxu0 %v3802_v23  ;;  %772 = vmatprep.subr.bf16.mxu1 %v3804_v24  ;;  %v1076_v23 = vld [vmem:[#allocation12 + $0xa0] sm:$0xff]  ;;  %v4618_v24 = vcombine.low %v1064_v14, %v1068_v15  ;;  %6869 = vst [vmem:[#allocation47_spill] sm:$0xff] %v4710_v12  ;;  %v1089_v14 = vld [vmem:[#allocation12 + $0x108] sm:$0xff] }
  0x85   :  { %6843 = vst [vmem:[#allocation21_spill] sm:$0xff] %v4613_v21  ;;  %v4622_v25 = vcombine.high %v1072_v22, %v1076_v23  ;;  %v1093_v15 = vld [vmem:[#allocation12 + $0x128] sm:$0xff]  ;;  %v1152_v16 = vld [vmem:[#allocation12 + $0x300] sm:$0xff] }
  0x86   :  { %592 = vmatmul.mubr.bf16.gmra.mrb[4].mxu0 %v4581_v27  ;;  %665 = vmatmul.mubr.bf16.gmra.mrb[4].mxu1 %v4581_v27  ;;  %6844 = vst [vmem:[#allocation22_spill] sm:$0xff] %v4618_v24  ;;  %v1156_v17 = vld [vmem:[#allocation12 + $0x320] sm:$0xff] }
  0x87   :  { %700 = vmatpush1.bf16.msra.mxu0 %v3801_v30  ;;  %773 = vmatpush1.bf16.msra.mxu1 %v3803_v31  ;;  %6845 = vst [vmem:[#allocation23_spill] sm:$0xff] %v4622_v25  ;;  %v1088_v30 = vld [vmem:[#allocation12 + $0x100] sm:$0xff] }
  0x88   :  { %701 = vmatprep.subr.bf16.mxu0 %v3810_v32  ;;  %774 = vmatprep.subr.bf16.mxu1 %v3812_v33  ;;  %v1092_v31 = vld [vmem:[#allocation12 + $0x120] sm:$0xff]  ;;  %v4636_v32 = vcombine.low %v1080_v26, %v1084_v28  ;;  %v4724_v26 = vcombine.high %v1152_v16, %v1156_v17  ;;  %v1097_v28 = vld [vmem:[#allocation12 + $0x148] sm:$0xff] }
  0x89   :  { %601 = vmatprep.mubr.bf16.mxu0 %v6568_v0  ;;  %674 = vmatprep.mubr.bf16.mxu1 %v6568_v0  ;;  %v4640_v33 = vcombine.high %v1088_v30, %v1092_v31  ;;  %v4643_v36 = vcombine.low %v1088_v30, %v1092_v31  ;;  %v1101_v30 = vld [vmem:[#allocation12 + $0x168] sm:$0xff]  ;;  %v1160_v31 = vld [vmem:[#allocation12 + $0x340] sm:$0xff] }
  0x8a   :  { %6848 = vst [vmem:[#allocation26_spill] sm:$0xff] %v4636_v32  ;;  %6873 = vst [vmem:[#allocation51_spill] sm:$0xff] %v4724_v26 }
  0x8b   :  { %702 = vmatpush1.bf16.msra.mxu0 %v3809_v38  ;;  %775 = vmatpush1.bf16.msra.mxu1 %v3811_v39  ;;  %6849 = vst [vmem:[#allocation27_spill] sm:$0xff] %v4640_v33  ;;  %6850 = vst [vmem:[#allocation28_spill] sm:$0xff] %v4643_v36  ;;  %v1108_v38 = vld [vmem:[#allocation12 + $0x1a0] sm:$0xff]  ;;  %v4652_v39 = vcombine.low %v1096_v34, %v1100_v35  ;;  %v4051_v35 = vld [vmem:[#allocation7 + $0x10] sm:$0xff]  }
  0x8c   :  { %703 = vmatprep.subr.bf16.mxu0 %v3818_v40  ;;  %776 = vmatprep.subr.bf16.mxu1 %v3820_v41  ;;  %v1112_v41 = vld [vmem:[#allocation12 + $0x1c0] sm:$0xff] }
  0x8d   :  { %6852 = vst [vmem:[#allocation30_spill] sm:$0xff] %v4652_v39  ;;  %v4662_v45 = vcombine.high %v1112_v41, %v1116_v42  ;;  %v1164_v34 = vld [vmem:[#allocation12 + $0x360] sm:$0xff] }
  0x8e   :  { %602 = vmatmul.mubr.bf16.gmra.mrb[8].mxu0 %v4587_v44  ;;  %675 = vmatmul.mubr.bf16.gmra.mrb[8].mxu1 %v4587_v44 }
  0x8f   :  { %704 = vmatpush1.bf16.msra.mxu0 %v3817_v47  ;;  %777 = vmatpush1.bf16.msra.mxu1 %v3819_v48  ;;  %6855 = vst [vmem:[#allocation33_spill] sm:$0xff] %v4662_v45  ;;  %v4668_v47 = vcombine.low %v1112_v41, %v1116_v42  ;;  %v4733_v41 = vcombine.high %v1097_v28, %v1101_v30 }
  0x90   :  { %705 = vmatprep.subr.bf16.mxu0 %v3826_v49  ;;  %778 = vmatprep.subr.bf16.mxu1 %v3828_v50  ;;  %v1065_v49 = vld [vmem:[#allocation12 + $0x48] sm:$0xff]  ;;  %v4736_v42 = vcombine.high %v1160_v31, %v1164_v34 }
  0x91   :  { %611 = vmatprep.mubr.bf16.mxu0 %v6568_v0  ;;  %684 = vmatprep.mubr.bf16.mxu1 %v6568_v0  ;;  %6856 = vst [vmem:[#allocation34_spill] sm:$0xff] %v4668_v47  ;;  %v1069_v50 = vld [vmem:[#allocation12 + $0x68] sm:$0xff]  ;;  %6876 = vst [vmem:[#allocation54_spill] sm:$0xff] %v4733_v41 }
  0x92   :  { %v4688_v62 = vcombine.low %v1065_v49, %v1069_v50  ;;  %6877 = vst [vmem:[#allocation55_spill] sm:$0xff] %v4736_v42 }
  0x93   :  { %706 = vmatpush1.bf16.msra.mxu0 %v3825_v55  ;;  %779 = vmatpush1.bf16.msra.mxu1 %v3827_v56  ;;  %v4681_v56 = vcombine.high %v1065_v49, %v1069_v50  ;;  %v1168_v49 = vld [vmem:[#allocation12 + $0x380] sm:$0xff] }
  0x94   :  { %707 = vmatprep.subr.bf16.mxu0 %v3834_v57  ;;  %780 = vmatprep.subr.bf16.mxu1 %v3836_v58  ;;  %v4684_v57 = vcombine.high %v1128_v52, %v1132_v53  ;;  %v1073_v58 = vld [vmem:[#allocation12 + $0x88] sm:$0xff]  ;;  %6862 = vst [vmem:[#allocation40_spill] sm:$0xff] %v4688_v62  ;;  %v1172_v50 = vld [vmem:[#allocation12 + $0x3a0] sm:$0xff]  ;;  %v4745_v52 = vcombine.low %v1160_v31, %v1164_v34 }
  0x95   :  { %6860 = vst [vmem:[#allocation38_spill] sm:$0xff] %v4681_v56 }
  0x96   :  { %612 = vmatmul.mubr.bf16.gmra.mrb[12].mxu0 %v4593_v61  ;;  %685 = vmatmul.mubr.bf16.gmra.mrb[12].mxu1 %v4593_v61  ;;  %6861 = vst [vmem:[#allocation39_spill] sm:$0xff] %v4684_v57  ;;  %6879 = vst [vmem:[#allocation57_spill] sm:$0xff] %v4745_v52 }
  0x97   :  { %708 = vmatpush1.bf16.msra.mxu0 %v3833_v1  ;;  %781 = vmatpush1.bf16.msra.mxu1 %v3835_v2  ;;  %v4695_v1 = vcombine.high %v1073_v58, %v1077_v59 }
  0x98   :  { %709 = vmatprep.subr.bf16.mxu0 %v3842_v3  ;;  %782 = vmatprep.subr.bf16.mxu1 %v3844_v4  ;;  %v1081_v3 = vld [vmem:[#allocation12 + $0xc8] sm:$0xff] }
  0x99   :  { %727 = vmatprep.mubr.bf16.mxu0 %v6568_v0  ;;  %800 = vmatprep.mubr.bf16.mxu1 %v6568_v0  ;;  %6864 = vst [vmem:[#allocation42_spill] sm:$0xff] %v4695_v1  ;;  %v1085_v4 = vld [vmem:[#allocation12 + $0xe8] sm:$0xff] }
  0x9b   :  { %710 = vmatpush1.bf16.msra.mxu0 %v3841_v9  ;;  %783 = vmatpush1.bf16.msra.mxu1 %v3843_v10  ;;  %v4701_v9 = vcombine.low %v1073_v58, %v1077_v59  ;;  %v4750_v58 = vcombine.high %v1168_v49, %v1172_v50  ;;  %v1113_v59 = vld [vmem:[#allocation12 + $0x1c8] sm:$0xff] }
  0x9c   :  { %3851 = vmatprep.subr.msk.bf16.mxu0 %vm952_vm0, %v3850_v11  ;;  %1824 = vmatprep.subr.bf16.mxu1 %v4599_v13  ;;  %v4707_v11 = vcombine.high %v1081_v3, %v1085_v4 }
  0x9d   :  { %6866 = vst [vmem:[#allocation44_spill] sm:$0xff] %v4701_v9  ;;  %6881 = vst [vmem:[#allocation59_spill] sm:$0xff] %v4750_v58 }
  0x9e   :  { %728 = vmatmul.mubr.bf16.vlgmr.msra.gmra.mrb[16].mxu0 %v4576_v7  ;;  %801 = vmatmul.mubr.bf16.vlgmr.msra.gmra.mrb[16].mxu1 %v4576_v7  ;;  %v4627_v7 = vcombine.low %v1072_v22, %v1076_v23  ;;  %6868 = vst [vmem:[#allocation46_spill] sm:$0xff] %v4707_v11  ;;  %v4719_v22 = vcombine.low %v1144_v5, %v1148_v6 }
  0x9f   :  { %960 = vmatpush1.bf16.msra.mxu0 %v954_v18  ;;  %1825 = vmatpush1.bf16.msra.mxu1 %v4606_v19  ;;  %v4714_v18 = vcombine.low %v1081_v3, %v1085_v4  ;;  %v4721_v23 = vcombine.high %v1089_v14, %v1093_v15  ;;  %v1180_v3 = vld [vmem:[#allocation12 + $0x3e0] sm:$0xff]  ;;  %v4052_v4 = vld [vmem:[#allocation7 + $0x18] sm:$0xff]   ;;  %v4757_v6 = vcombine.low %v1168_v49, %v1172_v50 }
  0xa0   :  { %737 = vmatprep.mubr.bf16.mxu0 %v6568_v0  ;;  %1826 = vmatprep.subr.bf16.mxu1 %v4609_v20  ;;  %6846 = vst [vmem:[#allocation24_spill] sm:$0xff] %v4627_v7  ;;  %6871 = vst [vmem:[#allocation49_spill] sm:$0xff] %v4719_v22  ;;  %v1066_v49 = vld [vmem:[#allocation12 + $0x50] sm:$0xff] }
  0xa1   :  { %1865 = vmatprep.subr.bf16.mxu0 %v4613_v21  ;;  %810 = vmatprep.mubr.bf16.mxu1 %v6568_v0  ;;  %6870 = vst [vmem:[#allocation48_spill] sm:$0xff] %v4714_v18  ;;  %6872 = vst [vmem:[#allocation50_spill] sm:$0xff] %v4721_v23  ;;  %v1070_v50 = vld [vmem:[#allocation12 + $0x70] sm:$0xff] }
  0xa2   :  { %6883 = vst [vmem:[#allocation61_spill] sm:$0xff] %v4757_v6 }
  0xa3   :  { %1827 = vmatpush1.bf16.msra.mxu1 %v4618_v24 }
  0xa4   :  { %1828 = vmatprep.subr.bf16.mxu1 %v4622_v25 }
  0xa6   :  { %738 = vmatmul.mubr.bf16.gmra.mrb[20].mxu0 %v4581_v27  ;;  %811 = vmatmul.mubr.bf16.gmra.mrb[20].mxu1 %v4581_v27  ;;  %v1104_v27 = vld [vmem:[#allocation12 + $0x180] sm:$0xff] }
  0xa7   :  { %747 = vmatprep.mubr.bf16.mxu0 %v6568_v0  ;;  %1829 = vmatpush1.bf16.msra.mxu1 %v4627_v7  ;;  %v4656_v40 = vcombine.high %v1104_v27, %v1108_v38  ;;  %v4659_v43 = vcombine.low %v1104_v27, %v1108_v38  ;;  %v4727_v27 = vcombine.low %v1089_v14, %v1093_v15  ;;  %v1121_v15 = vld [vmem:[#allocation12 + $0x208] sm:$0xff] }
  0xa8   :  { %820 = vmatprep.mubr.bf16.mxu1 %v6568_v0  ;;  %1830 = vmatprep.subr.bf16.mxu1 %v4630_v29  ;;  %v4731_v38 = vcombine.low %v1152_v16, %v1156_v17  ;;  %v1125_v16 = vld [vmem:[#allocation12 + $0x228] sm:$0xff]  ;;  %v1058_v17 = vld [vmem:[#allocation12 + $0x10] sm:$0xff] }
  0xa9   :  { %6853 = vst [vmem:[#allocation31_spill] sm:$0xff] %v4656_v40  ;;  %6854 = vst [vmem:[#allocation32_spill] sm:$0xff] %v4659_v43  ;;  %v4773_v34 = vcombine.high %v1121_v15, %v1125_v16 }
  0xaa   :  { %6874 = vst [vmem:[#allocation52_spill] sm:$0xff] %v4727_v27  ;;  %6875 = vst [vmem:[#allocation53_spill] sm:$0xff] %v4731_v38 }
  0xab   :  { %1831 = vmatpush1.bf16.msra.mxu1 %v4636_v32  ;;  %6888 = vst [vmem:[#allocation66_spill] sm:$0xff] %v4773_v34 }
  0xac   :  { %1832 = vmatprep.subr.bf16.mxu1 %v4640_v33 }
  0xae   :  { %748 = vmatmul.mubr.bf16.gmra.mrb[24].mxu0 %v4587_v44  ;;  %821 = vmatmul.mubr.bf16.gmra.mrb[24].mxu1 %v4587_v44  ;;  %v1120_v44 = vld [vmem:[#allocation12 + $0x200] sm:$0xff] }
  0xaf   :  { %757 = vmatprep.mubr.bf16.mxu0 %v6568_v0  ;;  %1833 = vmatpush1.bf16.msra.mxu1 %v4643_v36  ;;  %v4672_v48 = vcombine.high %v1120_v44, %v1124_v46  ;;  %v4679_v55 = vcombine.low %v1120_v44, %v1124_v46  ;;  %v1105_v44 = vld [vmem:[#allocation12 + $0x188] sm:$0xff] }
  0xb0   :  { %830 = vmatprep.mubr.bf16.mxu1 %v6568_v0  ;;  %1834 = vmatprep.subr.bf16.mxu1 %v4646_v37  ;;  %v1109_v46 = vld [vmem:[#allocation12 + $0x1a8] sm:$0xff] }
  0xb1   :  { %6857 = vst [vmem:[#allocation35_spill] sm:$0xff] %v4672_v48  ;;  %6859 = vst [vmem:[#allocation37_spill] sm:$0xff] %v4679_v55  ;;  %v4747_v53 = vcombine.high %v1105_v44, %v1109_v46  ;;  %v4753_v5 = vcombine.low %v1105_v44, %v1109_v46  ;;  %v1129_v44 = vld [vmem:[#allocation12 + $0x248] sm:$0xff] }
  0xb2   :  { %v1133_v46 = vld [vmem:[#allocation12 + $0x268] sm:$0xff] }
  0xb3   :  { %1835 = vmatpush1.bf16.msra.mxu1 %v4652_v39  ;;  %6880 = vst [vmem:[#allocation58_spill] sm:$0xff] %v4747_v53  ;;  %6882 = vst [vmem:[#allocation60_spill] sm:$0xff] %v4753_v5 }
  0xb4   :  { %1836 = vmatprep.subr.bf16.mxu1 %v4656_v40 }
  0xb6   :  { %758 = vmatmul.mubr.bf16.gmra.mrb[28].mxu0 %v4593_v61  ;;  %831 = vmatmul.mubr.bf16.gmra.mrb[28].mxu1 %v4593_v61  ;;  %v1140_v61 = vld [vmem:[#allocation12 + $0x2a0] sm:$0xff] }
  0xb7   :  { %991 = vmatprep.mubr.bf16.mxu0 %v6568_v0  ;;  %1837 = vmatpush1.bf16.msra.mxu1 %v4659_v43  ;;  %v4698_v2 = vcombine.high %v1136_v60, %v1140_v61  ;;  %v4705_v10 = vcombine.low %v1136_v60, %v1140_v61  ;;  %v1117_v60 = vld [vmem:[#allocation12 + $0x1e8] sm:$0xff]  ;;  %v1176_v61 = vld [vmem:[#allocation12 + $0x3c0] sm:$0xff] }
  0xb8   :  { %1856 = vmatprep.mubr.bf16.mxu1 %v6568_v0  ;;  %1838 = vmatprep.subr.bf16.mxu1 %v4662_v45  ;;  %v4762_v14 = vcombine.high %v1176_v61, %v1180_v3  ;;  %v4771_v31 = vcombine.low %v1176_v61, %v1180_v3  ;;  %v4785_v61 = vcombine.high %v1129_v44, %v1133_v46 }
  0xb9   :  { %6865 = vst [vmem:[#allocation43_spill] sm:$0xff] %v4698_v2  ;;  %6867 = vst [vmem:[#allocation45_spill] sm:$0xff] %v4705_v10  ;;  %v4788_v3 = vcombine.high %v1066_v49, %v1070_v50 }
  0xba   :  { %6885 = vst [vmem:[#allocation63_spill] sm:$0xff] %v4762_v14  ;;  %6887 = vst [vmem:[#allocation65_spill] sm:$0xff] %v4771_v31 }
  0xbb   :  { %1839 = vmatpush1.bf16.msra.mxu1 %v4668_v47  ;;  %6892 = vst [vmem:[#allocation70_spill] sm:$0xff] %v4785_v61  ;;  %6893 = vst [vmem:[#allocation71_spill] sm:$0xff] %v4788_v3 }
  0xbc   :  { %1840 = vmatprep.subr.bf16.mxu1 %v4672_v48 }
  0xbe   :  { %3852 = vmatmul.mubr.msk.bf16.vlgmr.msra.gmra.mrb[32].mxu0 %vm939_vm1, %v4049_v51  ;;  %v4740_v51 = vcombine.low %v1097_v28, %v1101_v30  ;;  %v1062_v28 = vld [vmem:[#allocation12 + $0x30] sm:$0xff]  ;;  %v4766_v30 = vcombine.low %v1113_v59, %v1117_v60 }
  0xbf   :  { %1866 = vmatpush1.bf16.msra.mxu0 %v4676_v54  ;;  %1001 = vmatprep.mubr.bf16.mxu0 %v6568_v0 }
  0xc0   :  { %1841 = vmatpush1.bf16.msra.mxu1 %v4679_v55  ;;  %1867 = vmatprep.subr.bf16.mxu0 %v4681_v56  ;;  %6878 = vst [vmem:[#allocation56_spill] sm:$0xff] %v4740_v51  ;;  %6886 = vst [vmem:[#allocation64_spill] sm:$0xff] %v4766_v30 }
  0xc1   :  { %1842 = vmatprep.subr.bf16.mxu1 %v4684_v57 }
  0xc3   :  { %1868 = vmatpush1.bf16.msra.mxu0 %v4688_v62 }
  0xc4   :  { %1843 = vmatpush1.bf16.msra.mxu1 %v4693_v63  ;;  %1869 = vmatprep.subr.bf16.mxu0 %v4695_v1 }
  0xc5   :  { %1844 = vmatprep.subr.bf16.mxu1 %v4698_v2 }
  0xc6   :  { %3853 = vmatmul.mubr.msk.bf16.gmra.mrb[36].mxu0 %vm939_vm1, %v4050_v8  ;;  %v4759_v8 = vcombine.high %v1113_v59, %v1117_v60  ;;  %v4779_v59 = vcombine.low %v1121_v15, %v1125_v16  ;;  %v4783_v60 = vcombine.low %v1058_v17, %v1062_v28  ;;  %v4792_v15 = vcombine.low %v1129_v44, %v1133_v46 }
  0xc7   :  { %1870 = vmatpush1.bf16.msra.mxu0 %v4701_v9  ;;  %1011 = vmatprep.mubr.bf16.mxu0 %v6568_v0  ;;  %v4796_v16 = vcombine.low %v1066_v49, %v1070_v50 }
  0xc8   :  { %1845 = vmatpush1.bf16.msra.mxu1 %v4705_v10  ;;  %1871 = vmatprep.subr.bf16.mxu0 %v4707_v11  ;;  %6884 = vst [vmem:[#allocation62_spill] sm:$0xff] %v4759_v8  ;;  %6890 = vst [vmem:[#allocation68_spill] sm:$0xff] %v4779_v59 }
  0xc9   :  { %1846 = vmatprep.subr.bf16.mxu1 %v4710_v12  ;;  %6891 = vst [vmem:[#allocation69_spill] sm:$0xff] %v4783_v60  ;;  %6895 = vst [vmem:[#allocation72_spill] sm:$0xff] %v4792_v15 }
  0xca   :  { %6896 = vst [vmem:[#allocation73_spill] sm:$0xff] %v4796_v16 }
  0xcb   :  { %1872 = vmatpush1.bf16.msra.mxu0 %v4714_v18 }
  0xcc   :  { %1847 = vmatpush1.bf16.msra.mxu1 %v4719_v22  ;;  %1873 = vmatprep.subr.bf16.mxu0 %v4721_v23 }
  0xcd   :  { %1848 = vmatprep.subr.bf16.mxu1 %v4724_v26 }
  0xce   :  { %3854 = vmatmul.mubr.msk.bf16.gmra.mrb[40].mxu0 %vm939_vm1, %v4051_v35  ;;  %v4776_v35 = vcombine.high %v1058_v17, %v1062_v28 }
  0xcf   :  { %1874 = vmatpush1.bf16.msra.mxu0 %v4727_v27  ;;  %1021 = vmatprep.mubr.bf16.mxu0 %v6568_v0 }
  0xd0   :  { %1849 = vmatpush1.bf16.msra.mxu1 %v4731_v38  ;;  %1875 = vmatprep.subr.bf16.mxu0 %v4733_v41  ;;  %6889 = vst [vmem:[#allocation67_spill] sm:$0xff] %v4776_v35 }
  0xd1   :  { %1850 = vmatprep.subr.bf16.mxu1 %v4736_v42 }
  0xd3   :  { %1876 = vmatpush1.bf16.msra.mxu0 %v4740_v51 }
  0xd4   :  { %1851 = vmatpush1.bf16.msra.mxu1 %v4745_v52  ;;  %1877 = vmatprep.subr.bf16.mxu0 %v4747_v53 }
  0xd5   :  { %1852 = vmatprep.subr.bf16.mxu1 %v4750_v58 }
  0xd6   :  { %3855 = vmatmul.mubr.msk.bf16.gmra.mrb[44].mxu0 %vm939_vm1, %v4052_v4  ;;  %v1137_v4 = vld [vmem:[#allocation12 + $0x288] sm:$0xff] }
  0xd7   :  { %1878 = vmatpush1.bf16.msra.mxu0 %v4753_v5  ;;  %1897 = vmatprep.mubr.bf16.mxu0 %v6568_v0  ;;  %v1141_v0 = vld [vmem:[#allocation12 + $0x2a8] sm:$0xff] }
  0xd8   :  { %1853 = vmatpush1.bf16.msra.mxu1 %v4757_v6  ;;  %1879 = vmatprep.subr.bf16.mxu0 %v4759_v8  ;;  %v1078_v6 = vld [vmem:[#allocation12 + $0xb0] sm:$0xff]  ;;  %v6894_v8 = vmov 0   ;;  %v4798_v17 = vcombine.high %v1137_v4, %v1141_v0  ;;  %v4805_v44 = vcombine.low %v1137_v4, %v1141_v0 }
  0xd9   :  { %1854 = vmatprep.subr.bf16.mxu1 %v4762_v14  ;;  %v1074_v14 = vld [vmem:[#allocation12 + $0x90] sm:$0xff] }
  0xda   :  { %6897 = vst [vmem:[#allocation74_spill] sm:$0xff] %v4798_v17  ;;  %v4801_v28 = vcombine.high %v1074_v14, %v1078_v6  ;;  %6899 = vst [vmem:[#allocation76_spill] sm:$0xff] %v4805_v44  ;;  %v4809_v46 = vcombine.low %v1074_v14, %v1078_v6 }
  0xdb   :  { %1880 = vmatpush1.bf16.msra.mxu0 %v4766_v30  ;;  %v1094_v30 = vld [vmem:[#allocation12 + $0x130] sm:$0xff] }
  0xdc   :  { %1855 = vmatpush1.bf16.msra.mxu1 %v4771_v31  ;;  %1881 = vmatprep.subr.bf16.mxu0 %v4773_v34  ;;  %6898 = vst [vmem:[#allocation75_spill] sm:$0xff] %v4801_v28  ;;  %v1149_v31 = vld [vmem:[#allocation12 + $0x2e8] sm:$0xff]  ;;  %v1082_v34 = vld [vmem:[#allocation12 + $0xd0] sm:$0xff]  ;;  %6900 = vst [vmem:[#allocation77_spill] sm:$0xff] %v4809_v46 }
  0xdd   :  { %1906 = vmatprep.subr.bf16.mxu1 %v4776_v35  ;;  %v1145_v35 = vld [vmem:[#allocation12 + $0x2c8] sm:$0xff] }
  0xde   :  { %v4811_v49 = vcombine.high %v1145_v35, %v1149_v31  ;;  %v4817_v0 = vcombine.low %v1145_v35, %v1149_v31 }
  0xdf   :  { %1857 = vmatmul.mubr.bf16.vlgmr.msra.gmra.mrb[32].mxu1 %v6894_v8  ;;  %1882 = vmatpush1.bf16.msra.mxu0 %v4779_v59  ;;  %v1086_v59 = vld [vmem:[#allocation12 + $0xf0] sm:$0xff] }
  0xe0   :  { %1907 = vmatpush1.bf16.msra.mxu1 %v4783_v60  ;;  %1883 = vmatprep.subr.bf16.mxu0 %v4785_v61  ;;  %6901 = vst [vmem:[#allocation78_spill] sm:$0xff] %v4811_v49  ;;  %v4814_v50 = vcombine.high %v1082_v34, %v1086_v59  ;;  %v1157_v60 = vld [vmem:[#allocation12 + $0x328] sm:$0xff]  ;;  %v1090_v61 = vld [vmem:[#allocation12 + $0x110] sm:$0xff]  ;;  %6903 = vst [vmem:[#allocation80_spill] sm:$0xff] %v4817_v0  ;;  %v4821_v6 = vcombine.low %v1082_v34, %v1086_v59 }
  0xe1   :  { %1908 = vmatprep.subr.bf16.mxu1 %v4788_v3  ;;  %1938 = vmatprep.mubr.bf16.mxu1 %v6894_v8  ;;  %v1153_v3 = vld [vmem:[#allocation12 + $0x308] sm:$0xff]  ;;  %v4826_v4 = vcombine.high %v1090_v61, %v1094_v30  ;;  %v4833_v34 = vcombine.low %v1090_v61, %v1094_v30 }
  0xe2   :  { %6902 = vst [vmem:[#allocation79_spill] sm:$0xff] %v4814_v50  ;;  %6904 = vst [vmem:[#allocation81_spill] sm:$0xff] %v4821_v6  ;;  %v4823_v14 = vcombine.high %v1153_v3, %v1157_v60  ;;  %v4829_v31 = vcombine.low %v1153_v3, %v1157_v60 }
  0xe3   :  { %1884 = vmatpush1.bf16.msra.mxu0 %v4792_v15  ;;  %6906 = vst [vmem:[#allocation83_spill] sm:$0xff] %v4826_v4  ;;  %v1102_v15 = vld [vmem:[#allocation12 + $0x170] sm:$0xff]  ;;  %6908 = vst [vmem:[#allocation85_spill] sm:$0xff] %v4833_v34 }
  0xe4   :  { %1909 = vmatpush1.bf16.msra.mxu1 %v4796_v16  ;;  %1885 = vmatprep.subr.bf16.mxu0 %v4798_v17  ;;  %6905 = vst [vmem:[#allocation82_spill] sm:$0xff] %v4823_v14  ;;  %v1165_v16 = vld [vmem:[#allocation12 + $0x368] sm:$0xff]  ;;  %v1098_v17 = vld [vmem:[#allocation12 + $0x150] sm:$0xff]  ;;  %6907 = vst [vmem:[#allocation84_spill] sm:$0xff] %v4829_v31 }
  0xe5   :  { %1910 = vmatprep.subr.bf16.mxu1 %v4801_v28  ;;  %v1161_v28 = vld [vmem:[#allocation12 + $0x348] sm:$0xff]  ;;  %v4838_v59 = vcombine.high %v1098_v17, %v1102_v15  ;;  %v4845_v30 = vcombine.low %v1098_v17, %v1102_v15 }
  0xe6   :  { %v4835_v35 = vcombine.high %v1161_v28, %v1165_v16  ;;  %v4841_v60 = vcombine.low %v1161_v28, %v1165_v16 }
  0xe7   :  { %1886 = vmatpush1.bf16.msra.mxu0 %v4805_v44  ;;  %6910 = vst [vmem:[#allocation87_spill] sm:$0xff] %v4838_v59  ;;  %v1110_v44 = vld [vmem:[#allocation12 + $0x1b0] sm:$0xff]  ;;  %6912 = vst [vmem:[#allocation89_spill] sm:$0xff] %v4845_v30 }
  0xe8   :  { %1911 = vmatpush1.bf16.msra.mxu1 %v4809_v46  ;;  %1887 = vmatprep.subr.bf16.mxu0 %v4811_v49  ;;  %6909 = vst [vmem:[#allocation86_spill] sm:$0xff] %v4835_v35  ;;  %v1173_v46 = vld [vmem:[#allocation12 + $0x3a8] sm:$0xff]  ;;  %v1106_v49 = vld [vmem:[#allocation12 + $0x190] sm:$0xff]  ;;  %6911 = vst [vmem:[#allocation88_spill] sm:$0xff] %v4841_v60 }
  0xe9   :  { %1912 = vmatprep.subr.bf16.mxu1 %v4814_v50  ;;  %v1169_v50 = vld [vmem:[#allocation12 + $0x388] sm:$0xff]  ;;  %v4850_v3 = vcombine.high %v1106_v49, %v1110_v44  ;;  %v4857_v15 = vcombine.low %v1106_v49, %v1110_v44 }
  0xea   :  { %v4847_v61 = vcombine.high %v1169_v50, %v1173_v46  ;;  %v4853_v16 = vcombine.low %v1169_v50, %v1173_v46 }
  0xeb   :  { %1888 = vmatpush1.bf16.msra.mxu0 %v4817_v0  ;;  %6914 = vst [vmem:[#allocation91_spill] sm:$0xff] %v4850_v3  ;;  %v1118_v0 = vld [vmem:[#allocation12 + $0x1f0] sm:$0xff]  ;;  %6916 = vst [vmem:[#allocation93_spill] sm:$0xff] %v4857_v15 }
  0xec   :  { %1913 = vmatpush1.bf16.msra.mxu1 %v4821_v6  ;;  %1889 = vmatprep.subr.bf16.mxu0 %v4823_v14  ;;  %6913 = vst [vmem:[#allocation90_spill] sm:$0xff] %v4847_v61  ;;  %v1181_v6 = vld [vmem:[#allocation12 + $0x3e8] sm:$0xff]  ;;  %v1114_v14 = vld [vmem:[#allocation12 + $0x1d0] sm:$0xff]  ;;  %6915 = vst [vmem:[#allocation92_spill] sm:$0xff] %v4853_v16 }
  0xed   :  { %1914 = vmatprep.subr.bf16.mxu1 %v4826_v4  ;;  %v1177_v4 = vld [vmem:[#allocation12 + $0x3c8] sm:$0xff]  ;;  %v4862_v28 = vcombine.high %v1114_v14, %v1118_v0  ;;  %v4869_v44 = vcombine.low %v1114_v14, %v1118_v0 }
  0xee   :  { %v4859_v17 = vcombine.high %v1177_v4, %v1181_v6  ;;  %v4865_v46 = vcombine.low %v1177_v4, %v1181_v6 }
  0xef   :  { %1890 = vmatpush1.bf16.msra.mxu0 %v4829_v31  ;;  %6918 = vst [vmem:[#allocation95_spill] sm:$0xff] %v4862_v28  ;;  %v1126_v31 = vld [vmem:[#allocation12 + $0x230] sm:$0xff]  ;;  %6920 = vst [vmem:[#allocation97_spill] sm:$0xff] %v4869_v44 }
  0xf0   :  { %1915 = vmatpush1.bf16.msra.mxu1 %v4833_v34  ;;  %1891 = vmatprep.subr.bf16.mxu0 %v4835_v35  ;;  %6917 = vst [vmem:[#allocation94_spill] sm:$0xff] %v4859_v17  ;;  %v1063_v34 = vld [vmem:[#allocation12 + $0x38] sm:$0xff]  ;;  %v1122_v35 = vld [vmem:[#allocation12 + $0x210] sm:$0xff]  ;;  %6919 = vst [vmem:[#allocation96_spill] sm:$0xff] %v4865_v46 }
  0xf1   :  { %1916 = vmatprep.subr.bf16.mxu1 %v4838_v59  ;;  %v1059_v59 = vld [vmem:[#allocation12 + $0x18] sm:$0xff]  ;;  %v4874_v50 = vcombine.high %v1122_v35, %v1126_v31  ;;  %v4881_v0 = vcombine.low %v1122_v35, %v1126_v31 }
  0xf2   :  { %v4871_v49 = vcombine.high %v1059_v59, %v1063_v34  ;;  %v4877_v6 = vcombine.low %v1059_v59, %v1063_v34 }
  0xf3   :  { %1892 = vmatpush1.bf16.msra.mxu0 %v4841_v60  ;;  %6922 = vst [vmem:[#allocation99_spill] sm:$0xff] %v4874_v50  ;;  %v1134_v60 = vld [vmem:[#allocation12 + $0x270] sm:$0xff]  ;;  %6924 = vst [vmem:[#allocation101_spill] sm:$0xff] %v4881_v0 }
  0xf4   :  { %1917 = vmatpush1.bf16.msra.mxu1 %v4845_v30  ;;  %1893 = vmatprep.subr.bf16.mxu0 %v4847_v61  ;;  %6921 = vst [vmem:[#allocation98_spill] sm:$0xff] %v4871_v49  ;;  %v1071_v30 = vld [vmem:[#allocation12 + $0x78] sm:$0xff]  ;;  %v1130_v61 = vld [vmem:[#allocation12 + $0x250] sm:$0xff]  ;;  %6923 = vst [vmem:[#allocation100_spill] sm:$0xff] %v4877_v6 }
  0xf5   :  { %1918 = vmatprep.subr.bf16.mxu1 %v4850_v3  ;;  %v1067_v3 = vld [vmem:[#allocation12 + $0x58] sm:$0xff]  ;;  %v4886_v4 = vcombine.high %v1130_v61, %v1134_v60  ;;  %v4895_v31 = vcombine.low %v1130_v61, %v1134_v60 }
  0xf6   :  { %v4883_v14 = vcombine.high %v1067_v3, %v1071_v30  ;;  %v4890_v34 = vcombine.low %v1067_v3, %v1071_v30 }
  0xf7   :  { %1894 = vmatpush1.bf16.msra.mxu0 %v4853_v16  ;;  %6926 = vst [vmem:[#allocation103_spill] sm:$0xff] %v4886_v4  ;;  %6928 = vst [vmem:[#allocation105_spill] sm:$0xff] %v4895_v31  ;;  %v1158_v16 = vld [vmem:[#allocation12 + $0x330] sm:$0xff] }
  0xf8   :  { %1919 = vmatpush1.bf16.msra.mxu1 %v4857_v15  ;;  %1895 = vmatprep.subr.bf16.mxu0 %v4859_v17  ;;  %6925 = vst [vmem:[#allocation102_spill] sm:$0xff] %v4883_v14  ;;  %v1079_v15 = vld [vmem:[#allocation12 + $0xb8] sm:$0xff]  ;;  %v1138_v17 = vld [vmem:[#allocation12 + $0x290] sm:$0xff]  ;;  %6927 = vst [vmem:[#allocation104_spill] sm:$0xff] %v4890_v34 }
  0xf9   :  { %1920 = vmatprep.subr.bf16.mxu1 %v4862_v28  ;;  %v1075_v28 = vld [vmem:[#allocation12 + $0x98] sm:$0xff] }
  0xfa   :  { %v4897_v35 = vcombine.high %v1075_v28, %v1079_v15  ;;  %v4903_v30 = vcombine.low %v1075_v28, %v1079_v15 }
  0xfb   :  { %1896 = vmatpush1.bf16.msra.mxu0 %v4865_v46  ;;  %v1142_v46 = vld [vmem:[#allocation12 + $0x2b0] sm:$0xff] }
  0xfc   :  { %1921 = vmatpush1.bf16.msra.mxu1 %v4869_v44  ;;  %1947 = vmatprep.subr.bf16.mxu0 %v4871_v49  ;;  %6929 = vst [vmem:[#allocation106_spill] sm:$0xff] %v4897_v35  ;;  %v4900_v59 = vcombine.high %v1138_v17, %v1142_v46  ;;  %v1087_v44 = vld [vmem:[#allocation12 + $0xf8] sm:$0xff]  ;;  %v1146_v49 = vld [vmem:[#allocation12 + $0x2d0] sm:$0xff]  ;;  %6931 = vst [vmem:[#allocation108_spill] sm:$0xff] %v4903_v30  ;;  %v4907_v60 = vcombine.low %v1138_v17, %v1142_v46 }
  0xfd   :  { %1922 = vmatprep.subr.bf16.mxu1 %v4874_v50  ;;  %v1083_v50 = vld [vmem:[#allocation12 + $0xd8] sm:$0xff] }
  0xfe   :  { %1898 = vmatmul.mubr.bf16.vlgmr.msra.gmra.mrb[48].mxu0 %v6894_v8  ;;  %6930 = vst [vmem:[#allocation107_spill] sm:$0xff] %v4900_v59  ;;  %6932 = vst [vmem:[#allocation109_spill] sm:$0xff] %v4907_v60  ;;  %v4909_v61 = vcombine.high %v1083_v50, %v1087_v44  ;;  %v4915_v15 = vcombine.low %v1083_v50, %v1087_v44 }
  0xff   :  { %1948 = vmatpush1.bf16.msra.mxu0 %v4877_v6  ;;  %1979 = vmatprep.mubr.bf16.mxu0 %v6894_v8  ;;  %v1150_v6 = vld [vmem:[#allocation12 + $0x2f0] sm:$0xff] }
 0x100   :  { %1923 = vmatpush1.bf16.msra.mxu1 %v4881_v0  ;;  %1949 = vmatprep.subr.bf16.mxu0 %v4883_v14  ;;  %6933 = vst [vmem:[#allocation110_spill] sm:$0xff] %v4909_v61  ;;  %v4912_v3 = vcombine.high %v1146_v49, %v1150_v6  ;;  %v1095_v0 = vld [vmem:[#allocation12 + $0x138] sm:$0xff]  ;;  %v1154_v14 = vld [vmem:[#allocation12 + $0x310] sm:$0xff]  ;;  %6935 = vst [vmem:[#allocation112_spill] sm:$0xff] %v4915_v15  ;;  %v4919_v17 = vcombine.low %v1146_v49, %v1150_v6 }
 0x101   :  { %1924 = vmatprep.subr.bf16.mxu1 %v4886_v4  ;;  %v1091_v4 = vld [vmem:[#allocation12 + $0x118] sm:$0xff]  ;;  %v4924_v46 = vcombine.high %v1154_v14, %v1158_v16  ;;  %v4931_v49 = vcombine.low %v1154_v14, %v1158_v16 }
 0x102   :  { %6934 = vst [vmem:[#allocation111_spill] sm:$0xff] %v4912_v3  ;;  %6936 = vst [vmem:[#allocation113_spill] sm:$0xff] %v4919_v17  ;;  %v4921_v28 = vcombine.high %v1091_v4, %v1095_v0  ;;  %v4927_v44 = vcombine.low %v1091_v4, %v1095_v0 }
 0x103   :  { %1950 = vmatpush1.bf16.msra.mxu0 %v4890_v34  ;;  %6938 = vst [vmem:[#allocation115_spill] sm:$0xff] %v4924_v46  ;;  %v1166_v34 = vld [vmem:[#allocation12 + $0x370] sm:$0xff]  ;;  %6939 = vst [vmem:[#allocation116_spill] sm:$0xff] %v4931_v49 }
 0x104   :  { %1925 = vmatpush1.bf16.msra.mxu1 %v4895_v31  ;;  %1951 = vmatprep.subr.bf16.mxu0 %v4897_v35  ;;  %6937 = vst [vmem:[#allocation114_spill] sm:$0xff] %v4921_v28  ;;  %v1103_v31 = vld [vmem:[#allocation12 + $0x178] sm:$0xff]  ;;  %v1162_v35 = vld [vmem:[#allocation12 + $0x350] sm:$0xff] }
 0x105   :  { %1926 = vmatprep.subr.bf16.mxu1 %v4900_v59  ;;  %v1099_v59 = vld [vmem:[#allocation12 + $0x158] sm:$0xff]  ;;  %v4936_v6 = vcombine.high %v1162_v35, %v1166_v34  ;;  %v4943_v16 = vcombine.low %v1162_v35, %v1166_v34 }
 0x106   :  { %v4933_v50 = vcombine.high %v1099_v59, %v1103_v31  ;;  %v4939_v0 = vcombine.low %v1099_v59, %v1103_v31 }
 0x107   :  { %1952 = vmatpush1.bf16.msra.mxu0 %v4903_v30  ;;  %6941 = vst [vmem:[#allocation118_spill] sm:$0xff] %v4936_v6  ;;  %v1174_v30 = vld [vmem:[#allocation12 + $0x3b0] sm:$0xff]  ;;  %6943 = vst [vmem:[#allocation120_spill] sm:$0xff] %v4943_v16 }
 0x108   :  { %1927 = vmatpush1.bf16.msra.mxu1 %v4907_v60  ;;  %1953 = vmatprep.subr.bf16.mxu0 %v4909_v61  ;;  %6940 = vst [vmem:[#allocation117_spill] sm:$0xff] %v4933_v50  ;;  %v1111_v60 = vld [vmem:[#allocation12 + $0x1b8] sm:$0xff]  ;;  %v1170_v61 = vld [vmem:[#allocation12 + $0x390] sm:$0xff]  ;;  %6942 = vst [vmem:[#allocation119_spill] sm:$0xff] %v4939_v0 }
 0x109   :  { %1928 = vmatprep.subr.bf16.mxu1 %v4912_v3  ;;  %v1107_v3 = vld [vmem:[#allocation12 + $0x198] sm:$0xff]  ;;  %v4948_v4 = vcombine.high %v1170_v61, %v1174_v30  ;;  %v4955_v34 = vcombine.low %v1170_v61, %v1174_v30 }
 0x10a   :  { %v4945_v14 = vcombine.high %v1107_v3, %v1111_v60  ;;  %v4951_v31 = vcombine.low %v1107_v3, %v1111_v60  ;;  %v1131_v61 = vld [vmem:[#allocation12 + $0x258] sm:$0xff] }
 0x10b   :  { %1954 = vmatpush1.bf16.msra.mxu0 %v4915_v15  ;;  %6945 = vst [vmem:[#allocation122_spill] sm:$0xff] %v4948_v4  ;;  %v1182_v15 = vld [vmem:[#allocation12 + $0x3f0] sm:$0xff]  ;;  %6947 = vst [vmem:[#allocation124_spill] sm:$0xff] %v4955_v34  ;;  %v1135_v3 = vld [vmem:[#allocation12 + $0x278] sm:$0xff] }
 0x10c   :  { %1929 = vmatpush1.bf16.msra.mxu1 %v4919_v17  ;;  %1955 = vmatprep.subr.bf16.mxu0 %v4921_v28  ;;  %6944 = vst [vmem:[#allocation121_spill] sm:$0xff] %v4945_v14  ;;  %v1119_v17 = vld [vmem:[#allocation12 + $0x1f8] sm:$0xff]  ;;  %v1178_v28 = vld [vmem:[#allocation12 + $0x3d0] sm:$0xff]  ;;  %6946 = vst [vmem:[#allocation123_spill] sm:$0xff] %v4951_v31 }
 0x10d   :  { %1930 = vmatprep.subr.bf16.mxu1 %v4924_v46  ;;  %v1115_v46 = vld [vmem:[#allocation12 + $0x1d8] sm:$0xff]  ;;  %v4960_v59 = vcombine.high %v1178_v28, %v1182_v15  ;;  %v4967_v60 = vcombine.low %v1178_v28, %v1182_v15  ;;  %v4982_v15 = vcombine.low %v1131_v61, %v1135_v3 }
 0x10e   :  { %v4957_v35 = vcombine.high %v1115_v46, %v1119_v17 }
 0x10f   :  { %1956 = vmatpush1.bf16.msra.mxu0 %v4927_v44  ;;  %6949 = vst [vmem:[#allocation126_spill] sm:$0xff] %v4960_v59  ;;  %6951 = vst [vmem:[#allocation128_spill] sm:$0xff] %v4967_v60 }
 0x110   :  { %1931 = vmatpush1.bf16.msra.mxu1 %v4931_v49  ;;  %1957 = vmatprep.subr.bf16.mxu0 %v4933_v50  ;;  %6948 = vst [vmem:[#allocation125_spill] sm:$0xff] %v4957_v35  ;;  %v1127_v49 = vld [vmem:[#allocation12 + $0x238] sm:$0xff]  ;;  %v4963_v50 = vcombine.low %v1115_v46, %v1119_v17  ;;  %v4977_v17 = vcombine.high %v1131_v61, %v1135_v3  ;;  %6955 = vst [vmem:[#allocation132_spill] sm:$0xff] %v4982_v15 }
 0x111   :  { %1932 = vmatprep.subr.bf16.mxu1 %v4936_v6  ;;  %v1123_v6 = vld [vmem:[#allocation12 + $0x218] sm:$0xff] }
 0x112   :  { %6950 = vst [vmem:[#allocation127_spill] sm:$0xff] %v4963_v50  ;;  %v4969_v30 = vcombine.high %v1123_v6, %v1127_v49  ;;  %6954 = vst [vmem:[#allocation131_spill] sm:$0xff] %v4977_v17  ;;  %v1139_v46 = vld [vmem:[#allocation12 + $0x298] sm:$0xff] }
 0x113   :  { %1958 = vmatpush1.bf16.msra.mxu0 %v4939_v0  ;;  %v1155_v61 = vld [vmem:[#allocation12 + $0x318] sm:$0xff] }
 0x114   :  { %1933 = vmatpush1.bf16.msra.mxu1 %v4943_v16  ;;  %1959 = vmatprep.subr.bf16.mxu0 %v4945_v14  ;;  %6952 = vst [vmem:[#allocation129_spill] sm:$0xff] %v4969_v30  ;;  %v1159_v3 = vld [vmem:[#allocation12 + $0x338] sm:$0xff] }
 0x115   :  { %1934 = vmatprep.subr.bf16.mxu1 %v4948_v4  ;;  %v4973_v4 = vcombine.low %v1123_v6, %v1127_v49  ;;  %v1147_v49 = vld [vmem:[#allocation12 + $0x2d8] sm:$0xff] }
 0x116   :  { %v1151_v6 = vld [vmem:[#allocation12 + $0x2f8] sm:$0xff] }
 0x117   :  { %1960 = vmatpush1.bf16.msra.mxu0 %v4951_v31  ;;  %6953 = vst [vmem:[#allocation130_spill] sm:$0xff] %v4973_v4 }
 0x118   :  { %1935 = vmatpush1.bf16.msra.mxu1 %v4955_v34  ;;  %1961 = vmatprep.subr.bf16.mxu0 %v4957_v35  ;;  %v1143_v34 = vld [vmem:[#allocation12 + $0x2b8] sm:$0xff] }
 0x119   :  { %1936 = vmatprep.subr.bf16.mxu1 %v4960_v59  ;;  %v4985_v28 = vcombine.high %v1139_v46, %v1143_v34 }
 0x11b   :  { %1962 = vmatpush1.bf16.msra.mxu0 %v4963_v50  ;;  %6956 = vst [vmem:[#allocation133_spill] sm:$0xff] %v4985_v28 }
 0x11c   :  { %1937 = vmatpush1.bf16.msra.mxu1 %v4967_v60  ;;  %1963 = vmatprep.subr.bf16.mxu0 %v4969_v30  ;;  %v4990_v60 = vcombine.low %v1139_v46, %v1143_v34  ;;  %v1163_v34 = vld [vmem:[#allocation12 + $0x358] sm:$0xff] }
 0x11d   :  { %2067 = vmatprep.subr.bf16.mxu1 %v4599_v13  ;;  %v4993_v13 = vcombine.high %v1147_v49, %v1151_v6  ;;  %v1167_v46 = vld [vmem:[#allocation12 + $0x378] sm:$0xff] }
 0x11e   :  { %6957 = vst [vmem:[#allocation134_spill] sm:$0xff] %v4990_v60 }
 0x11f   :  { %1939 = vmatmul.mubr.bf16.vlgmr.msra.gmra.mrb[36].mxu1 %v6894_v8  ;;  %1964 = vmatpush1.bf16.msra.mxu0 %v4973_v4  ;;  %6958 = vst [vmem:[#allocation135_spill] sm:$0xff] %v4993_v13 }
 0x120   :  { %1965 = vmatprep.subr.bf16.mxu0 %v4977_v17  ;;  %2068 = vmatpush1.bf16.msra.mxu1 %v4606_v19  ;;  %v4998_v19 = vcombine.low %v1147_v49, %v1151_v6  ;;  %v1171_v49 = vld [vmem:[#allocation12 + $0x398] sm:$0xff] }
 0x121   :  { %2069 = vmatprep.subr.bf16.mxu1 %v4609_v20  ;;  %v5001_v20 = vcombine.high %v1155_v61, %v1159_v3  ;;  %v1175_v6 = vld [vmem:[#allocation12 + $0x3b8] sm:$0xff] }
 0x122   :  { %6959 = vst [vmem:[#allocation136_spill] sm:$0xff] %v4998_v19 }
 0x123   :  { %1966 = vmatpush1.bf16.msra.mxu0 %v4982_v15  ;;  %6960 = vst [vmem:[#allocation137_spill] sm:$0xff] %v5001_v20 }
 0x124   :  { %1967 = vmatprep.subr.bf16.mxu0 %v4985_v28  ;;  %2070 = vmatpush1.bf16.msra.mxu1 %v4618_v24  ;;  %v5006_v24 = vcombine.low %v1155_v61, %v1159_v3  ;;  %v1179_v61 = vld [vmem:[#allocation12 + $0x3d8] sm:$0xff] }
 0x125   :  { %2071 = vmatprep.subr.bf16.mxu1 %v4622_v25  ;;  %v5009_v25 = vcombine.high %v1163_v34, %v1167_v46  ;;  %v1183_v3 = vld [vmem:[#allocation12 + $0x3f8] sm:$0xff] }
 0x126   :  { %6961 = vst [vmem:[#allocation138_spill] sm:$0xff] %v5006_v24 }
 0x127   :  { %1968 = vmatpush1.bf16.msra.mxu0 %v4990_v60  ;;  %6962 = vst [vmem:[#allocation139_spill] sm:$0xff] %v5009_v25 }
 0x128   :  { %1969 = vmatprep.subr.bf16.mxu0 %v4993_v13  ;;  %2072 = vmatpush1.bf16.msra.mxu1 %v4627_v7  ;;  %v5014_v7 = vcombine.low %v1163_v34, %v1167_v46  ;;  %v5030_v34 = vcombine.low %v1179_v61, %v1183_v3  ;;  %v165_v46 = vlaneseq }
 0x129   :  { %2073 = vmatprep.subr.bf16.mxu1 %v4630_v29  ;;  %v5017_v29 = vcombine.high %v1171_v49, %v1175_v6 }
 0x12a   :  { %6963 = vst [vmem:[#allocation140_spill] sm:$0xff] %v5014_v7  ;;  %6967 = vst [vmem:[#allocation144_spill] sm:$0xff] %v5030_v34 }
 0x12b   :  { %1970 = vmatpush1.bf16.msra.mxu0 %v4998_v19  ;;  %6964 = vst [vmem:[#allocation141_spill] sm:$0xff] %v5017_v29 }
 0x12c   :  { %1971 = vmatprep.subr.bf16.mxu0 %v5001_v20  ;;  %2074 = vmatpush1.bf16.msra.mxu1 %v4636_v32  ;;  %v5022_v32 = vcombine.low %v1171_v49, %v1175_v6 }
 0x12d   :  { %2075 = vmatprep.subr.bf16.mxu1 %v4640_v33  ;;  %v5025_v33 = vcombine.high %v1179_v61, %v1183_v3  ;;  %v5064_v3 = vld [vmem:[%s6566_s5] sm:$0xff]  ;;  %s4459_s5 = smov [#allocation13]  }
 0x12e   :  { %6965 = vst [vmem:[#allocation142_spill] sm:$0xff] %v5022_v32  ;;  %s3766_s21 = sshll.u32 %s4459_s5, 4  ;;  %s3767_s21 = int_to_ptr.vmem [resolvable:$true] %s3766_s21 }
 0x12f   :  { %1972 = vmatpush1.bf16.msra.mxu0 %v5006_v24  ;;  %6966 = vst [vmem:[#allocation143_spill] sm:$0xff] %v5025_v33  ;;  %s4419_s13 = scalar_lea.vmem %s3767_s21, 256  ;;  %p4424_p13 = scmp.lt.s32.totalorder %s3767_s21, %s3767_s21 }
 0x130   :  { %1973 = vmatprep.subr.bf16.mxu0 %v5009_v25  ;;  %2076 = vmatpush1.bf16.msra.mxu1 %v4643_v36  ;;  %p4420_p12 = scmp.ne.s32.totalorder %s3767_s21, %s4419_s13  ;;  %p4425_p0 = scmp.lt.s32.totalorder %s4419_s13, %s4419_s13 }
 0x131   :  { %2077 = vmatprep.subr.bf16.mxu1 %v4646_v37 }
 0x132   :  { %p4426_p1 = por %p4425_p0, %p4424_p13 }
 0x133   :  { %1974 = vmatpush1.bf16.msra.mxu0 %v5014_v7 }
 0x134   :  { %1975 = vmatprep.subr.bf16.mxu0 %v5017_v29  ;;  %2078 = vmatpush1.bf16.msra.mxu1 %v4652_v39  ;;  %v7019_v39 = vld [vmem:[#allocation92_spill] sm:$0xff]  ;;  %p4427_p2 = pnand %p4426_p1, %p4420_p12 }
 0x135   :  { %2079 = vmatprep.subr.bf16.mxu1 %v4656_v40  ;;  %v7015_v40 = vld [vmem:[#allocation90_spill] sm:$0xff] }
 0x137   :  { %1976 = vmatpush1.bf16.msra.mxu0 %v5022_v32 }
 0x138   :  { %1977 = vmatprep.subr.bf16.mxu0 %v5025_v33  ;;  %2080 = vmatpush1.bf16.msra.mxu1 %v4659_v43  ;;  %v6982_v43 = vld [vmem:[#allocation65_spill] sm:$0xff] }
 0x139   :  { %2081 = vmatprep.subr.bf16.mxu1 %v4662_v45 }
 0x13b   :  { %1978 = vmatpush1.bf16.msra.mxu0 %v5030_v34 }
 0x13c   :  { %2108 = vmatprep.subr.bf16.mxu0 %v4613_v21  ;;  %2082 = vmatpush1.bf16.msra.mxu1 %v4668_v47 }
 0x13d   :  { %2083 = vmatprep.subr.bf16.mxu1 %v4672_v48 }
 0x13e   :  { %1980 = vmatmul.mubr.bf16.vlgmr.msra.gmra.mrb[52].mxu0 %v6894_v8  ;;  %v5052_v8 = vshrl.u32 %v165_v46, 7 }
 0x13f   :  { %2109 = vmatpush1.bf16.msra.mxu0 %v4676_v54 }
 0x140   :  { %2110 = vmatprep.subr.bf16.mxu0 %v4681_v56  ;;  %2084 = vmatpush1.bf16.msra.mxu1 %v4679_v55  ;;  %v175_v49 = vsub.s32 2, %v5052_v8  ;;  %v167_v6 = vsub.s32 0, %v5052_v8  ;;  %v179_v61 = vsub.s32 3, %v5052_v8  ;;  %v171_v46 = vsub.s32 1, %v5052_v8 }
 0x141   :  { %2085 = vmatprep.subr.bf16.mxu1 %v4684_v57 }
 0x142   :  { %v5087_v57 = vrot.slane %v5064_v3, %v171_v46 }
 0x143   :  { %2111 = vmatpush1.bf16.msra.mxu0 %v4688_v62 }
 0x144   :  { %2112 = vmatprep.subr.bf16.mxu0 %v4695_v1  ;;  %2086 = vmatpush1.bf16.msra.mxu1 %v4693_v63  ;;  %v5084_v63 = vrot.slane %v5064_v3, %v179_v61 }
 0x145   :  { %2087 = vmatprep.subr.bf16.mxu1 %v4698_v2 }
 0x147   :  { %2113 = vmatpush1.bf16.msra.mxu0 %v4701_v9 }
 0x148   :  { %2114 = vmatprep.subr.bf16.mxu0 %v4707_v11  ;;  %2088 = vmatpush1.bf16.msra.mxu1 %v4705_v10 }
 0x149   :  { %2089 = vmatprep.subr.bf16.mxu1 %v4710_v12  ;;  %v5077_v12 = vrot.slane %v5064_v3, %v167_v6 }
 0x14b   :  { %2115 = vmatpush1.bf16.msra.mxu0 %v4714_v18 }
 0x14c   :  { %2116 = vmatprep.subr.bf16.mxu0 %v4721_v23  ;;  %2090 = vmatpush1.bf16.msra.mxu1 %v4719_v22 }
 0x14d   :  { %2091 = vmatprep.subr.bf16.mxu1 %v4724_v26  ;;  %v5073_v26 = vrot.slane %v5064_v3, %v175_v49 }
 0x14f   :  { %2117 = vmatpush1.bf16.msra.mxu0 %v4727_v27 }
 0x150   :  { %2118 = vmatprep.subr.bf16.mxu0 %v4733_v41  ;;  %2092 = vmatpush1.bf16.msra.mxu1 %v4731_v38 }
 0x151   :  { %v5070_v22 = vpop.f32.mrb[0].mxu0  ;;  %2093 = vmatprep.subr.bf16.mxu1 %v4736_v42  ;;  %v5081_v2 = vpop.f32.mrb[0].mxu1 }
 0x152   :  { %v5079_v10 = vpop.f32.mrb[1].mxu0  ;;  %v5089_v55 = vpop.f32.mrb[1].mxu1 }
 0x153   :  { %v587_v38 = vpop.f32.mrb[2].mxu0  ;;  %2119 = vmatpush1.bf16.msra.mxu0 %v4740_v51  ;;  %v660_v42 = vpop.f32.mrb[2].mxu1 }
 0x154   :  { %v5093_v49 = vadd.f32 %v587_v38, %v5077_v12  ;;  %v589_v6 = vpop.f32.mrb[3].mxu0  ;;  %2120 = vmatprep.subr.bf16.mxu0 %v4747_v53  ;;  %2094 = vmatpush1.bf16.msra.mxu1 %v4745_v52  ;;  %v5101_v46 = vadd.f32 %v660_v42, %v5073_v26  ;;  %v662_v48 = vpop.f32.mrb[3].mxu1  ;;  %v6972_v38 = vld [vmem:[#allocation62_spill] sm:$0xff]  ;;  %v6974_v52 = vld [vmem:[#allocation63_spill] sm:$0xff] }
 0x155   :  { %v5098_v61 = vadd.f32 %v589_v6, %v5087_v57  ;;  %2095 = vmatprep.subr.bf16.mxu1 %v4750_v58  ;;  %v5105_v47 = vadd.f32 %v662_v48, %v5084_v63 }
 0x156   :  { %6968 = vst [vmem:[#allocation145_spill] sm:$0xff] %v5093_v49  ;;  %6970 = vst [vmem:[#allocation147_spill] sm:$0xff] %v5101_v46  ;;  %v6973_v49 = vld [vmem:[#allocation61_spill] sm:$0xff] }
 0x157   :  { %6969 = vst [vmem:[#allocation146_spill] sm:$0xff] %v5098_v61  ;;  %6971 = vst [vmem:[#allocation148_spill] sm:$0xff] %v5105_v47  ;;  %2121 = vmatpush1.bf16.msra.mxu0 %v4753_v5  ;;  %v6978_v5 = vld [vmem:[#allocation64_spill] sm:$0xff] }
 0x158   :  { %2122 = vmatprep.subr.bf16.mxu0 %v6972_v38  ;;  %2096 = vmatpush1.bf16.msra.mxu1 %v6973_v49 }
 0x159   :  { %v593_v45 = vpop.f32.mrb[4].mxu0  ;;  %2097 = vmatprep.subr.bf16.mxu1 %v6974_v52  ;;  %v666_v61 = vpop.f32.mrb[4].mxu1 }
 0x15a   :  { %v5112_v6 = vadd.f32 %v593_v45, %v5077_v12  ;;  %v595_v42 = vpop.f32.mrb[5].mxu0  ;;  %v5118_v48 = vadd.f32 %v666_v61, %v5073_v26  ;;  %v668_v47 = vpop.f32.mrb[5].mxu1 }
 0x15b   :  { %v5115_v46 = vadd.f32 %v595_v42, %v5087_v57  ;;  %v597_v58 = vpop.f32.mrb[6].mxu0  ;;  %2123 = vmatpush1.bf16.msra.mxu0 %v6978_v5  ;;  %v5125_v52 = vadd.f32 %v668_v47, %v5084_v63  ;;  %v670_v45 = vpop.f32.mrb[6].mxu1  ;;  %v6988_v47 = vld [vmem:[#allocation70_spill] sm:$0xff]  ;;  %v7013_v5 = vld [vmem:[#allocation88_spill] sm:$0xff] }
 0x15c   :  { %6975 = vst [vmem:[#allocation149_spill] sm:$0xff] %v5112_v6  ;;  %6977 = vst [vmem:[#allocation151_spill] sm:$0xff] %v5118_v48  ;;  %v5122_v49 = vadd.f32 %v597_v58, %v5077_v12  ;;  %v599_v38 = vpop.f32.mrb[7].mxu0  ;;  %v6981_v6 = vld [vmem:[#allocation66_spill] sm:$0xff]  ;;  %2098 = vmatpush1.bf16.msra.mxu1 %v6982_v43  ;;  %v5133_v61 = vadd.f32 %v670_v45, %v5073_v26  ;;  %v6985_v48 = vld [vmem:[#allocation67_spill] sm:$0xff] }
 0x15d   :  { %6976 = vst [vmem:[#allocation150_spill] sm:$0xff] %v5115_v46  ;;  %6980 = vst [vmem:[#allocation153_spill] sm:$0xff] %v5125_v52  ;;  %2124 = vmatprep.subr.bf16.mxu0 %v6981_v6  ;;  %v5130_v42 = vadd.f32 %v599_v38, %v5087_v57  ;;  %v672_v46 = vpop.f32.mrb[7].mxu1  ;;  %2149 = vmatprep.subr.bf16.mxu1 %v6985_v48 }
 0x15e   :  { %6979 = vst [vmem:[#allocation152_spill] sm:$0xff] %v5122_v49  ;;  %6984 = vst [vmem:[#allocation155_spill] sm:$0xff] %v5133_v61  ;;  %v5137_v58 = vadd.f32 %v672_v46, %v5084_v63  ;;  %v6987_v49 = vld [vmem:[#allocation68_spill] sm:$0xff] }
 0x15f   :  { %6983 = vst [vmem:[#allocation154_spill] sm:$0xff] %v5130_v42  ;;  %2125 = vmatpush1.bf16.msra.mxu0 %v6987_v49  ;;  %v6992_v46 = vld [vmem:[#allocation72_spill] sm:$0xff] }
 0x160   :  { %6986 = vst [vmem:[#allocation156_spill] sm:$0xff] %v5137_v58  ;;  %2126 = vmatprep.subr.bf16.mxu0 %v6988_v47 }
 0x161   :  { %v603_v52 = vpop.f32.mrb[8].mxu0  ;;  %v676_v38 = vpop.f32.mrb[8].mxu1 }
 0x162   :  { %v5142_v6 = vadd.f32 %v603_v52, %v5077_v12  ;;  %v605_v43 = vpop.f32.mrb[9].mxu0  ;;  %v5148_v61 = vadd.f32 %v676_v38, %v5073_v26  ;;  %v678_v48 = vpop.f32.mrb[9].mxu1 }
 0x163   :  { %v5145_v42 = vadd.f32 %v605_v43, %v5087_v57  ;;  %v607_v45 = vpop.f32.mrb[10].mxu0  ;;  %2127 = vmatpush1.bf16.msra.mxu0 %v6992_v46  ;;  %v5155_v49 = vadd.f32 %v678_v48, %v5084_v63  ;;  %v680_v52 = vpop.f32.mrb[10].mxu1  ;;  %v6999_v46 = vld [vmem:[#allocation76_spill] sm:$0xff] }
 0x164   :  { %6989 = vst [vmem:[#allocation157_spill] sm:$0xff] %v5142_v6  ;;  %6991 = vst [vmem:[#allocation159_spill] sm:$0xff] %v5148_v61  ;;  %v5152_v58 = vadd.f32 %v607_v45, %v5077_v12  ;;  %v609_v47 = vpop.f32.mrb[11].mxu0  ;;  %v6995_v6 = vld [vmem:[#allocation74_spill] sm:$0xff]  ;;  %v682_v38 = vpop.f32.mrb[11].mxu1 }
 0x165   :  { %6990 = vst [vmem:[#allocation158_spill] sm:$0xff] %v5145_v42  ;;  %6994 = vst [vmem:[#allocation161_spill] sm:$0xff] %v5155_v49  ;;  %2128 = vmatprep.subr.bf16.mxu0 %v6995_v6  ;;  %v5159_v43 = vadd.f32 %v609_v47, %v5087_v57  ;;  %v5162_v42 = vadd.f32 %v680_v52, %v5073_v26  ;;  %v5165_v61 = vadd.f32 %v682_v38, %v5084_v63  ;;  %v7000_v45 = vld [vmem:[#allocation78_spill] sm:$0xff]  ;;  %v7004_v38 = vld [vmem:[#allocation80_spill] sm:$0xff] }
 0x166   :  { %6993 = vst [vmem:[#allocation160_spill] sm:$0xff] %v5152_v58 }
 0x167   :  { %6996 = vst [vmem:[#allocation162_spill] sm:$0xff] %v5159_v43  ;;  %6997 = vst [vmem:[#allocation163_spill] sm:$0xff] %v5162_v42  ;;  %2129 = vmatpush1.bf16.msra.mxu0 %v6999_v46 }
 0x168   :  { %6998 = vst [vmem:[#allocation164_spill] sm:$0xff] %v5165_v61  ;;  %2130 = vmatprep.subr.bf16.mxu0 %v7000_v45 }
 0x169   :  { %v613_v58 = vpop.f32.mrb[12].mxu0  ;;  %v686_v6 = vpop.f32.mrb[12].mxu1 }
 0x16a   :  { %v5170_v48 = vadd.f32 %v613_v58, %v5077_v12  ;;  %v615_v49 = vpop.f32.mrb[13].mxu0  ;;  %v5176_v52 = vadd.f32 %v686_v6, %v5073_v26  ;;  %v688_v42 = vpop.f32.mrb[13].mxu1 }
 0x16b   :  { %v5173_v47 = vadd.f32 %v615_v49, %v5087_v57  ;;  %v617_v43 = vpop.f32.mrb[14].mxu0  ;;  %2131 = vmatpush1.bf16.msra.mxu0 %v7004_v38  ;;  %v5183_v46 = vadd.f32 %v688_v42, %v5084_v63  ;;  %v690_v58 = vpop.f32.mrb[14].mxu1  ;;  %v183_v38 = vsub.s32 4, %v5052_v8  ;;  %v195_v42 = vsub.s32 7, %v5052_v8 }
 0x16c   :  { %7001 = vst [vmem:[#allocation165_spill] sm:$0xff] %v5170_v48  ;;  %7003 = vst [vmem:[#allocation167_spill] sm:$0xff] %v5176_v52  ;;  %v5180_v61 = vadd.f32 %v617_v43, %v5077_v12  ;;  %v619_v45 = vpop.f32.mrb[15].mxu0  ;;  %v7007_v48 = vld [vmem:[#allocation82_spill] sm:$0xff]  ;;  %v692_v6 = vpop.f32.mrb[15].mxu1  ;;  %v191_v52 = vsub.s32 6, %v5052_v8 }
 0x16d   :  { %7002 = vst [vmem:[#allocation166_spill] sm:$0xff] %v5173_v47  ;;  %7006 = vst [vmem:[#allocation169_spill] sm:$0xff] %v5183_v46  ;;  %2132 = vmatprep.subr.bf16.mxu0 %v7007_v48  ;;  %v5187_v49 = vadd.f32 %v619_v45, %v5087_v57  ;;  %v5190_v47 = vadd.f32 %v690_v58, %v5073_v26  ;;  %v5195_v43 = vadd.f32 %v692_v6, %v5084_v63  ;;  %v7011_v46 = vld [vmem:[#allocation84_spill] sm:$0xff]  ;;  %v7012_v48 = vld [vmem:[#allocation86_spill] sm:$0xff] }
 0x16e   :  { %7005 = vst [vmem:[#allocation168_spill] sm:$0xff] %v5180_v61  ;;  %v187_v61 = vsub.s32 5, %v5052_v8  ;;  %v5204_v58 = vrot.slane %v5064_v3, %v191_v52 }
 0x16f   :  { %7008 = vst [vmem:[#allocation170_spill] sm:$0xff] %v5187_v49  ;;  %7009 = vst [vmem:[#allocation171_spill] sm:$0xff] %v5190_v47  ;;  %2133 = vmatpush1.bf16.msra.mxu0 %v7011_v46  ;;  %v5207_v49 = vrot.slane %v5064_v3, %v183_v38 }
 0x170   :  { %7010 = vst [vmem:[#allocation172_spill] sm:$0xff] %v5195_v43  ;;  %2134 = vmatprep.subr.bf16.mxu0 %v7012_v48  ;;  %v5214_v43 = vrot.slane %v5064_v3, %v195_v42  ;;  %v5217_v8 = vrot.slane %v5064_v3, %v187_v61 }
 0x171   :  { %v5201_v45 = vpop.f32.mrb[16].mxu0  ;;  %v5211_v6 = vpop.f32.mrb[16].mxu1 }
 0x172   :  { %v5209_v47 = vpop.f32.mrb[17].mxu0  ;;  %v5219_v48 = vpop.f32.mrb[17].mxu1 }
 0x173   :  { %v733_v46 = vpop.f32.mrb[18].mxu0  ;;  %2135 = vmatpush1.bf16.msra.mxu0 %v7013_v5  ;;  %v806_v53 = vpop.f32.mrb[18].mxu1  ;;  %v7020_v5 = vld [vmem:[#allocation94_spill] sm:$0xff] }
 0x174   :  { %v5223_v52 = vadd.f32 %v733_v46, %v5207_v49  ;;  %v735_v38 = vpop.f32.mrb[19].mxu0  ;;  %2136 = vmatprep.subr.bf16.mxu0 %v7015_v40  ;;  %v5230_v42 = vadd.f32 %v806_v53, %v5204_v58  ;;  %v808_v3 = vpop.f32.mrb[19].mxu1 }
 0x175   :  { %v5227_v51 = vadd.f32 %v735_v38, %v5217_v8  ;;  %v5233_v61 = vadd.f32 %v808_v3, %v5214_v43  ;;  %v7024_v3 = vld [vmem:[#allocation96_spill] sm:$0xff] }
 0x176   :  { %7014 = vst [vmem:[#allocation173_spill] sm:$0xff] %v5223_v52  ;;  %7017 = vst [vmem:[#allocation175_spill] sm:$0xff] %v5230_v42 }
 0x177   :  { %7016 = vst [vmem:[#allocation174_spill] sm:$0xff] %v5227_v51  ;;  %7018 = vst [vmem:[#allocation176_spill] sm:$0xff] %v5233_v61  ;;  %2137 = vmatpush1.bf16.msra.mxu0 %v7019_v39 }
 0x178   :  { %2138 = vmatprep.subr.bf16.mxu0 %v7020_v5 }
 0x179   :  { %v739_v46 = vpop.f32.mrb[20].mxu0  ;;  %v812_v40 = vpop.f32.mrb[20].mxu1 }
 0x17a   :  { %v5238_v52 = vadd.f32 %v739_v46, %v5207_v49  ;;  %v741_v41 = vpop.f32.mrb[21].mxu0  ;;  %v5244_v53 = vadd.f32 %v812_v40, %v5204_v58  ;;  %v814_v42 = vpop.f32.mrb[21].mxu1 }
 0x17b   :  { %v5241_v38 = vadd.f32 %v741_v41, %v5217_v8  ;;  %v743_v51 = vpop.f32.mrb[22].mxu0  ;;  %2139 = vmatpush1.bf16.msra.mxu0 %v7024_v3  ;;  %v5251_v39 = vadd.f32 %v814_v42, %v5214_v43  ;;  %v816_v46 = vpop.f32.mrb[22].mxu1 }
 0x17c   :  { %7021 = vst [vmem:[#allocation177_spill] sm:$0xff] %v5238_v52  ;;  %7023 = vst [vmem:[#allocation179_spill] sm:$0xff] %v5244_v53  ;;  %v5248_v61 = vadd.f32 %v743_v51, %v5207_v49  ;;  %v745_v5 = vpop.f32.mrb[23].mxu0  ;;  %v7027_v52 = vld [vmem:[#allocation98_spill] sm:$0xff]  ;;  %v818_v40 = vpop.f32.mrb[23].mxu1 }
 0x17d   :  { %7022 = vst [vmem:[#allocation178_spill] sm:$0xff] %v5241_v38  ;;  %7026 = vst [vmem:[#allocation181_spill] sm:$0xff] %v5251_v39  ;;  %2190 = vmatprep.subr.bf16.mxu0 %v7027_v52  ;;  %v5255_v41 = vadd.f32 %v745_v5, %v5217_v8  ;;  %v5258_v38 = vadd.f32 %v816_v46, %v5204_v58  ;;  %v5261_v53 = vadd.f32 %v818_v40, %v5214_v43 }
 0x17e   :  { %7025 = vst [vmem:[#allocation180_spill] sm:$0xff] %v5248_v61 }
 0x17f   :  { %7028 = vst [vmem:[#allocation182_spill] sm:$0xff] %v5255_v41  ;;  %7029 = vst [vmem:[#allocation183_spill] sm:$0xff] %v5258_v38 }
 0x180   :  { %7030 = vst [vmem:[#allocation184_spill] sm:$0xff] %v5261_v53 }
 0x181   :  { %v749_v3 = vpop.f32.mrb[24].mxu0  ;;  %v822_v42 = vpop.f32.mrb[24].mxu1 }
 0x182   :  { %v5264_v51 = vadd.f32 %v749_v3, %v5207_v49  ;;  %v751_v61 = vpop.f32.mrb[25].mxu0  ;;  %v5270_v5 = vadd.f32 %v822_v42, %v5204_v58  ;;  %v824_v41 = vpop.f32.mrb[25].mxu1 }
 0x183   :  { %v5267_v39 = vadd.f32 %v751_v61, %v5217_v8  ;;  %v753_v52 = vpop.f32.mrb[26].mxu0  ;;  %v5276_v40 = vadd.f32 %v824_v41, %v5214_v43  ;;  %v826_v53 = vpop.f32.mrb[26].mxu1 }
 0x184   :  { %7031 = vst [vmem:[#allocation185_spill] sm:$0xff] %v5264_v51  ;;  %7033 = vst [vmem:[#allocation187_spill] sm:$0xff] %v5270_v5  ;;  %v5273_v46 = vadd.f32 %v753_v52, %v5207_v49  ;;  %v755_v38 = vpop.f32.mrb[27].mxu0  ;;  %v5282_v51 = vadd.f32 %v826_v53, %v5204_v58  ;;  %v828_v61 = vpop.f32.mrb[27].mxu1 }
 0x185   :  { %7032 = vst [vmem:[#allocation186_spill] sm:$0xff] %v5267_v39  ;;  %7035 = vst [vmem:[#allocation189_spill] sm:$0xff] %v5276_v40  ;;  %v5279_v3 = vadd.f32 %v755_v38, %v5217_v8  ;;  %v5285_v39 = vadd.f32 %v828_v61, %v5214_v43 }
 0x186   :  { %7034 = vst [vmem:[#allocation188_spill] sm:$0xff] %v5273_v46  ;;  %7037 = vst [vmem:[#allocation191_spill] sm:$0xff] %v5282_v51 }
 0x187   :  { %7036 = vst [vmem:[#allocation190_spill] sm:$0xff] %v5279_v3  ;;  %7038 = vst [vmem:[#allocation192_spill] sm:$0xff] %v5285_v39 }
 0x189   :  { %v759_v42 = vpop.f32.mrb[28].mxu0  ;;  %v832_v46 = vpop.f32.mrb[28].mxu1 }
 0x18a   :  { %v5288_v5 = vadd.f32 %v759_v42, %v5207_v49  ;;  %v761_v52 = vpop.f32.mrb[29].mxu0  ;;  %v5294_v38 = vadd.f32 %v832_v46, %v5204_v58  ;;  %v834_v3 = vpop.f32.mrb[29].mxu1 }
 0x18b   :  { %v5291_v41 = vadd.f32 %v761_v52, %v5217_v8  ;;  %v763_v40 = vpop.f32.mrb[30].mxu0  ;;  %v5300_v61 = vadd.f32 %v834_v3, %v5214_v43  ;;  %v836_v39 = vpop.f32.mrb[30].mxu1 }
 0x18c   :  { %7039 = vst [vmem:[#allocation193_spill] sm:$0xff] %v5288_v5  ;;  %7041 = vst [vmem:[#allocation195_spill] sm:$0xff] %v5294_v38  ;;  %v5297_v53 = vadd.f32 %v763_v40, %v5207_v49  ;;  %v765_v51 = vpop.f32.mrb[31].mxu0  ;;  %v5306_v5 = vadd.f32 %v836_v39, %v5204_v58  ;;  %v838_v52 = vpop.f32.mrb[31].mxu1 }
 0x18d   :  { %7040 = vst [vmem:[#allocation194_spill] sm:$0xff] %v5291_v41  ;;  %7043 = vst [vmem:[#allocation197_spill] sm:$0xff] %v5300_v61  ;;  %v5303_v42 = vadd.f32 %v765_v51, %v5217_v8  ;;  %v5309_v41 = vadd.f32 %v838_v52, %v5214_v43 }
 0x18e   :  { %7042 = vst [vmem:[#allocation196_spill] sm:$0xff] %v5297_v53  ;;  %7045 = vst [vmem:[#allocation199_spill] sm:$0xff] %v5306_v5 }
 0x18f   :  { %7044 = vst [vmem:[#allocation198_spill] sm:$0xff] %v5303_v42  ;;  %7046 = vst [vmem:[#allocation200_spill] sm:$0xff] %v5309_v41 }
 0x191   :  { %v5311_v46 = vpop.f32.mrb[32].mxu0 }
 0x192   :  { %v5313_v38 = vpop.f32.mrb[33].mxu0  ;;  %vm2046_vm3 = vcmp.gt.f32.partialorder %v5311_v46, 0.0 }
 0x193   :  { %v5315_v40 = vpop.f32.mrb[34].mxu0  ;;  %vm2047_vm2 = vcmp.gt.f32.partialorder %v5313_v38, 0.0  ;;  %vm2054_vm5 = vmpackc.low %vm2046_vm3, %vm2046_vm3 }
 0x194   :  { %7047 = vst [vmem:[#allocation201_spill] sm:$0xff] %v5315_v40  ;;  %v5317_v53 = vpop.f32.mrb[35].mxu0  ;;  %vm2055_vm4 = vmpackc.low %vm2047_vm2, %vm2047_vm2 }
 0x195   :  { %7048 = vst [vmem:[#allocation202_spill] sm:$0xff] %v5317_v53 }
 0x199   :  { %v5319_v3 = vpop.f32.mrb[36].mxu0 }
 0x19a   :  { %7049 = vst [vmem:[#allocation203_spill] sm:$0xff] %v5319_v3  ;;  %v5321_v61 = vpop.f32.mrb[37].mxu0 }
 0x19b   :  { %7050 = vst [vmem:[#allocation204_spill] sm:$0xff] %v5321_v61  ;;  %v5323_v51 = vpop.f32.mrb[38].mxu0 }
 0x19c   :  { %7051 = vst [vmem:[#allocation205_spill] sm:$0xff] %v5323_v51  ;;  %v5325_v39 = vpop.f32.mrb[39].mxu0  ;;  %v584_v51 = vadd.f32 %v5070_v22, %v5077_v12 }
 0x19d   :  { %7052 = vst [vmem:[#allocation206_spill] sm:$0xff] %v5325_v39 }
 0x1a1   :  { %v5327_v42 = vpop.f32.mrb[40].mxu0 }
 0x1a2   :  { %7053 = vst [vmem:[#allocation207_spill] sm:$0xff] %v5327_v42  ;;  %v5329_v52 = vpop.f32.mrb[41].mxu0  ;;  %v586_v42 = vadd.f32 %v5079_v10, %v5087_v57 }
 0x1a3   :  { %7054 = vst [vmem:[#allocation208_spill] sm:$0xff] %v5329_v52  ;;  %v5331_v41 = vpop.f32.mrb[42].mxu0 }
 0x1a4   :  { %7055 = vst [vmem:[#allocation209_spill] sm:$0xff] %v5331_v41  ;;  %v5333_v5 = vpop.f32.mrb[43].mxu0 }
 0x1a5   :  { %7056 = vst [vmem:[#allocation210_spill] sm:$0xff] %v5333_v5 }
 0x1a9   :  { %v5335_v37 = vpop.f32.mrb[44].mxu0 }
 0x1aa   :  { %7057 = vst [vmem:[#allocation211_spill] sm:$0xff] %v5335_v37  ;;  %v5337_v40 = vpop.f32.mrb[45].mxu0  ;;  %v657_v37 = vadd.f32 %v5081_v2, %v5073_v26 }
 0x1ab   :  { %7058 = vst [vmem:[#allocation212_spill] sm:$0xff] %v5337_v40  ;;  %v5339_v53 = vpop.f32.mrb[46].mxu0 }
 0x1ac   :  { %7059 = vst [vmem:[#allocation213_spill] sm:$0xff] %v5339_v53  ;;  %v5341_v3 = vpop.f32.mrb[47].mxu0  ;;  %v659_v53 = vadd.f32 %v5089_v55, %v5084_v63 }
 0x1ad   :  { %7060 = vst [vmem:[#allocation214_spill] sm:$0xff] %v5341_v3 }
 0x1b2   :  { %v1858_v39 = vpop.f32.mrb[32].mxu1 }
 0x1b3   :  { %v1988_v52 = vadd.f32 %v1858_v39, %v584_v51  ;;  %v1860_v61 = vpop.f32.mrb[33].mxu1 }
 0x1b4   :  { %v1989_v41 = vadd.f32 %v1860_v61, %v586_v42  ;;  %v1862_v27 = vpop.f32.mrb[34].mxu1 }
 0x1b5   :  { %v1863_v5 = vpop.f32.mrb[35].mxu1  ;;  %v3984_v18 = vmul.f32 -1.442695, %v1988_v52 }
 0x1b6   :  { %v3985_v57 = vmul.f32 -1.442695, %v1989_v41  ;;  %v732_v41 = vadd.f32 %v5209_v47, %v5217_v8 }
 0x1b7   :  { %4053 = vpow2.f32 %v3984_v18 }
 0x1b8   :  { %4055 = vpow2.f32 %v3985_v57 }
 0x1c1   :  { %v4054_v27 = vpop.eup %4053 }
 0x1c2   :  { %v4056_v5 = vpop.eup %4055  ;;  %v2002_v61 = vadd.f32 1.0, %v4054_v27 }
 0x1c3   :  { %v2003_v55 = vadd.f32 1.0, %v4056_v5  ;;  %v803_v5 = vadd.f32 %v5211_v6, %v5204_v58 }
 0x1d1   :  { %v1899_v40 = vpop.f32.mrb[48].mxu0 }
 0x1d2   :  { %v1990_v3 = vadd.f32 %v1899_v40, %v657_v37  ;;  %v1901_v36 = vpop.f32.mrb[49].mxu0 }
 0x1d3   :  { %v1991_v23 = vadd.f32 %v1901_v36, %v659_v53  ;;  %v1903_v12 = vpop.f32.mrb[50].mxu0  ;;  %v730_v36 = vadd.f32 %v5201_v45, %v5207_v49 }
 0x1d4   :  { %v1904_v22 = vpop.f32.mrb[51].mxu0  ;;  %v3986_v10 = vmul.f32 -1.442695, %v1990_v3 }
 0x1d5   :  { %v3987_v51 = vmul.f32 -1.442695, %v1991_v23 }
 0x1d6   :  { %4057 = vpow2.f32 %v3986_v10 }
 0x1d7   :  { %4059 = vpow2.f32 %v3987_v51 }
 0x1d8   :  { %4061 = vrcp.f32 %v2002_v61 }
 0x1d9   :  { %4063 = vrcp.f32 %v2003_v55 }
 0x1e0   :  { %v4058_v2 = vpop.eup %4057 }
 0x1e1   :  { %v4060_v26 = vpop.eup %4059  ;;  %v2014_v63 = vadd.f32 1.0, %v4058_v2  ;;  %v805_v2 = vadd.f32 %v5219_v48, %v5214_v43 }
 0x1e2   :  { %v2015_v37 = vadd.f32 1.0, %v4060_v26  ;;  %v4062_v39 = vpop.eup %4061 }
 0x1e3   :  { %4065 = vrcp.f32 %v2014_v63  ;;  %v4064_v52 = vpop.eup %4063 }
 0x1e4   :  { %4067 = vrcp.f32 %v2015_v37 }
 0x1ed   :  { %v4066_v12 = vpop.eup %4065 }
 0x1ee   :  { %v4068_v22 = vpop.eup %4067  ;;  %v2034_v57 = vmul.f32 0.0, %v4066_v12 }
 0x1ef   :  { %v2035_v47 = vmul.f32 0.0, %v4068_v22 }
 0x1f2   :  { %v1940_v18 = vpop.f32.mrb[36].mxu1 }
 0x1f3   :  { %v1992_v23 = vadd.f32 %v1940_v18, %v730_v36  ;;  %v1942_v53 = vpop.f32.mrb[37].mxu1 }
 0x1f4   :  { %v1993_v42 = vadd.f32 %v1942_v53, %v732_v41  ;;  %v1944_v40 = vpop.f32.mrb[38].mxu1 }
 0x1f5   :  { %4069 = vtanh.f32 %v1992_v23  ;;  %v1945_v3 = vpop.f32.mrb[39].mxu1 }
 0x1f6   :  { %4071 = vtanh.f32 %v1993_v42 }
 0x1ff   :  { %v4070_v49 = vpop.eup %4069 }
 0x200   :  { %v4072_v45 = vpop.eup %4071  ;;  %v2036_v10 = vmul.f32 %v4070_v49, %v4062_v39 }
 0x201   :  { %v2037_v8 = vmul.f32 %v4072_v45, %v4064_v52  ;;  %v7061_v45 = vld [vmem:[#allocation69_spill] sm:$0xff] }
 0x202   :  { %v5355_v51 = vadd.f32 %v2036_v10, %v2034_v57  ;;  %v7062_v57 = vld [vmem:[#allocation100_spill] sm:$0xff]  ;;  %v7063_v10 = vld [vmem:[#allocation71_spill] sm:$0xff] }
 0x203   :  { %v5357_v27 = vadd.f32 %v2037_v8, %v2035_v47  ;;  %v7064_v47 = vld [vmem:[#allocation102_spill] sm:$0xff]  ;;  %v7065_v8 = vld [vmem:[#allocation73_spill] sm:$0xff] }
 0x211   :  { %v1981_v26 = vpop.f32.mrb[52].mxu0 }
 0x212   :  { %v1994_v61 = vadd.f32 %v1981_v26, %v803_v5  ;;  %v1983_v55 = vpop.f32.mrb[53].mxu0  ;;  %v7066_v5 = vld [vmem:[#allocation104_spill] sm:$0xff]  ;;  %v7068_v26 = vld [vmem:[#allocation106_spill] sm:$0xff] }
 0x213   :  { %v1995_v63 = vadd.f32 %v1983_v55, %v805_v2  ;;  %v1985_v37 = vpop.f32.mrb[54].mxu0  ;;  %v7067_v2 = vld [vmem:[#allocation75_spill] sm:$0xff]  ;;  %v7070_v55 = vld [vmem:[#allocation108_spill] sm:$0xff] }
 0x214   :  { %v3988_v36 = vmul.f32 -1.442695, %v1994_v61  ;;  %v1986_v41 = vpop.f32.mrb[55].mxu0  ;;  %v7069_v61 = vld [vmem:[#allocation77_spill] sm:$0xff]  ;;  %v7072_v37 = vld [vmem:[#allocation110_spill] sm:$0xff] }
 0x215   :  { %v3989_v18 = vmul.f32 -1.442695, %v1995_v63  ;;  %v7071_v63 = vld [vmem:[#allocation79_spill] sm:$0xff]  ;;  %v7074_v41 = vld [vmem:[#allocation112_spill] sm:$0xff] }
 0x216   :  { %4073 = vpow2.f32 %v3988_v36  ;;  %v7073_v36 = vld [vmem:[#allocation81_spill] sm:$0xff] }
 0x217   :  { %4075 = vpow2.f32 %v3989_v18  ;;  %v7075_v18 = vld [vmem:[#allocation83_spill] sm:$0xff] }
 0x218   :  { %4077 = vtanh.f32 %v5355_v51 }
 0x219   :  { %4079 = vtanh.f32 %v5357_v27 }
 0x220   :  { %v4074_v23 = vpop.eup %4073 }
 0x221   :  { %v4076_v53 = vpop.eup %4075  ;;  %v2028_v42 = vadd.f32 1.0, %v4074_v23  ;;  %v7076_v23 = vld [vmem:[#allocation114_spill] sm:$0xff] }
 0x222   :  { %v2029_v58 = vadd.f32 1.0, %v4076_v53  ;;  %v4078_v48 = vpop.eup %4077  ;;  %v7077_v53 = vld [vmem:[#allocation85_spill] sm:$0xff] }
 0x223   :  { %4081 = vrcp.f32 %v2028_v42  ;;  %v4080_v43 = vpop.eup %4079  ;;  %v7078_v42 = vld [vmem:[#allocation87_spill] sm:$0xff] }
 0x224   :  { %4083 = vrcp.f32 %v2029_v58  ;;  %v7079_v58 = vld [vmem:[#allocation117_spill] sm:$0xff] }
 0x22d   :  { %v4082_v6 = vpop.eup %4081 }
 0x22e   :  { %v4084_v40 = vpop.eup %4083  ;;  %v5365_v3 = vmul.f32 %v4082_v6, %v4078_v48  ;;  %v7080_v48 = vld [vmem:[#allocation89_spill] sm:$0xff] }
 0x22f   :  { %v5368_v39 = vmul.f32 %v4084_v40, %v4080_v43  ;;  %v7081_v43 = vld [vmem:[#allocation91_spill] sm:$0xff]  ;;  %v7082_v6 = vld [vmem:[#allocation93_spill] sm:$0xff] }
 0x230   :  { %v2052_v52 = vpack.c.bf16 %v5365_v3, %v5365_v3  ;;  %v7083_v40 = vld [vmem:[#allocation95_spill] sm:$0xff] }
 0x231   :  { %v2053_v12 = vpack.c.bf16 %v5368_v39, %v5368_v39 }
 0x232   :  { %v5385_v49 = vsel %vm2054_vm5, %v2052_v52, 0  ;;  %v7084_v52 = vld [vmem:[#allocation97_spill] sm:$0xff] }
 0x233   :  { %v5381_v22 = vsel %vm2055_vm4, %v2053_v12, 0  ;;  %v7085_v12 = vld [vmem:[#allocation99_spill] sm:$0xff] }
 0x234   :  { %2099 = vmatprep.mubr.bf16.mxu1 %v5381_v22  ;;  %2140 = vmatprep.mubr.bf16.mxu0 %v5381_v22 }
 0x235   :  { %2100 = vmatmul.mubr.bf16.vlgmr.msra.gmra.mrb[40].mxu1 %v5385_v49  ;;  %2141 = vmatmul.mubr.bf16.vlgmr.msra.gmra.mrb[56].mxu0 %v5385_v49 }
 0x236   :  { %2150 = vmatpush1.bf16.msra.mxu1 %v7061_v45  ;;  %2191 = vmatpush1.bf16.msra.mxu0 %v7062_v57 }
 0x237   :  { %2181 = vmatprep.mubr.bf16.mxu1 %v5381_v22  ;;  %2222 = vmatprep.mubr.bf16.mxu0 %v5381_v22 }
 0x238   :  { %2151 = vmatprep.subr.bf16.mxu1 %v7063_v10  ;;  %2192 = vmatprep.subr.bf16.mxu0 %v7064_v47 }
 0x23a   :  { %2152 = vmatpush1.bf16.msra.mxu1 %v7065_v8  ;;  %2193 = vmatpush1.bf16.msra.mxu0 %v7066_v5 }
 0x23b   :  { %2153 = vmatprep.subr.bf16.mxu1 %v7067_v2  ;;  %2194 = vmatprep.subr.bf16.mxu0 %v7068_v26 }
 0x23e   :  { %2154 = vmatpush1.bf16.msra.mxu1 %v7069_v61  ;;  %2195 = vmatpush1.bf16.msra.mxu0 %v7070_v55 }
 0x23f   :  { %2155 = vmatprep.subr.bf16.mxu1 %v7071_v63  ;;  %2196 = vmatprep.subr.bf16.mxu0 %v7072_v37 }
 0x242   :  { %2156 = vmatpush1.bf16.msra.mxu1 %v7073_v36  ;;  %2197 = vmatpush1.bf16.msra.mxu0 %v7074_v41 }
 0x243   :  { %2157 = vmatprep.subr.bf16.mxu1 %v7075_v18  ;;  %2198 = vmatprep.subr.bf16.mxu0 %v7076_v23 }
 0x246   :  { %2158 = vmatpush1.bf16.msra.mxu1 %v7077_v53  ;;  %2199 = vmatpush1.bf16.msra.mxu0 %v4927_v44 }
 0x247   :  { %2159 = vmatprep.subr.bf16.mxu1 %v7078_v42  ;;  %2200 = vmatprep.subr.bf16.mxu0 %v7079_v58 }
 0x24a   :  { %2160 = vmatpush1.bf16.msra.mxu1 %v7080_v48  ;;  %2201 = vmatpush1.bf16.msra.mxu0 %v4939_v0  ;;  %v7086_v0 = vld [vmem:[#allocation101_spill] sm:$0xff] }
 0x24b   :  { %2161 = vmatprep.subr.bf16.mxu1 %v7081_v43  ;;  %2202 = vmatprep.subr.bf16.mxu0 %v4945_v14  ;;  %v7087_v14 = vld [vmem:[#allocation103_spill] sm:$0xff] }
 0x24e   :  { %2162 = vmatpush1.bf16.msra.mxu1 %v7082_v6  ;;  %2203 = vmatpush1.bf16.msra.mxu0 %v4951_v31  ;;  %v7088_v31 = vld [vmem:[#allocation105_spill] sm:$0xff] }
 0x24f   :  { %2163 = vmatprep.subr.bf16.mxu1 %v7083_v40  ;;  %2204 = vmatprep.subr.bf16.mxu0 %v4957_v35  ;;  %v7089_v35 = vld [vmem:[#allocation107_spill] sm:$0xff] }
 0x252   :  { %2164 = vmatpush1.bf16.msra.mxu1 %v7084_v52  ;;  %2205 = vmatpush1.bf16.msra.mxu0 %v4963_v50  ;;  %v7090_v50 = vld [vmem:[#allocation109_spill] sm:$0xff] }
 0x253   :  { %2165 = vmatprep.subr.bf16.mxu1 %v7085_v12  ;;  %2206 = vmatprep.subr.bf16.mxu0 %v4969_v30  ;;  %v7091_v30 = vld [vmem:[#allocation111_spill] sm:$0xff] }
 0x256   :  { %2166 = vmatpush1.bf16.msra.mxu1 %v7086_v0  ;;  %2207 = vmatpush1.bf16.msra.mxu0 %v4973_v4  ;;  %v7092_v4 = vld [vmem:[#allocation113_spill] sm:$0xff] }
 0x257   :  { %2167 = vmatprep.subr.bf16.mxu1 %v7087_v14  ;;  %2208 = vmatprep.subr.bf16.mxu0 %v4977_v17  ;;  %v7093_v17 = vld [vmem:[#allocation115_spill] sm:$0xff] }
 0x25a   :  { %2168 = vmatpush1.bf16.msra.mxu1 %v7088_v31  ;;  %2209 = vmatpush1.bf16.msra.mxu0 %v4982_v15  ;;  %v7094_v15 = vld [vmem:[#allocation116_spill] sm:$0xff] }
 0x25b   :  { %2169 = vmatprep.subr.bf16.mxu1 %v7089_v35  ;;  %2210 = vmatprep.subr.bf16.mxu0 %v4985_v28  ;;  %v7095_v28 = vld [vmem:[#allocation118_spill] sm:$0xff] }
 0x25e   :  { %2170 = vmatpush1.bf16.msra.mxu1 %v7090_v50  ;;  %2211 = vmatpush1.bf16.msra.mxu0 %v4990_v60 }
 0x25f   :  { %2171 = vmatprep.subr.bf16.mxu1 %v7091_v30  ;;  %2212 = vmatprep.subr.bf16.mxu0 %v4993_v13  ;;  %v7096_v13 = vld [vmem:[#allocation122_spill] sm:$0xff] }
 0x262   :  { %2172 = vmatpush1.bf16.msra.mxu1 %v7092_v4  ;;  %2213 = vmatpush1.bf16.msra.mxu0 %v4998_v19  ;;  %v7097_v19 = vld [vmem:[#allocation124_spill] sm:$0xff] }
 0x263   :  { %2173 = vmatprep.subr.bf16.mxu1 %v7093_v17  ;;  %2214 = vmatprep.subr.bf16.mxu0 %v5001_v20 }
 0x266   :  { %2174 = vmatpush1.bf16.msra.mxu1 %v7094_v15  ;;  %2215 = vmatpush1.bf16.msra.mxu0 %v5006_v24  ;;  %v7098_v24 = vld [vmem:[#allocation128_spill] sm:$0xff] }
 0x267   :  { %2175 = vmatprep.subr.bf16.mxu1 %v7095_v28  ;;  %2216 = vmatprep.subr.bf16.mxu0 %v5009_v25  ;;  %v7099_v25 = vld [vmem:[#allocation18_spill] sm:$0xff] }
 0x26a   :  { %2176 = vmatpush1.bf16.msra.mxu1 %v4943_v16  ;;  %2217 = vmatpush1.bf16.msra.mxu0 %v5014_v7 }
 0x26b   :  { %2177 = vmatprep.subr.bf16.mxu1 %v7096_v13  ;;  %2218 = vmatprep.subr.bf16.mxu0 %v5017_v29  ;;  %v7100_v29 = vld [vmem:[#allocation19_spill] sm:$0xff]  ;;  %v7161_v13 = vld [vmem:[#allocation148_spill] sm:$0xff] }
 0x26e   :  { %2178 = vmatpush1.bf16.msra.mxu1 %v7097_v19  ;;  %2219 = vmatpush1.bf16.msra.mxu0 %v5022_v32  ;;  %v7101_v32 = vld [vmem:[#allocation20_spill] sm:$0xff]  ;;  %v7160_v19 = vld [vmem:[#allocation146_spill] sm:$0xff] }
 0x26f   :  { %2179 = vmatprep.subr.bf16.mxu1 %v4960_v59  ;;  %2220 = vmatprep.subr.bf16.mxu0 %v5025_v33  ;;  %v7102_v33 = vld [vmem:[#allocation22_spill] sm:$0xff] }
 0x272   :  { %2180 = vmatpush1.bf16.msra.mxu1 %v7098_v24  ;;  %2221 = vmatpush1.bf16.msra.mxu0 %v5030_v34  ;;  %v7103_v34 = vld [vmem:[#allocation23_spill] sm:$0xff] }
 0x273   :  { %2311 = vmatprep.subr.bf16.mxu1 %v7099_v25  ;;  %2352 = vmatprep.subr.bf16.mxu0 %v4613_v21  ;;  %v7104_v21 = vld [vmem:[#allocation24_spill] sm:$0xff]  ;;  %v7105_v25 = vld [vmem:[#allocation25_spill] sm:$0xff]  ;;  %v7159_v24 = vld [vmem:[#allocation147_spill] sm:$0xff] }
 0x275   :  { %2182 = vmatmul.mubr.bf16.vlgmr.msra.gmra.mrb[44].mxu1 %v5385_v49  ;;  %2223 = vmatmul.mubr.bf16.vlgmr.msra.gmra.mrb[60].mxu0 %v5385_v49 }
 0x276   :  { %2312 = vmatpush1.bf16.msra.mxu1 %v7100_v29  ;;  %2353 = vmatpush1.bf16.msra.mxu0 %v4676_v54  ;;  %v7106_v54 = vld [vmem:[#allocation26_spill] sm:$0xff]  ;;  %v7158_v29 = vld [vmem:[#allocation145_spill] sm:$0xff] }
 0x277   :  { %2313 = vmatprep.subr.bf16.mxu1 %v7101_v32  ;;  %2354 = vmatprep.subr.bf16.mxu0 %v4681_v56  ;;  %v7107_v32 = vld [vmem:[#allocation48_spill] sm:$0xff]  ;;  %v7108_v56 = vld [vmem:[#allocation27_spill] sm:$0xff] }
 0x27a   :  { %2314 = vmatpush1.bf16.msra.mxu1 %v7102_v33  ;;  %2355 = vmatpush1.bf16.msra.mxu0 %v4688_v62  ;;  %v7109_v33 = vld [vmem:[#allocation50_spill] sm:$0xff]  ;;  %v7110_v62 = vld [vmem:[#allocation28_spill] sm:$0xff] }
 0x27b   :  { %2315 = vmatprep.subr.bf16.mxu1 %v7103_v34  ;;  %2356 = vmatprep.subr.bf16.mxu0 %v4695_v1  ;;  %v7111_v34 = vld [vmem:[#allocation52_spill] sm:$0xff]  ;;  %v7112_v1 = vld [vmem:[#allocation29_spill] sm:$0xff] }
 0x27e   :  { %2316 = vmatpush1.bf16.msra.mxu1 %v7104_v21  ;;  %2357 = vmatpush1.bf16.msra.mxu0 %v4701_v9  ;;  %v7113_v21 = vld [vmem:[#allocation54_spill] sm:$0xff] }
 0x27f   :  { %2317 = vmatprep.subr.bf16.mxu1 %v7105_v25  ;;  %2358 = vmatprep.subr.bf16.mxu0 %v4707_v11  ;;  %v7114_v9 = vld [vmem:[#allocation30_spill] sm:$0xff]  ;;  %v7115_v25 = vld [vmem:[#allocation56_spill] sm:$0xff]  ;;  %v7116_v11 = vld [vmem:[#allocation31_spill] sm:$0xff] }
 0x282   :  { %2318 = vmatpush1.bf16.msra.mxu1 %v7106_v54  ;;  %2359 = vmatpush1.bf16.msra.mxu0 %v7107_v32  ;;  %v7117_v54 = vld [vmem:[#allocation58_spill] sm:$0xff]  ;;  %v7118_v32 = vld [vmem:[#allocation32_spill] sm:$0xff] }
 0x283   :  { %2319 = vmatprep.subr.bf16.mxu1 %v7108_v56  ;;  %2360 = vmatprep.subr.bf16.mxu0 %v7109_v33  ;;  %v7119_v56 = vld [vmem:[#allocation60_spill] sm:$0xff]  ;;  %v7120_v33 = vld [vmem:[#allocation33_spill] sm:$0xff] }
 0x286   :  { %2320 = vmatpush1.bf16.msra.mxu1 %v7110_v62  ;;  %2361 = vmatpush1.bf16.msra.mxu0 %v7111_v34  ;;  %v7121_v62 = vld [vmem:[#allocation62_spill] sm:$0xff] }
 0x287   :  { %2321 = vmatprep.subr.bf16.mxu1 %v7112_v1  ;;  %2362 = vmatprep.subr.bf16.mxu0 %v7113_v21  ;;  %v7122_v34 = vld [vmem:[#allocation34_spill] sm:$0xff]  ;;  %v7123_v1 = vld [vmem:[#allocation64_spill] sm:$0xff]  ;;  %v7124_v21 = vld [vmem:[#allocation35_spill] sm:$0xff] }
 0x28a   :  { %2322 = vmatpush1.bf16.msra.mxu1 %v7114_v9  ;;  %2363 = vmatpush1.bf16.msra.mxu0 %v7115_v25  ;;  %v7125_v9 = vld [vmem:[#allocation66_spill] sm:$0xff]  ;;  %v7126_v25 = vld [vmem:[#allocation37_spill] sm:$0xff] }
 0x28b   :  { %2323 = vmatprep.subr.bf16.mxu1 %v7116_v11  ;;  %2364 = vmatprep.subr.bf16.mxu0 %v7117_v54  ;;  %v7127_v11 = vld [vmem:[#allocation68_spill] sm:$0xff]  ;;  %v7128_v54 = vld [vmem:[#allocation39_spill] sm:$0xff] }
 0x28e   :  { %2324 = vmatpush1.bf16.msra.mxu1 %v7118_v32  ;;  %2365 = vmatpush1.bf16.msra.mxu0 %v7119_v56  ;;  %v7129_v32 = vld [vmem:[#allocation70_spill] sm:$0xff]  ;;  %v7130_v56 = vld [vmem:[#allocation41_spill] sm:$0xff] }
 0x28f   :  { %2325 = vmatprep.subr.bf16.mxu1 %v7120_v33  ;;  %2366 = vmatprep.subr.bf16.mxu0 %v7121_v62  ;;  %v7131_v33 = vld [vmem:[#allocation72_spill] sm:$0xff]  ;;  %v7132_v62 = vld [vmem:[#allocation43_spill] sm:$0xff] }
 0x292   :  { %2326 = vmatpush1.bf16.msra.mxu1 %v7122_v34  ;;  %2367 = vmatpush1.bf16.msra.mxu0 %v7123_v1  ;;  %v7133_v34 = vld [vmem:[#allocation74_spill] sm:$0xff]  ;;  %v7134_v1 = vld [vmem:[#allocation45_spill] sm:$0xff] }
 0x293   :  { %2327 = vmatprep.subr.bf16.mxu1 %v7124_v21  ;;  %2368 = vmatprep.subr.bf16.mxu0 %v7125_v9  ;;  %v7135_v21 = vld [vmem:[#allocation76_spill] sm:$0xff]  ;;  %v7136_v9 = vld [vmem:[#allocation47_spill] sm:$0xff] }
 0x296   :  { %2328 = vmatpush1.bf16.msra.mxu1 %v7126_v25  ;;  %2369 = vmatpush1.bf16.msra.mxu0 %v7127_v11  ;;  %v7137_v25 = vld [vmem:[#allocation78_spill] sm:$0xff]  ;;  %v7138_v11 = vld [vmem:[#allocation49_spill] sm:$0xff] }
 0x297   :  { %2329 = vmatprep.subr.bf16.mxu1 %v7128_v54  ;;  %2370 = vmatprep.subr.bf16.mxu0 %v7129_v32  ;;  %v7139_v54 = vld [vmem:[#allocation80_spill] sm:$0xff]  ;;  %v7140_v32 = vld [vmem:[#allocation51_spill] sm:$0xff] }
 0x29a   :  { %2330 = vmatpush1.bf16.msra.mxu1 %v7130_v56  ;;  %2371 = vmatpush1.bf16.msra.mxu0 %v7131_v33  ;;  %v7141_v56 = vld [vmem:[#allocation82_spill] sm:$0xff]  ;;  %v7142_v33 = vld [vmem:[#allocation53_spill] sm:$0xff] }
 0x29b   :  { %2331 = vmatprep.subr.bf16.mxu1 %v7132_v62  ;;  %2372 = vmatprep.subr.bf16.mxu0 %v7133_v34  ;;  %v7143_v62 = vld [vmem:[#allocation84_spill] sm:$0xff]  ;;  %v7144_v34 = vld [vmem:[#allocation55_spill] sm:$0xff] }
 0x29e   :  { %2332 = vmatpush1.bf16.msra.mxu1 %v7134_v1  ;;  %2373 = vmatpush1.bf16.msra.mxu0 %v7135_v21  ;;  %v7145_v1 = vld [vmem:[#allocation86_spill] sm:$0xff]  ;;  %v7146_v21 = vld [vmem:[#allocation57_spill] sm:$0xff] }
 0x29f   :  { %2333 = vmatprep.subr.bf16.mxu1 %v7136_v9  ;;  %2374 = vmatprep.subr.bf16.mxu0 %v7137_v25  ;;  %v7147_v9 = vld [vmem:[#allocation88_spill] sm:$0xff]  ;;  %v7148_v25 = vld [vmem:[#allocation59_spill] sm:$0xff] }
 0x2a2   :  { %2334 = vmatpush1.bf16.msra.mxu1 %v7138_v11  ;;  %2375 = vmatpush1.bf16.msra.mxu0 %v7139_v54  ;;  %v7149_v11 = vld [vmem:[#allocation90_spill] sm:$0xff]  ;;  %v7150_v54 = vld [vmem:[#allocation61_spill] sm:$0xff] }
 0x2a3   :  { %2335 = vmatprep.subr.bf16.mxu1 %v7140_v32  ;;  %2376 = vmatprep.subr.bf16.mxu0 %v7141_v56  ;;  %v7151_v32 = vld [vmem:[#allocation92_spill] sm:$0xff]  ;;  %v7152_v56 = vld [vmem:[#allocation63_spill] sm:$0xff] }
 0x2a6   :  { %2336 = vmatpush1.bf16.msra.mxu1 %v7142_v33  ;;  %2377 = vmatpush1.bf16.msra.mxu0 %v7143_v62  ;;  %v7153_v33 = vld [vmem:[#allocation94_spill] sm:$0xff]  ;;  %v7154_v62 = vld [vmem:[#allocation65_spill] sm:$0xff] }
 0x2a7   :  { %2337 = vmatprep.subr.bf16.mxu1 %v7144_v34  ;;  %2378 = vmatprep.subr.bf16.mxu0 %v7145_v1  ;;  %v7155_v34 = vld [vmem:[#allocation96_spill] sm:$0xff]  ;;  %v7156_v1 = vld [vmem:[#allocation67_spill] sm:$0xff] }
 0x2aa   :  { %2338 = vmatpush1.bf16.msra.mxu1 %v7146_v21  ;;  %2379 = vmatpush1.bf16.msra.mxu0 %v7147_v9  ;;  %v7157_v21 = vld [vmem:[#allocation98_spill] sm:$0xff] }
 0x2ab   :  { %2339 = vmatprep.subr.bf16.mxu1 %v7148_v25  ;;  %2380 = vmatprep.subr.bf16.mxu0 %v7149_v11 }
 0x2ae   :  { %2340 = vmatpush1.bf16.msra.mxu1 %v7150_v54  ;;  %2381 = vmatpush1.bf16.msra.mxu0 %v7151_v32 }
 0x2af   :  { %2341 = vmatprep.subr.bf16.mxu1 %v7152_v56  ;;  %2382 = vmatprep.subr.bf16.mxu0 %v7153_v33 }
 0x2b2   :  { %2342 = vmatpush1.bf16.msra.mxu1 %v7154_v62  ;;  %2383 = vmatpush1.bf16.msra.mxu0 %v7155_v34 }
 0x2b3   :  { %2393 = vmatprep.subr.bf16.mxu1 %v7156_v1  ;;  %2434 = vmatprep.subr.bf16.mxu0 %v7157_v21 }
 0x308   :  { %v2101_v9 = vpop.f32.mrb[40].mxu1  ;;  %v2142_v25 = vpop.f32.mrb[56].mxu0 }
 0x309   :  { %v2231_v11 = vadd.f32 %v2101_v9, %v7158_v29  ;;  %v2233_v54 = vadd.f32 %v2142_v25, %v7159_v24  ;;  %v2103_v59 = vpop.f32.mrb[41].mxu1  ;;  %v2144_v32 = vpop.f32.mrb[57].mxu0 }
 0x30a   :  { %v2232_v56 = vadd.f32 %v2103_v59, %v7160_v19  ;;  %v2234_v33 = vadd.f32 %v2144_v32, %v7161_v13  ;;  %v2105_v7 = vpop.f32.mrb[42].mxu1  ;;  %v2146_v62 = vpop.f32.mrb[58].mxu0  ;;  %v2050_v19 = vsel %vm2046_vm3, %v5355_v51, 0.0  ;;  %v7162_v59 = vld [vmem:[#allocation173_spill] sm:$0xff] }
 0x30b   :  { %v3992_v16 = vmul.f32 -1.442695, %v2233_v54  ;;  %v2106_v34 = vpop.f32.mrb[43].mxu1  ;;  %v2147_v28 = vpop.f32.mrb[59].mxu0  ;;  %v2051_v7 = vsel %vm2047_vm2, %v5357_v27, 0.0  ;;  %v7164_v27 = vld [vmem:[#allocation174_spill] sm:$0xff] }
 0x30c   :  { %v3993_v1 = vmul.f32 -1.442695, %v2234_v33  ;;  %v3990_v33 = vmul.f32 -1.442695, %v2231_v11  ;;  %v3991_v54 = vmul.f32 -1.442695, %v2232_v56 }
 0x30d   :  { %4085 = vpow2.f32 %v3992_v16  ;;  %v7163_v28 = vld [vmem:[#allocation175_spill] sm:$0xff]  ;;  %v7165_v11 = vld [vmem:[#allocation176_spill] sm:$0xff] }
 0x30e   :  { %4087 = vpow2.f32 %v3993_v1 }
 0x317   :  { %v4086_v21 = vpop.eup %4085 }
 0x318   :  { %v2257_v15 = vadd.f32 1.0, %v4086_v21  ;;  %v4088_v20 = vpop.eup %4087 }
 0x319   :  { %v2258_v29 = vadd.f32 1.0, %v4088_v20 }
 0x31a   :  { %4089 = vrcp.f32 %v2257_v15 }
 0x31b   :  { %4091 = vrcp.f32 %v2258_v29 }
 0x31c   :  { %4093 = vpow2.f32 %v3990_v33 }
 0x31d   :  { %4095 = vpow2.f32 %v3991_v54 }
 0x324   :  { %v4090_v24 = vpop.eup %4089 }
 0x325   :  { %v2277_v13 = vmul.f32 %v4090_v24, %v2050_v19  ;;  %v4092_v25 = vpop.eup %4091 }
 0x326   :  { %v2278_v32 = vmul.f32 %v4092_v25, %v2051_v7  ;;  %v4094_v21 = vpop.eup %4093 }
 0x327   :  { %v4096_v62 = vpop.eup %4095  ;;  %v2245_v20 = vadd.f32 1.0, %v4094_v21 }
 0x328   :  { %v2246_v1 = vadd.f32 1.0, %v4096_v62 }
 0x329   :  { %4097 = vrcp.f32 %v2245_v20 }
 0x32a   :  { %4099 = vrcp.f32 %v2246_v1 }
 0x333   :  { %v4098_v20 = vpop.eup %4097 }
 0x348   :  { %v2183_v9 = vpop.f32.mrb[44].mxu1  ;;  %v2224_v16 = vpop.f32.mrb[60].mxu0 }
 0x349   :  { %v2235_v15 = vadd.f32 %v2183_v9, %v7162_v59  ;;  %v2237_v34 = vadd.f32 %v2224_v16, %v7163_v28  ;;  %v2185_v51 = vpop.f32.mrb[45].mxu1  ;;  %v2226_v29 = vpop.f32.mrb[61].mxu0 }
 0x34a   :  { %v2236_v24 = vadd.f32 %v2185_v51, %v7164_v27  ;;  %v2238_v56 = vadd.f32 %v2226_v29, %v7165_v11  ;;  %v2187_v25 = vpop.f32.mrb[46].mxu1  ;;  %v2228_v33 = vpop.f32.mrb[62].mxu0  ;;  %v7166_v11 = vld [vmem:[#allocation201_spill] sm:$0xff] }
 0x34b   :  { %4101 = vtanh.f32 %v2235_v15  ;;  %v3994_v54 = vmul.f32 -1.442695, %v2237_v34  ;;  %v2188_v21 = vpop.f32.mrb[47].mxu1  ;;  %v2229_v62 = vpop.f32.mrb[63].mxu0  ;;  %vm2290_vm6 = vcmp.gt.f32.partialorder %v7166_v11, 0.0  ;;  %v7167_v25 = vld [vmem:[#allocation202_spill] sm:$0xff] }
 0x34c   :  { %4103 = vtanh.f32 %v2236_v24  ;;  %v3995_v17 = vmul.f32 -1.442695, %v2238_v56  ;;  %v4100_v9 = vpop.eup %4099  ;;  %vm2291_vm7 = vcmp.gt.f32.partialorder %v7167_v25, 0.0  ;;  %vm2298_vm9 = vmpackc.low %vm2290_vm6, %vm2290_vm6  ;;  %v7179_v11 = vld [vmem:[#allocation113_spill] sm:$0xff] }
 0x34d   :  { %4105 = vpow2.f32 %v3994_v54  ;;  %vm2299_vm8 = vmpackc.low %vm2291_vm7, %vm2291_vm7  ;;  %v7182_v25 = vld [vmem:[#allocation137_spill] sm:$0xff] }
 0x34e   :  { %4107 = vpow2.f32 %v3995_v17 }
 0x355   :  { %v4102_v16 = vpop.eup %4101 }
 0x356   :  { %v4104_v59 = vpop.eup %4103  ;;  %v2279_v28 = vmul.f32 %v4102_v16, %v4098_v20  ;;  %v7172_v16 = vld [vmem:[#allocation127_spill] sm:$0xff] }
 0x357   :  { %v4106_v1 = vpop.eup %4105  ;;  %v2280_v4 = vmul.f32 %v4104_v59, %v4100_v9  ;;  %v7173_v59 = vld [vmem:[#allocation129_spill] sm:$0xff] }
 0x358   :  { %v4108_v51 = vpop.eup %4107  ;;  %v2281_v27 = vadd.f32 %v2279_v28, %v2277_v13  ;;  %v2271_v29 = vadd.f32 1.0, %v4106_v1  ;;  %v7174_v28 = vld [vmem:[#allocation130_spill] sm:$0xff]  ;;  %v7175_v1 = vld [vmem:[#allocation131_spill] sm:$0xff] }
 0x359   :  { %v2282_v15 = vadd.f32 %v2280_v4, %v2278_v32  ;;  %v2272_v34 = vadd.f32 1.0, %v4108_v51  ;;  %v2048_v32 = vsel %vm2046_vm3, %v5365_v3, 0.0  ;;  %v7168_v3 = vld [vmem:[#allocation119_spill] sm:$0xff]  ;;  %v7176_v51 = vld [vmem:[#allocation132_spill] sm:$0xff] }
 0x35a   :  { %4109 = vtanh.f32 %v2281_v27  ;;  %v5539_v17 = vsel %vm2290_vm6, %v2281_v27, %v2050_v19  ;;  %v7177_v27 = vld [vmem:[#allocation133_spill] sm:$0xff] }
 0x35b   :  { %4111 = vrcp.f32 %v2271_v29  ;;  %v5543_v24 = vsel %vm2291_vm7, %v2282_v15, %v2051_v7  ;;  %v2049_v7 = vsel %vm2047_vm2, %v5368_v39, 0.0  ;;  %v7169_v39 = vld [vmem:[#allocation121_spill] sm:$0xff]  ;;  %v7178_v29 = vld [vmem:[#allocation135_spill] sm:$0xff] }
 0x35c   :  { %4113 = vtanh.f32 %v2282_v15  ;;  %v7180_v15 = vld [vmem:[#allocation136_spill] sm:$0xff] }
 0x35d   :  { %4115 = vrcp.f32 %v2272_v34  ;;  %v7181_v34 = vld [vmem:[#allocation115_spill] sm:$0xff] }
 0x364   :  { %v4110_v13 = vpop.eup %4109 }
 0x365   :  { %v4112_v56 = vpop.eup %4111 }
 0x366   :  { %v4114_v33 = vpop.eup %4113  ;;  %v2285_v54 = vmul.f32 %v4112_v56, %v4110_v13  ;;  %v7183_v13 = vld [vmem:[#allocation116_spill] sm:$0xff]  ;;  %v7184_v56 = vld [vmem:[#allocation138_spill] sm:$0xff] }
 0x367   :  { %v4116_v4 = vpop.eup %4115 }
 0x368   :  { %v2286_v21 = vmul.f32 %v4116_v4, %v4114_v33  ;;  %v5550_v19 = vsel %vm2290_vm6, %v2285_v54, %v2048_v32  ;;  %v2296_v62 = vpack.c.bf16 %v2285_v54, %v2285_v54  ;;  %v7185_v33 = vld [vmem:[#allocation118_spill] sm:$0xff]  ;;  %v7186_v54 = vld [vmem:[#allocation139_spill] sm:$0xff]  ;;  %v7187_v4 = vld [vmem:[#allocation120_spill] sm:$0xff] }
 0x369   :  { %v7188_v32 = vld [vmem:[#allocation140_spill] sm:$0xff] }
 0x36a   :  { %v5557_v20 = vsel %vm2291_vm7, %v2286_v21, %v2049_v7  ;;  %v2297_v9 = vpack.c.bf16 %v2286_v21, %v2286_v21  ;;  %v5571_v38 = vsel %vm2298_vm9, %v2296_v62, %v5385_v49  ;;  %v7171_v49 = vld [vmem:[#allocation125_spill] sm:$0xff]  ;;  %v7189_v21 = vld [vmem:[#allocation122_spill] sm:$0xff]  ;;  %v7191_v62 = vld [vmem:[#allocation124_spill] sm:$0xff] }
 0x36b   :  { %v7190_v7 = vld [vmem:[#allocation141_spill] sm:$0xff] }
 0x36c   :  { %v5566_v46 = vsel %vm2299_vm8, %v2297_v9, %v5381_v22  ;;  %v7170_v22 = vld [vmem:[#allocation123_spill] sm:$0xff]  ;;  %v7192_v9 = vld [vmem:[#allocation142_spill] sm:$0xff] }
 0x36d   :  { %2343 = vmatprep.mubr.bf16.mxu1 %v5566_v46  ;;  %2384 = vmatprep.mubr.bf16.mxu0 %v5566_v46 }
 0x36e   :  { %2344 = vmatmul.mubr.bf16.vlgmr.msra.gmra.mrb[48].mxu1 %v5571_v38  ;;  %2385 = vmatmul.mubr.bf16.vlgmr.msra.gmra.mrb[64].mxu0 %v5571_v38 }
 0x36f   :  { %2394 = vmatpush1.bf16.msra.mxu1 %v7061_v45  ;;  %2435 = vmatpush1.bf16.msra.mxu0 %v7062_v57 }
 0x370   :  { %2425 = vmatprep.mubr.bf16.mxu1 %v5566_v46  ;;  %2466 = vmatprep.mubr.bf16.mxu0 %v5566_v46 }
 0x371   :  { %2395 = vmatprep.subr.bf16.mxu1 %v7063_v10  ;;  %2436 = vmatprep.subr.bf16.mxu0 %v7064_v47 }
 0x373   :  { %2396 = vmatpush1.bf16.msra.mxu1 %v7065_v8  ;;  %2437 = vmatpush1.bf16.msra.mxu0 %v7066_v5 }
 0x374   :  { %2397 = vmatprep.subr.bf16.mxu1 %v7067_v2  ;;  %2438 = vmatprep.subr.bf16.mxu0 %v7068_v26 }
 0x377   :  { %2398 = vmatpush1.bf16.msra.mxu1 %v7069_v61  ;;  %2439 = vmatpush1.bf16.msra.mxu0 %v7070_v55 }
 0x378   :  { %2399 = vmatprep.subr.bf16.mxu1 %v7071_v63  ;;  %2440 = vmatprep.subr.bf16.mxu0 %v7072_v37 }
 0x37b   :  { %2400 = vmatpush1.bf16.msra.mxu1 %v7073_v36  ;;  %2441 = vmatpush1.bf16.msra.mxu0 %v7074_v41 }
 0x37c   :  { %2401 = vmatprep.subr.bf16.mxu1 %v7075_v18  ;;  %2442 = vmatprep.subr.bf16.mxu0 %v7076_v23 }
 0x37f   :  { %2402 = vmatpush1.bf16.msra.mxu1 %v7077_v53  ;;  %2443 = vmatpush1.bf16.msra.mxu0 %v4927_v44 }
 0x380   :  { %2403 = vmatprep.subr.bf16.mxu1 %v7078_v42  ;;  %2444 = vmatprep.subr.bf16.mxu0 %v7079_v58 }
 0x383   :  { %2404 = vmatpush1.bf16.msra.mxu1 %v7080_v48  ;;  %2445 = vmatpush1.bf16.msra.mxu0 %v7168_v3 }
 0x384   :  { %2405 = vmatprep.subr.bf16.mxu1 %v7081_v43  ;;  %2446 = vmatprep.subr.bf16.mxu0 %v7169_v39 }
 0x387   :  { %2406 = vmatpush1.bf16.msra.mxu1 %v7082_v6  ;;  %2447 = vmatpush1.bf16.msra.mxu0 %v7170_v22 }
 0x388   :  { %2407 = vmatprep.subr.bf16.mxu1 %v7083_v40  ;;  %2448 = vmatprep.subr.bf16.mxu0 %v7171_v49 }
 0x38b   :  { %2408 = vmatpush1.bf16.msra.mxu1 %v7084_v52  ;;  %2449 = vmatpush1.bf16.msra.mxu0 %v7172_v16 }
 0x38c   :  { %2409 = vmatprep.subr.bf16.mxu1 %v7085_v12  ;;  %2450 = vmatprep.subr.bf16.mxu0 %v7173_v59 }
 0x38f   :  { %2410 = vmatpush1.bf16.msra.mxu1 %v7086_v0  ;;  %2451 = vmatpush1.bf16.msra.mxu0 %v7174_v28 }
 0x390   :  { %2411 = vmatprep.subr.bf16.mxu1 %v7087_v14  ;;  %2452 = vmatprep.subr.bf16.mxu0 %v7175_v1 }
 0x393   :  { %2412 = vmatpush1.bf16.msra.mxu1 %v7088_v31  ;;  %2453 = vmatpush1.bf16.msra.mxu0 %v7176_v51 }
 0x394   :  { %2413 = vmatprep.subr.bf16.mxu1 %v7089_v35  ;;  %2454 = vmatprep.subr.bf16.mxu0 %v7177_v27 }
 0x397   :  { %2414 = vmatpush1.bf16.msra.mxu1 %v7090_v50  ;;  %2455 = vmatpush1.bf16.msra.mxu0 %v4990_v60 }
 0x398   :  { %2415 = vmatprep.subr.bf16.mxu1 %v7091_v30  ;;  %2456 = vmatprep.subr.bf16.mxu0 %v7178_v29  ;;  %v7265_v29 = vld [vmem:[#allocation150_spill] sm:$0xff]  ;;  %v7266_v30 = vld [vmem:[#allocation153_spill] sm:$0xff] }
 0x39b   :  { %2416 = vmatpush1.bf16.msra.mxu1 %v7179_v11  ;;  %2457 = vmatpush1.bf16.msra.mxu0 %v7180_v15  ;;  %v7264_v15 = vld [vmem:[#allocation151_spill] sm:$0xff] }
 0x39c   :  { %2417 = vmatprep.subr.bf16.mxu1 %v7181_v34  ;;  %2458 = vmatprep.subr.bf16.mxu0 %v7182_v25  ;;  %v7193_v25 = vld [vmem:[#allocation126_spill] sm:$0xff]  ;;  %v7263_v34 = vld [vmem:[#allocation149_spill] sm:$0xff] }
 0x39f   :  { %2418 = vmatpush1.bf16.msra.mxu1 %v7183_v13  ;;  %2459 = vmatpush1.bf16.msra.mxu0 %v7184_v56  ;;  %v7194_v13 = vld [vmem:[#allocation143_spill] sm:$0xff]  ;;  %v7195_v56 = vld [vmem:[#allocation128_spill] sm:$0xff] }
 0x3a0   :  { %2419 = vmatprep.subr.bf16.mxu1 %v7185_v33  ;;  %2460 = vmatprep.subr.bf16.mxu0 %v7186_v54  ;;  %v7196_v33 = vld [vmem:[#allocation144_spill] sm:$0xff]  ;;  %v7197_v54 = vld [vmem:[#allocation18_spill] sm:$0xff] }
 0x3a3   :  { %2420 = vmatpush1.bf16.msra.mxu1 %v7187_v4  ;;  %2461 = vmatpush1.bf16.msra.mxu0 %v7188_v32  ;;  %v7198_v4 = vld [vmem:[#allocation21_spill] sm:$0xff] }
 0x3a4   :  { %2421 = vmatprep.subr.bf16.mxu1 %v7189_v21  ;;  %2462 = vmatprep.subr.bf16.mxu0 %v7190_v7  ;;  %v7199_v7 = vld [vmem:[#allocation19_spill] sm:$0xff]  ;;  %v7208_v21 = vld [vmem:[#allocation44_spill] sm:$0xff]  ;;  %v7209_v32 = vld [vmem:[#allocation25_spill] sm:$0xff] }
 0x3a7   :  { %2422 = vmatpush1.bf16.msra.mxu1 %v7191_v62  ;;  %2463 = vmatpush1.bf16.msra.mxu0 %v7192_v9  ;;  %v7200_v62 = vld [vmem:[#allocation36_spill] sm:$0xff] }
 0x3a8   :  { %2423 = vmatprep.subr.bf16.mxu1 %v7193_v25  ;;  %2464 = vmatprep.subr.bf16.mxu0 %v7194_v13  ;;  %v7201_v9 = vld [vmem:[#allocation20_spill] sm:$0xff]  ;;  %v7202_v25 = vld [vmem:[#allocation38_spill] sm:$0xff] }
 0x3a9   :  { %v7203_v13 = vld [vmem:[#allocation22_spill] sm:$0xff] }
 0x3ab   :  { %2424 = vmatpush1.bf16.msra.mxu1 %v7195_v56  ;;  %2465 = vmatpush1.bf16.msra.mxu0 %v7196_v33  ;;  %v7204_v56 = vld [vmem:[#allocation40_spill] sm:$0xff]  ;;  %v7205_v33 = vld [vmem:[#allocation23_spill] sm:$0xff] }
 0x3ac   :  { %2555 = vmatprep.subr.bf16.mxu1 %v7197_v54  ;;  %2596 = vmatprep.subr.bf16.mxu0 %v7198_v4  ;;  %v7206_v54 = vld [vmem:[#allocation42_spill] sm:$0xff]  ;;  %v7207_v4 = vld [vmem:[#allocation24_spill] sm:$0xff] }
 0x3ae   :  { %2426 = vmatmul.mubr.bf16.vlgmr.msra.gmra.mrb[52].mxu1 %v5571_v38  ;;  %2467 = vmatmul.mubr.bf16.vlgmr.msra.gmra.mrb[68].mxu0 %v5571_v38 }
 0x3af   :  { %2556 = vmatpush1.bf16.msra.mxu1 %v7199_v7  ;;  %2597 = vmatpush1.bf16.msra.mxu0 %v7200_v62  ;;  %v7210_v7 = vld [vmem:[#allocation46_spill] sm:$0xff] }
 0x3b0   :  { %2557 = vmatprep.subr.bf16.mxu1 %v7201_v9  ;;  %2598 = vmatprep.subr.bf16.mxu0 %v7202_v25  ;;  %v7211_v62 = vld [vmem:[#allocation26_spill] sm:$0xff]  ;;  %v7212_v9 = vld [vmem:[#allocation48_spill] sm:$0xff]  ;;  %v7213_v25 = vld [vmem:[#allocation27_spill] sm:$0xff] }
 0x3b3   :  { %2558 = vmatpush1.bf16.msra.mxu1 %v7203_v13  ;;  %2599 = vmatpush1.bf16.msra.mxu0 %v7204_v56  ;;  %v7214_v13 = vld [vmem:[#allocation50_spill] sm:$0xff]  ;;  %v7215_v56 = vld [vmem:[#allocation28_spill] sm:$0xff] }
 0x3b4   :  { %2559 = vmatprep.subr.bf16.mxu1 %v7205_v33  ;;  %2600 = vmatprep.subr.bf16.mxu0 %v7206_v54  ;;  %v7216_v33 = vld [vmem:[#allocation52_spill] sm:$0xff]  ;;  %v7217_v54 = vld [vmem:[#allocation29_spill] sm:$0xff] }
 0x3b7   :  { %2560 = vmatpush1.bf16.msra.mxu1 %v7207_v4  ;;  %2601 = vmatpush1.bf16.msra.mxu0 %v7208_v21  ;;  %v7218_v4 = vld [vmem:[#allocation54_spill] sm:$0xff] }
 0x3b8   :  { %2561 = vmatprep.subr.bf16.mxu1 %v7209_v32  ;;  %2602 = vmatprep.subr.bf16.mxu0 %v7210_v7  ;;  %v7219_v21 = vld [vmem:[#allocation30_spill] sm:$0xff]  ;;  %v7220_v32 = vld [vmem:[#allocation56_spill] sm:$0xff]  ;;  %v7221_v7 = vld [vmem:[#allocation31_spill] sm:$0xff] }
 0x3bb   :  { %2562 = vmatpush1.bf16.msra.mxu1 %v7211_v62  ;;  %2603 = vmatpush1.bf16.msra.mxu0 %v7212_v9  ;;  %v7222_v62 = vld [vmem:[#allocation58_spill] sm:$0xff]  ;;  %v7223_v9 = vld [vmem:[#allocation32_spill] sm:$0xff] }
 0x3bc   :  { %2563 = vmatprep.subr.bf16.mxu1 %v7213_v25  ;;  %2604 = vmatprep.subr.bf16.mxu0 %v7214_v13  ;;  %v7224_v25 = vld [vmem:[#allocation60_spill] sm:$0xff]  ;;  %v7225_v13 = vld [vmem:[#allocation33_spill] sm:$0xff] }
 0x3bf   :  { %2564 = vmatpush1.bf16.msra.mxu1 %v7215_v56  ;;  %2605 = vmatpush1.bf16.msra.mxu0 %v7216_v33  ;;  %v7226_v56 = vld [vmem:[#allocation62_spill] sm:$0xff] }
 0x3c0   :  { %2565 = vmatprep.subr.bf16.mxu1 %v7217_v54  ;;  %2606 = vmatprep.subr.bf16.mxu0 %v7218_v4  ;;  %v7227_v33 = vld [vmem:[#allocation34_spill] sm:$0xff]  ;;  %v7228_v54 = vld [vmem:[#allocation64_spill] sm:$0xff]  ;;  %v7229_v4 = vld [vmem:[#allocation35_spill] sm:$0xff] }
 0x3c3   :  { %2566 = vmatpush1.bf16.msra.mxu1 %v7219_v21  ;;  %2607 = vmatpush1.bf16.msra.mxu0 %v7220_v32  ;;  %v7230_v21 = vld [vmem:[#allocation66_spill] sm:$0xff]  ;;  %v7231_v32 = vld [vmem:[#allocation37_spill] sm:$0xff] }
 0x3c4   :  { %2567 = vmatprep.subr.bf16.mxu1 %v7221_v7  ;;  %2608 = vmatprep.subr.bf16.mxu0 %v7222_v62  ;;  %v7232_v7 = vld [vmem:[#allocation68_spill] sm:$0xff]  ;;  %v7233_v62 = vld [vmem:[#allocation39_spill] sm:$0xff] }
 0x3c7   :  { %2568 = vmatpush1.bf16.msra.mxu1 %v7223_v9  ;;  %2609 = vmatpush1.bf16.msra.mxu0 %v7224_v25  ;;  %v7234_v9 = vld [vmem:[#allocation70_spill] sm:$0xff]  ;;  %v7235_v25 = vld [vmem:[#allocation41_spill] sm:$0xff] }
 0x3c8   :  { %2569 = vmatprep.subr.bf16.mxu1 %v7225_v13  ;;  %2610 = vmatprep.subr.bf16.mxu0 %v7226_v56  ;;  %v7236_v13 = vld [vmem:[#allocation72_spill] sm:$0xff]  ;;  %v7237_v56 = vld [vmem:[#allocation43_spill] sm:$0xff] }
 0x3cb   :  { %2570 = vmatpush1.bf16.msra.mxu1 %v7227_v33  ;;  %2611 = vmatpush1.bf16.msra.mxu0 %v7228_v54  ;;  %v7238_v33 = vld [vmem:[#allocation74_spill] sm:$0xff]  ;;  %v7239_v54 = vld [vmem:[#allocation45_spill] sm:$0xff] }
 0x3cc   :  { %2571 = vmatprep.subr.bf16.mxu1 %v7229_v4  ;;  %2612 = vmatprep.subr.bf16.mxu0 %v7230_v21  ;;  %v7240_v4 = vld [vmem:[#allocation76_spill] sm:$0xff]  ;;  %v7241_v21 = vld [vmem:[#allocation47_spill] sm:$0xff] }
 0x3cf   :  { %2572 = vmatpush1.bf16.msra.mxu1 %v7231_v32  ;;  %2613 = vmatpush1.bf16.msra.mxu0 %v7232_v7  ;;  %v7242_v32 = vld [vmem:[#allocation78_spill] sm:$0xff]  ;;  %v7243_v7 = vld [vmem:[#allocation49_spill] sm:$0xff] }
 0x3d0   :  { %2573 = vmatprep.subr.bf16.mxu1 %v7233_v62  ;;  %2614 = vmatprep.subr.bf16.mxu0 %v7234_v9  ;;  %v7244_v62 = vld [vmem:[#allocation80_spill] sm:$0xff]  ;;  %v7245_v9 = vld [vmem:[#allocation51_spill] sm:$0xff] }
 0x3d3   :  { %2574 = vmatpush1.bf16.msra.mxu1 %v7235_v25  ;;  %2615 = vmatpush1.bf16.msra.mxu0 %v7236_v13  ;;  %v7246_v25 = vld [vmem:[#allocation82_spill] sm:$0xff]  ;;  %v7247_v13 = vld [vmem:[#allocation53_spill] sm:$0xff] }
 0x3d4   :  { %2575 = vmatprep.subr.bf16.mxu1 %v7237_v56  ;;  %2616 = vmatprep.subr.bf16.mxu0 %v7238_v33  ;;  %v7248_v56 = vld [vmem:[#allocation84_spill] sm:$0xff]  ;;  %v7249_v33 = vld [vmem:[#allocation55_spill] sm:$0xff] }
 0x3d7   :  { %2576 = vmatpush1.bf16.msra.mxu1 %v7239_v54  ;;  %2617 = vmatpush1.bf16.msra.mxu0 %v7240_v4  ;;  %v7250_v54 = vld [vmem:[#allocation86_spill] sm:$0xff]  ;;  %v7251_v4 = vld [vmem:[#allocation57_spill] sm:$0xff] }
 0x3d8   :  { %2577 = vmatprep.subr.bf16.mxu1 %v7241_v21  ;;  %2618 = vmatprep.subr.bf16.mxu0 %v7242_v32  ;;  %v7252_v21 = vld [vmem:[#allocation88_spill] sm:$0xff]  ;;  %v7253_v32 = vld [vmem:[#allocation59_spill] sm:$0xff] }
 0x3db   :  { %2578 = vmatpush1.bf16.msra.mxu1 %v7243_v7  ;;  %2619 = vmatpush1.bf16.msra.mxu0 %v7244_v62  ;;  %v7254_v7 = vld [vmem:[#allocation90_spill] sm:$0xff]  ;;  %v7255_v62 = vld [vmem:[#allocation61_spill] sm:$0xff] }
 0x3dc   :  { %2579 = vmatprep.subr.bf16.mxu1 %v7245_v9  ;;  %2620 = vmatprep.subr.bf16.mxu0 %v7246_v25  ;;  %v7256_v9 = vld [vmem:[#allocation92_spill] sm:$0xff]  ;;  %v7257_v25 = vld [vmem:[#allocation63_spill] sm:$0xff] }
 0x3df   :  { %2580 = vmatpush1.bf16.msra.mxu1 %v7247_v13  ;;  %2621 = vmatpush1.bf16.msra.mxu0 %v7248_v56  ;;  %v7258_v13 = vld [vmem:[#allocation94_spill] sm:$0xff]  ;;  %v7259_v56 = vld [vmem:[#allocation65_spill] sm:$0xff] }
 0x3e0   :  { %2581 = vmatprep.subr.bf16.mxu1 %v7249_v33  ;;  %2622 = vmatprep.subr.bf16.mxu0 %v7250_v54  ;;  %v7260_v33 = vld [vmem:[#allocation96_spill] sm:$0xff]  ;;  %v7261_v54 = vld [vmem:[#allocation67_spill] sm:$0xff] }
 0x3e3   :  { %2582 = vmatpush1.bf16.msra.mxu1 %v7251_v4  ;;  %2623 = vmatpush1.bf16.msra.mxu0 %v7252_v21  ;;  %v7262_v4 = vld [vmem:[#allocation98_spill] sm:$0xff] }
 0x3e4   :  { %2583 = vmatprep.subr.bf16.mxu1 %v7253_v32  ;;  %2624 = vmatprep.subr.bf16.mxu0 %v7254_v7 }
 0x3e7   :  { %2584 = vmatpush1.bf16.msra.mxu1 %v7255_v62  ;;  %2625 = vmatpush1.bf16.msra.mxu0 %v7256_v9 }
 0x3e8   :  { %2585 = vmatprep.subr.bf16.mxu1 %v7257_v25  ;;  %2626 = vmatprep.subr.bf16.mxu0 %v7258_v13 }
 0x3eb   :  { %2586 = vmatpush1.bf16.msra.mxu1 %v7259_v56  ;;  %2627 = vmatpush1.bf16.msra.mxu0 %v7260_v33 }
 0x3ec   :  { %2637 = vmatprep.subr.bf16.mxu1 %v7261_v54  ;;  %2678 = vmatprep.subr.bf16.mxu0 %v7262_v4 }
 0x441   :  { %v2345_v21 = vpop.f32.mrb[48].mxu1  ;;  %v2386_v32 = vpop.f32.mrb[64].mxu0 }
 0x442   :  { %v2475_v7 = vadd.f32 %v2345_v21, %v7263_v34  ;;  %v2477_v62 = vadd.f32 %v2386_v32, %v7264_v15  ;;  %v2347_v11 = vpop.f32.mrb[49].mxu1  ;;  %v2388_v9 = vpop.f32.mrb[65].mxu0 }
 0x443   :  { %v2476_v25 = vadd.f32 %v2347_v11, %v7265_v29  ;;  %v2478_v13 = vadd.f32 %v2388_v9, %v7266_v30  ;;  %v2349_v60 = vpop.f32.mrb[50].mxu1  ;;  %v2390_v56 = vpop.f32.mrb[66].mxu0 }
 0x444   :  { %v3998_v50 = vmul.f32 -1.442695, %v2477_v62  ;;  %v2350_v33 = vpop.f32.mrb[51].mxu1  ;;  %v2391_v27 = vpop.f32.mrb[67].mxu0  ;;  %v3996_v60 = vmul.f32 -1.442695, %v2475_v7 }
 0x445   :  { %v3999_v54 = vmul.f32 -1.442695, %v2478_v13  ;;  %v3997_v11 = vmul.f32 -1.442695, %v2476_v25  ;;  %v7270_v7 = vld [vmem:[#allocation181_spill] sm:$0xff] }
 0x446   :  { %4117 = vpow2.f32 %v3998_v50 }
 0x447   :  { %4119 = vpow2.f32 %v3999_v54 }
 0x450   :  { %v4118_v4 = vpop.eup %4117 }
 0x451   :  { %v2501_v35 = vadd.f32 1.0, %v4118_v4  ;;  %v4120_v51 = vpop.eup %4119  ;;  %v7268_v4 = vld [vmem:[#allocation179_spill] sm:$0xff] }
 0x452   :  { %v2502_v34 = vadd.f32 1.0, %v4120_v51 }
 0x453   :  { %4121 = vrcp.f32 %v2501_v35  ;;  %v7267_v35 = vld [vmem:[#allocation177_spill] sm:$0xff] }
 0x454   :  { %4123 = vrcp.f32 %v2502_v34  ;;  %v7269_v34 = vld [vmem:[#allocation178_spill] sm:$0xff] }
 0x455   :  { %4125 = vpow2.f32 %v3996_v60 }
 0x456   :  { %4127 = vpow2.f32 %v3997_v11 }
 0x45d   :  { %v4122_v15 = vpop.eup %4121 }
 0x45e   :  { %v2521_v32 = vmul.f32 %v4122_v15, %v5539_v17  ;;  %v4124_v29 = vpop.eup %4123 }
 0x45f   :  { %v2522_v30 = vmul.f32 %v4124_v29, %v5543_v24  ;;  %v4126_v27 = vpop.eup %4125 }
 0x460   :  { %v4128_v13 = vpop.eup %4127  ;;  %v2489_v50 = vadd.f32 1.0, %v4126_v27 }
 0x461   :  { %v2490_v56 = vadd.f32 1.0, %v4128_v13 }
 0x462   :  { %4129 = vrcp.f32 %v2489_v50 }
 0x463   :  { %4131 = vrcp.f32 %v2490_v56 }
 0x46c   :  { %v4130_v50 = vpop.eup %4129 }
 0x481   :  { %v2427_v33 = vpop.f32.mrb[52].mxu1  ;;  %v2468_v54 = vpop.f32.mrb[68].mxu0 }
 0x482   :  { %v2479_v51 = vadd.f32 %v2427_v33, %v7267_v35  ;;  %v2481_v21 = vadd.f32 %v2468_v54, %v7268_v4  ;;  %v2429_v62 = vpop.f32.mrb[53].mxu1  ;;  %v2470_v9 = vpop.f32.mrb[69].mxu0 }
 0x483   :  { %v2480_v15 = vadd.f32 %v2429_v62, %v7269_v34  ;;  %v2482_v25 = vadd.f32 %v2470_v9, %v7270_v7  ;;  %v2431_v29 = vpop.f32.mrb[54].mxu1  ;;  %v2472_v60 = vpop.f32.mrb[70].mxu0  ;;  %v7271_v7 = vld [vmem:[#allocation203_spill] sm:$0xff] }
 0x484   :  { %4133 = vtanh.f32 %v2479_v51  ;;  %v4000_v11 = vmul.f32 -1.442695, %v2481_v21  ;;  %v2432_v27 = vpop.f32.mrb[55].mxu1  ;;  %v2473_v13 = vpop.f32.mrb[71].mxu0  ;;  %vm2534_vm10 = vcmp.gt.f32.partialorder %v7271_v7, 0.0  ;;  %v7272_v29 = vld [vmem:[#allocation204_spill] sm:$0xff] }
 0x485   :  { %4135 = vtanh.f32 %v2480_v15  ;;  %v4001_v31 = vmul.f32 -1.442695, %v2482_v25  ;;  %v4132_v33 = vpop.eup %4131  ;;  %vm2535_vm11 = vcmp.gt.f32.partialorder %v7272_v29, 0.0  ;;  %vm2542_vm13 = vmpackc.low %vm2534_vm10, %vm2534_vm10  ;;  %v7284_v7 = vld [vmem:[#allocation115_spill] sm:$0xff]  ;;  %v7287_v29 = vld [vmem:[#allocation138_spill] sm:$0xff] }
 0x486   :  { %4137 = vpow2.f32 %v4000_v11  ;;  %vm2543_vm12 = vmpackc.low %vm2535_vm11, %vm2535_vm11 }
 0x487   :  { %4139 = vpow2.f32 %v4001_v31 }
 0x48e   :  { %v4134_v54 = vpop.eup %4133 }
 0x48f   :  { %v4136_v35 = vpop.eup %4135  ;;  %v2523_v4 = vmul.f32 %v4134_v54, %v4130_v50  ;;  %v7277_v54 = vld [vmem:[#allocation133_spill] sm:$0xff] }
 0x490   :  { %v4138_v56 = vpop.eup %4137  ;;  %v2524_v1 = vmul.f32 %v4136_v35, %v4132_v33  ;;  %v7276_v33 = vld [vmem:[#allocation107_spill] sm:$0xff]  ;;  %v7278_v35 = vld [vmem:[#allocation109_spill] sm:$0xff] }
 0x491   :  { %v4140_v62 = vpop.eup %4139  ;;  %v2525_v34 = vadd.f32 %v2523_v4, %v2521_v32  ;;  %v2515_v9 = vadd.f32 1.0, %v4138_v56  ;;  %v7279_v4 = vld [vmem:[#allocation134_spill] sm:$0xff]  ;;  %v7280_v56 = vld [vmem:[#allocation111_spill] sm:$0xff] }
 0x492   :  { %v2526_v51 = vadd.f32 %v2524_v1, %v2522_v30  ;;  %v2516_v21 = vadd.f32 1.0, %v4140_v62  ;;  %v7281_v62 = vld [vmem:[#allocation135_spill] sm:$0xff] }
 0x493   :  { %4141 = vtanh.f32 %v2525_v34  ;;  %v5722_v31 = vsel %vm2534_vm10, %v2525_v34, %v5539_v17  ;;  %v7282_v34 = vld [vmem:[#allocation113_spill] sm:$0xff] }
 0x494   :  { %4143 = vrcp.f32 %v2515_v9  ;;  %v5727_v15 = vsel %vm2535_vm11, %v2526_v51, %v5543_v24  ;;  %v7283_v9 = vld [vmem:[#allocation136_spill] sm:$0xff] }
 0x495   :  { %4145 = vtanh.f32 %v2526_v51  ;;  %v7285_v51 = vld [vmem:[#allocation137_spill] sm:$0xff] }
 0x496   :  { %4147 = vrcp.f32 %v2516_v21  ;;  %v7286_v21 = vld [vmem:[#allocation116_spill] sm:$0xff] }
 0x49d   :  { %v4142_v32 = vpop.eup %4141 }
 0x49e   :  { %v4144_v25 = vpop.eup %4143 }
 0x49f   :  { %v4146_v1 = vpop.eup %4145  ;;  %v2529_v30 = vmul.f32 %v4144_v25, %v4142_v32  ;;  %v7288_v32 = vld [vmem:[#allocation118_spill] sm:$0xff]  ;;  %v7289_v25 = vld [vmem:[#allocation139_spill] sm:$0xff] }
 0x4a0   :  { %v4148_v60 = vpop.eup %4147 }
 0x4a1   :  { %v2530_v11 = vmul.f32 %v4148_v60, %v4146_v1  ;;  %v5732_v27 = vsel %vm2534_vm10, %v2529_v30, %v5550_v19  ;;  %v2540_v17 = vpack.c.bf16 %v2529_v30, %v2529_v30  ;;  %v7290_v1 = vld [vmem:[#allocation120_spill] sm:$0xff]  ;;  %v7292_v60 = vld [vmem:[#allocation122_spill] sm:$0xff] }
 0x4a2   :  { %v7291_v30 = vld [vmem:[#allocation140_spill] sm:$0xff] }
 0x4a3   :  { %v2541_v13 = vpack.c.bf16 %v2530_v11, %v2530_v11  ;;  %v5737_v24 = vsel %vm2535_vm11, %v2530_v11, %v5557_v20  ;;  %v5751_v19 = vsel %vm2542_vm13, %v2540_v17, %v5571_v38  ;;  %v7273_v20 = vld [vmem:[#allocation131_spill] sm:$0xff]  ;;  %v7275_v38 = vld [vmem:[#allocation132_spill] sm:$0xff]  ;;  %v7293_v11 = vld [vmem:[#allocation141_spill] sm:$0xff] }
 0x4a4   :  { %v7294_v17 = vld [vmem:[#allocation124_spill] sm:$0xff] }
 0x4a5   :  { %v5746_v50 = vsel %vm2543_vm12, %v2541_v13, %v5566_v46  ;;  %v7274_v46 = vld [vmem:[#allocation105_spill] sm:$0xff]  ;;  %v7295_v13 = vld [vmem:[#allocation142_spill] sm:$0xff] }
 0x4a6   :  { %2587 = vmatprep.mubr.bf16.mxu1 %v5746_v50  ;;  %2628 = vmatprep.mubr.bf16.mxu0 %v5746_v50 }
 0x4a7   :  { %2588 = vmatmul.mubr.bf16.vlgmr.msra.gmra.mrb[56].mxu1 %v5751_v19  ;;  %2629 = vmatmul.mubr.bf16.vlgmr.msra.gmra.mrb[72].mxu0 %v5751_v19 }
 0x4a8   :  { %2638 = vmatpush1.bf16.msra.mxu1 %v7061_v45  ;;  %2679 = vmatpush1.bf16.msra.mxu0 %v7062_v57 }
 0x4a9   :  { %2669 = vmatprep.mubr.bf16.mxu1 %v5746_v50  ;;  %2710 = vmatprep.mubr.bf16.mxu0 %v5746_v50 }
 0x4aa   :  { %2639 = vmatprep.subr.bf16.mxu1 %v7063_v10  ;;  %2680 = vmatprep.subr.bf16.mxu0 %v7064_v47 }
 0x4ac   :  { %2640 = vmatpush1.bf16.msra.mxu1 %v7065_v8  ;;  %2681 = vmatpush1.bf16.msra.mxu0 %v7066_v5 }
 0x4ad   :  { %2641 = vmatprep.subr.bf16.mxu1 %v7067_v2  ;;  %2682 = vmatprep.subr.bf16.mxu0 %v7068_v26 }
 0x4b0   :  { %2642 = vmatpush1.bf16.msra.mxu1 %v7069_v61  ;;  %2683 = vmatpush1.bf16.msra.mxu0 %v7070_v55 }
 0x4b1   :  { %2643 = vmatprep.subr.bf16.mxu1 %v7071_v63  ;;  %2684 = vmatprep.subr.bf16.mxu0 %v7072_v37 }
 0x4b4   :  { %2644 = vmatpush1.bf16.msra.mxu1 %v7073_v36  ;;  %2685 = vmatpush1.bf16.msra.mxu0 %v7074_v41 }
 0x4b5   :  { %2645 = vmatprep.subr.bf16.mxu1 %v7075_v18  ;;  %2686 = vmatprep.subr.bf16.mxu0 %v7076_v23 }
 0x4b8   :  { %2646 = vmatpush1.bf16.msra.mxu1 %v7077_v53  ;;  %2687 = vmatpush1.bf16.msra.mxu0 %v4927_v44 }
 0x4b9   :  { %2647 = vmatprep.subr.bf16.mxu1 %v7078_v42  ;;  %2688 = vmatprep.subr.bf16.mxu0 %v7079_v58 }
 0x4bc   :  { %2648 = vmatpush1.bf16.msra.mxu1 %v7080_v48  ;;  %2689 = vmatpush1.bf16.msra.mxu0 %v7168_v3 }
 0x4bd   :  { %2649 = vmatprep.subr.bf16.mxu1 %v7081_v43  ;;  %2690 = vmatprep.subr.bf16.mxu0 %v7169_v39 }
 0x4c0   :  { %2650 = vmatpush1.bf16.msra.mxu1 %v7082_v6  ;;  %2691 = vmatpush1.bf16.msra.mxu0 %v7170_v22 }
 0x4c1   :  { %2651 = vmatprep.subr.bf16.mxu1 %v7083_v40  ;;  %2692 = vmatprep.subr.bf16.mxu0 %v7171_v49 }
 0x4c4   :  { %2652 = vmatpush1.bf16.msra.mxu1 %v7084_v52  ;;  %2693 = vmatpush1.bf16.msra.mxu0 %v7172_v16 }
 0x4c5   :  { %2653 = vmatprep.subr.bf16.mxu1 %v7085_v12  ;;  %2694 = vmatprep.subr.bf16.mxu0 %v7173_v59 }
 0x4c8   :  { %2654 = vmatpush1.bf16.msra.mxu1 %v7086_v0  ;;  %2695 = vmatpush1.bf16.msra.mxu0 %v7174_v28 }
 0x4c9   :  { %2655 = vmatprep.subr.bf16.mxu1 %v7087_v14  ;;  %2696 = vmatprep.subr.bf16.mxu0 %v7273_v20 }
 0x4cc   :  { %2656 = vmatpush1.bf16.msra.mxu1 %v7274_v46  ;;  %2697 = vmatpush1.bf16.msra.mxu0 %v7275_v38 }
 0x4cd   :  { %2657 = vmatprep.subr.bf16.mxu1 %v7276_v33  ;;  %2698 = vmatprep.subr.bf16.mxu0 %v7277_v54 }
 0x4d0   :  { %2658 = vmatpush1.bf16.msra.mxu1 %v7278_v35  ;;  %2699 = vmatpush1.bf16.msra.mxu0 %v7279_v4 }
 0x4d1   :  { %2659 = vmatprep.subr.bf16.mxu1 %v7280_v56  ;;  %2700 = vmatprep.subr.bf16.mxu0 %v7281_v62  ;;  %v7368_v62 = vld [vmem:[#allocation154_spill] sm:$0xff]  ;;  %v7369_v56 = vld [vmem:[#allocation156_spill] sm:$0xff] }
 0x4d4   :  { %2660 = vmatpush1.bf16.msra.mxu1 %v7282_v34  ;;  %2701 = vmatpush1.bf16.msra.mxu0 %v7283_v9  ;;  %v7367_v9 = vld [vmem:[#allocation155_spill] sm:$0xff] }
 0x4d5   :  { %2661 = vmatprep.subr.bf16.mxu1 %v7284_v7  ;;  %2702 = vmatprep.subr.bf16.mxu0 %v7285_v51  ;;  %v7296_v51 = vld [vmem:[#allocation126_spill] sm:$0xff]  ;;  %v7366_v7 = vld [vmem:[#allocation152_spill] sm:$0xff] }
 0x4d8   :  { %2662 = vmatpush1.bf16.msra.mxu1 %v7286_v21  ;;  %2703 = vmatpush1.bf16.msra.mxu0 %v7287_v29  ;;  %v7297_v21 = vld [vmem:[#allocation143_spill] sm:$0xff]  ;;  %v7298_v29 = vld [vmem:[#allocation128_spill] sm:$0xff] }
 0x4d9   :  { %2663 = vmatprep.subr.bf16.mxu1 %v7288_v32  ;;  %2704 = vmatprep.subr.bf16.mxu0 %v7289_v25  ;;  %v7299_v32 = vld [vmem:[#allocation144_spill] sm:$0xff]  ;;  %v7300_v25 = vld [vmem:[#allocation18_spill] sm:$0xff] }
 0x4dc   :  { %2664 = vmatpush1.bf16.msra.mxu1 %v7290_v1  ;;  %2705 = vmatpush1.bf16.msra.mxu0 %v7291_v30  ;;  %v7301_v1 = vld [vmem:[#allocation21_spill] sm:$0xff] }
 0x4dd   :  { %2665 = vmatprep.subr.bf16.mxu1 %v7292_v60  ;;  %2706 = vmatprep.subr.bf16.mxu0 %v7293_v11  ;;  %v7302_v11 = vld [vmem:[#allocation19_spill] sm:$0xff]  ;;  %v7311_v60 = vld [vmem:[#allocation44_spill] sm:$0xff]  ;;  %v7312_v30 = vld [vmem:[#allocation25_spill] sm:$0xff] }
 0x4e0   :  { %2666 = vmatpush1.bf16.msra.mxu1 %v7294_v17  ;;  %2707 = vmatpush1.bf16.msra.mxu0 %v7295_v13  ;;  %v7303_v17 = vld [vmem:[#allocation36_spill] sm:$0xff] }
 0x4e1   :  { %2667 = vmatprep.subr.bf16.mxu1 %v7296_v51  ;;  %2708 = vmatprep.subr.bf16.mxu0 %v7297_v21  ;;  %v7304_v13 = vld [vmem:[#allocation20_spill] sm:$0xff]  ;;  %v7305_v51 = vld [vmem:[#allocation38_spill] sm:$0xff] }
 0x4e2   :  { %v7306_v21 = vld [vmem:[#allocation22_spill] sm:$0xff] }
 0x4e4   :  { %2668 = vmatpush1.bf16.msra.mxu1 %v7298_v29  ;;  %2709 = vmatpush1.bf16.msra.mxu0 %v7299_v32  ;;  %v7307_v29 = vld [vmem:[#allocation40_spill] sm:$0xff]  ;;  %v7308_v32 = vld [vmem:[#allocation23_spill] sm:$0xff] }
 0x4e5   :  { %2799 = vmatprep.subr.bf16.mxu1 %v7300_v25  ;;  %2840 = vmatprep.subr.bf16.mxu0 %v7301_v1  ;;  %v7309_v25 = vld [vmem:[#allocation42_spill] sm:$0xff]  ;;  %v7310_v1 = vld [vmem:[#allocation24_spill] sm:$0xff] }
 0x4e7   :  { %2670 = vmatmul.mubr.bf16.vlgmr.msra.gmra.mrb[60].mxu1 %v5751_v19  ;;  %2711 = vmatmul.mubr.bf16.vlgmr.msra.gmra.mrb[76].mxu0 %v5751_v19 }
 0x4e8   :  { %2800 = vmatpush1.bf16.msra.mxu1 %v7302_v11  ;;  %2841 = vmatpush1.bf16.msra.mxu0 %v7303_v17  ;;  %v7313_v11 = vld [vmem:[#allocation46_spill] sm:$0xff] }
 0x4e9   :  { %2801 = vmatprep.subr.bf16.mxu1 %v7304_v13  ;;  %2842 = vmatprep.subr.bf16.mxu0 %v7305_v51  ;;  %v7314_v17 = vld [vmem:[#allocation26_spill] sm:$0xff]  ;;  %v7315_v13 = vld [vmem:[#allocation48_spill] sm:$0xff]  ;;  %v7316_v51 = vld [vmem:[#allocation27_spill] sm:$0xff] }
 0x4ec   :  { %2802 = vmatpush1.bf16.msra.mxu1 %v7306_v21  ;;  %2843 = vmatpush1.bf16.msra.mxu0 %v7307_v29  ;;  %v7317_v21 = vld [vmem:[#allocation50_spill] sm:$0xff]  ;;  %v7318_v29 = vld [vmem:[#allocation28_spill] sm:$0xff] }
 0x4ed   :  { %2803 = vmatprep.subr.bf16.mxu1 %v7308_v32  ;;  %2844 = vmatprep.subr.bf16.mxu0 %v7309_v25  ;;  %v7319_v32 = vld [vmem:[#allocation52_spill] sm:$0xff]  ;;  %v7320_v25 = vld [vmem:[#allocation29_spill] sm:$0xff] }
 0x4f0   :  { %2804 = vmatpush1.bf16.msra.mxu1 %v7310_v1  ;;  %2845 = vmatpush1.bf16.msra.mxu0 %v7311_v60  ;;  %v7321_v1 = vld [vmem:[#allocation54_spill] sm:$0xff] }
 0x4f1   :  { %2805 = vmatprep.subr.bf16.mxu1 %v7312_v30  ;;  %2846 = vmatprep.subr.bf16.mxu0 %v7313_v11  ;;  %v7322_v60 = vld [vmem:[#allocation30_spill] sm:$0xff]  ;;  %v7323_v30 = vld [vmem:[#allocation56_spill] sm:$0xff]  ;;  %v7324_v11 = vld [vmem:[#allocation31_spill] sm:$0xff] }
 0x4f4   :  { %2806 = vmatpush1.bf16.msra.mxu1 %v7314_v17  ;;  %2847 = vmatpush1.bf16.msra.mxu0 %v7315_v13  ;;  %v7325_v17 = vld [vmem:[#allocation58_spill] sm:$0xff]  ;;  %v7326_v13 = vld [vmem:[#allocation32_spill] sm:$0xff] }
 0x4f5   :  { %2807 = vmatprep.subr.bf16.mxu1 %v7316_v51  ;;  %2848 = vmatprep.subr.bf16.mxu0 %v7317_v21  ;;  %v7327_v51 = vld [vmem:[#allocation60_spill] sm:$0xff]  ;;  %v7328_v21 = vld [vmem:[#allocation33_spill] sm:$0xff] }
 0x4f8   :  { %2808 = vmatpush1.bf16.msra.mxu1 %v7318_v29  ;;  %2849 = vmatpush1.bf16.msra.mxu0 %v7319_v32  ;;  %v7329_v29 = vld [vmem:[#allocation62_spill] sm:$0xff] }
 0x4f9   :  { %2809 = vmatprep.subr.bf16.mxu1 %v7320_v25  ;;  %2850 = vmatprep.subr.bf16.mxu0 %v7321_v1  ;;  %v7330_v32 = vld [vmem:[#allocation34_spill] sm:$0xff]  ;;  %v7331_v25 = vld [vmem:[#allocation64_spill] sm:$0xff]  ;;  %v7332_v1 = vld [vmem:[#allocation35_spill] sm:$0xff] }
 0x4fc   :  { %2810 = vmatpush1.bf16.msra.mxu1 %v7322_v60  ;;  %2851 = vmatpush1.bf16.msra.mxu0 %v7323_v30  ;;  %v7333_v60 = vld [vmem:[#allocation66_spill] sm:$0xff]  ;;  %v7334_v30 = vld [vmem:[#allocation37_spill] sm:$0xff] }
 0x4fd   :  { %2811 = vmatprep.subr.bf16.mxu1 %v7324_v11  ;;  %2852 = vmatprep.subr.bf16.mxu0 %v7325_v17  ;;  %v7335_v11 = vld [vmem:[#allocation68_spill] sm:$0xff]  ;;  %v7336_v17 = vld [vmem:[#allocation39_spill] sm:$0xff] }
 0x500   :  { %2812 = vmatpush1.bf16.msra.mxu1 %v7326_v13  ;;  %2853 = vmatpush1.bf16.msra.mxu0 %v7327_v51  ;;  %v7337_v13 = vld [vmem:[#allocation70_spill] sm:$0xff]  ;;  %v7338_v51 = vld [vmem:[#allocation41_spill] sm:$0xff] }
 0x501   :  { %2813 = vmatprep.subr.bf16.mxu1 %v7328_v21  ;;  %2854 = vmatprep.subr.bf16.mxu0 %v7329_v29  ;;  %v7339_v21 = vld [vmem:[#allocation72_spill] sm:$0xff]  ;;  %v7340_v29 = vld [vmem:[#allocation43_spill] sm:$0xff] }
 0x504   :  { %2814 = vmatpush1.bf16.msra.mxu1 %v7330_v32  ;;  %2855 = vmatpush1.bf16.msra.mxu0 %v7331_v25  ;;  %v7341_v32 = vld [vmem:[#allocation74_spill] sm:$0xff]  ;;  %v7342_v25 = vld [vmem:[#allocation45_spill] sm:$0xff] }
 0x505   :  { %2815 = vmatprep.subr.bf16.mxu1 %v7332_v1  ;;  %2856 = vmatprep.subr.bf16.mxu0 %v7333_v60  ;;  %v7343_v1 = vld [vmem:[#allocation76_spill] sm:$0xff]  ;;  %v7344_v60 = vld [vmem:[#allocation47_spill] sm:$0xff] }
 0x508   :  { %2816 = vmatpush1.bf16.msra.mxu1 %v7334_v30  ;;  %2857 = vmatpush1.bf16.msra.mxu0 %v7335_v11  ;;  %v7345_v30 = vld [vmem:[#allocation78_spill] sm:$0xff]  ;;  %v7346_v11 = vld [vmem:[#allocation49_spill] sm:$0xff] }
 0x509   :  { %2817 = vmatprep.subr.bf16.mxu1 %v7336_v17  ;;  %2858 = vmatprep.subr.bf16.mxu0 %v7337_v13  ;;  %v7347_v17 = vld [vmem:[#allocation80_spill] sm:$0xff]  ;;  %v7348_v13 = vld [vmem:[#allocation51_spill] sm:$0xff] }
 0x50c   :  { %2818 = vmatpush1.bf16.msra.mxu1 %v7338_v51  ;;  %2859 = vmatpush1.bf16.msra.mxu0 %v7339_v21  ;;  %v7349_v51 = vld [vmem:[#allocation82_spill] sm:$0xff]  ;;  %v7350_v21 = vld [vmem:[#allocation53_spill] sm:$0xff] }
 0x50d   :  { %2819 = vmatprep.subr.bf16.mxu1 %v7340_v29  ;;  %2860 = vmatprep.subr.bf16.mxu0 %v7341_v32  ;;  %v7351_v29 = vld [vmem:[#allocation84_spill] sm:$0xff]  ;;  %v7352_v32 = vld [vmem:[#allocation55_spill] sm:$0xff] }
 0x510   :  { %2820 = vmatpush1.bf16.msra.mxu1 %v7342_v25  ;;  %2861 = vmatpush1.bf16.msra.mxu0 %v7343_v1  ;;  %v7353_v25 = vld [vmem:[#allocation86_spill] sm:$0xff]  ;;  %v7354_v1 = vld [vmem:[#allocation57_spill] sm:$0xff] }
 0x511   :  { %2821 = vmatprep.subr.bf16.mxu1 %v7344_v60  ;;  %2862 = vmatprep.subr.bf16.mxu0 %v7345_v30  ;;  %v7355_v60 = vld [vmem:[#allocation88_spill] sm:$0xff]  ;;  %v7356_v30 = vld [vmem:[#allocation59_spill] sm:$0xff] }
 0x514   :  { %2822 = vmatpush1.bf16.msra.mxu1 %v7346_v11  ;;  %2863 = vmatpush1.bf16.msra.mxu0 %v7347_v17  ;;  %v7357_v11 = vld [vmem:[#allocation90_spill] sm:$0xff]  ;;  %v7358_v17 = vld [vmem:[#allocation61_spill] sm:$0xff] }
 0x515   :  { %2823 = vmatprep.subr.bf16.mxu1 %v7348_v13  ;;  %2864 = vmatprep.subr.bf16.mxu0 %v7349_v51  ;;  %v7359_v13 = vld [vmem:[#allocation92_spill] sm:$0xff]  ;;  %v7360_v51 = vld [vmem:[#allocation63_spill] sm:$0xff] }
 0x518   :  { %2824 = vmatpush1.bf16.msra.mxu1 %v7350_v21  ;;  %2865 = vmatpush1.bf16.msra.mxu0 %v7351_v29  ;;  %v7361_v21 = vld [vmem:[#allocation94_spill] sm:$0xff]  ;;  %v7362_v29 = vld [vmem:[#allocation65_spill] sm:$0xff] }
 0x519   :  { %2825 = vmatprep.subr.bf16.mxu1 %v7352_v32  ;;  %2866 = vmatprep.subr.bf16.mxu0 %v7353_v25  ;;  %v7363_v32 = vld [vmem:[#allocation96_spill] sm:$0xff]  ;;  %v7364_v25 = vld [vmem:[#allocation67_spill] sm:$0xff] }
 0x51c   :  { %2826 = vmatpush1.bf16.msra.mxu1 %v7354_v1  ;;  %2867 = vmatpush1.bf16.msra.mxu0 %v7355_v60  ;;  %v7365_v1 = vld [vmem:[#allocation98_spill] sm:$0xff] }
 0x51d   :  { %2827 = vmatprep.subr.bf16.mxu1 %v7356_v30  ;;  %2868 = vmatprep.subr.bf16.mxu0 %v7357_v11 }
 0x520   :  { %2828 = vmatpush1.bf16.msra.mxu1 %v7358_v17  ;;  %2869 = vmatpush1.bf16.msra.mxu0 %v7359_v13 }
 0x521   :  { %2829 = vmatprep.subr.bf16.mxu1 %v7360_v51  ;;  %2870 = vmatprep.subr.bf16.mxu0 %v7361_v21 }
 0x524   :  { %2830 = vmatpush1.bf16.msra.mxu1 %v7362_v29  ;;  %2871 = vmatpush1.bf16.msra.mxu0 %v7363_v32 }
 0x525   :  { %2881 = vmatprep.subr.bf16.mxu1 %v7364_v25  ;;  %2922 = vmatprep.subr.bf16.mxu0 %v7365_v1 }
 0x57a   :  { %v2589_v60 = vpop.f32.mrb[56].mxu1  ;;  %v2630_v30 = vpop.f32.mrb[72].mxu0 }
 0x57b   :  { %v2719_v11 = vadd.f32 %v2589_v60, %v7366_v7  ;;  %v2721_v17 = vadd.f32 %v2630_v30, %v7367_v9  ;;  %v2591_v34 = vpop.f32.mrb[57].mxu1  ;;  %v2632_v13 = vpop.f32.mrb[73].mxu0 }
 0x57c   :  { %v2720_v51 = vadd.f32 %v2591_v34, %v7368_v62  ;;  %v2722_v21 = vadd.f32 %v2632_v13, %v7369_v56  ;;  %v2593_v4 = vpop.f32.mrb[58].mxu1  ;;  %v2634_v29 = vpop.f32.mrb[74].mxu0 }
 0x57d   :  { %v4004_v35 = vmul.f32 -1.442695, %v2721_v17  ;;  %v2594_v32 = vpop.f32.mrb[59].mxu1  ;;  %v2635_v54 = vpop.f32.mrb[75].mxu0  ;;  %v4002_v4 = vmul.f32 -1.442695, %v2719_v11 }
 0x57e   :  { %v4005_v25 = vmul.f32 -1.442695, %v2722_v21  ;;  %v4003_v34 = vmul.f32 -1.442695, %v2720_v51  ;;  %v7373_v11 = vld [vmem:[#allocation184_spill] sm:$0xff] }
 0x57f   :  { %4149 = vpow2.f32 %v4004_v35 }
 0x580   :  { %4151 = vpow2.f32 %v4005_v25 }
 0x589   :  { %v4150_v1 = vpop.eup %4149 }
 0x58a   :  { %v2745_v33 = vadd.f32 1.0, %v4150_v1  ;;  %v4152_v38 = vpop.eup %4151  ;;  %v7371_v1 = vld [vmem:[#allocation183_spill] sm:$0xff] }
 0x58b   :  { %v2746_v7 = vadd.f32 1.0, %v4152_v38 }
 0x58c   :  { %4153 = vrcp.f32 %v2745_v33  ;;  %v7370_v33 = vld [vmem:[#allocation180_spill] sm:$0xff] }
 0x58d   :  { %4155 = vrcp.f32 %v2746_v7  ;;  %v7372_v7 = vld [vmem:[#allocation182_spill] sm:$0xff] }
 0x58e   :  { %4157 = vpow2.f32 %v4002_v4 }
 0x58f   :  { %4159 = vpow2.f32 %v4003_v34 }
 0x596   :  { %v4154_v9 = vpop.eup %4153 }
 0x597   :  { %v2765_v30 = vmul.f32 %v4154_v9, %v5722_v31  ;;  %v4156_v62 = vpop.eup %4155 }
 0x598   :  { %v2766_v56 = vmul.f32 %v4156_v62, %v5727_v15  ;;  %v4158_v54 = vpop.eup %4157 }
 0x599   :  { %v4160_v21 = vpop.eup %4159  ;;  %v2733_v35 = vadd.f32 1.0, %v4158_v54 }
 0x59a   :  { %v2734_v29 = vadd.f32 1.0, %v4160_v21 }
 0x59b   :  { %4161 = vrcp.f32 %v2733_v35 }
 0x59c   :  { %4163 = vrcp.f32 %v2734_v29 }
 0x5a5   :  { %v4162_v35 = vpop.eup %4161 }
 0x5ba   :  { %v2671_v32 = vpop.f32.mrb[60].mxu1  ;;  %v2712_v25 = vpop.f32.mrb[76].mxu0 }
 0x5bb   :  { %v2723_v38 = vadd.f32 %v2671_v32, %v7370_v33  ;;  %v2725_v60 = vadd.f32 %v2712_v25, %v7371_v1  ;;  %v2673_v17 = vpop.f32.mrb[61].mxu1  ;;  %v2714_v13 = vpop.f32.mrb[77].mxu0 }
 0x5bc   :  { %v2724_v9 = vadd.f32 %v2673_v17, %v7372_v7  ;;  %v2726_v51 = vadd.f32 %v2714_v13, %v7373_v11  ;;  %v2675_v62 = vpop.f32.mrb[62].mxu1  ;;  %v2716_v4 = vpop.f32.mrb[78].mxu0  ;;  %v7374_v11 = vld [vmem:[#allocation205_spill] sm:$0xff] }
 0x5bd   :  { %4165 = vtanh.f32 %v2723_v38  ;;  %v4006_v34 = vmul.f32 -1.442695, %v2725_v60  ;;  %v2676_v54 = vpop.f32.mrb[63].mxu1  ;;  %v2717_v21 = vpop.f32.mrb[79].mxu0  ;;  %vm2778_vm14 = vcmp.gt.f32.partialorder %v7374_v11, 0.0  ;;  %v7375_v62 = vld [vmem:[#allocation206_spill] sm:$0xff] }
 0x5be   :  { %4167 = vtanh.f32 %v2724_v9  ;;  %v4007_v46 = vmul.f32 -1.442695, %v2726_v51  ;;  %v4164_v32 = vpop.eup %4163  ;;  %vm2779_vm15 = vcmp.gt.f32.partialorder %v7375_v62, 0.0  ;;  %vm2786_vm1 = vmpackc.low %vm2778_vm14, %vm2778_vm14  ;;  %v7387_v11 = vld [vmem:[#allocation115_spill] sm:$0xff]  ;;  %v7390_v62 = vld [vmem:[#allocation138_spill] sm:$0xff] }
 0x5bf   :  { %4169 = vpow2.f32 %v4006_v34  ;;  %vm2787_vm0 = vmpackc.low %vm2779_vm15, %vm2779_vm15 }
 0x5c0   :  { %4171 = vpow2.f32 %v4007_v46 }
 0x5c7   :  { %v4166_v25 = vpop.eup %4165 }
 0x5c8   :  { %v4168_v33 = vpop.eup %4167  ;;  %v2767_v1 = vmul.f32 %v4166_v25, %v4162_v35  ;;  %v7380_v25 = vld [vmem:[#allocation133_spill] sm:$0xff] }
 0x5c9   :  { %v4170_v29 = vpop.eup %4169  ;;  %v2768_v20 = vmul.f32 %v4168_v33, %v4164_v32  ;;  %v7379_v32 = vld [vmem:[#allocation107_spill] sm:$0xff]  ;;  %v7381_v33 = vld [vmem:[#allocation109_spill] sm:$0xff] }
 0x5ca   :  { %v4172_v17 = vpop.eup %4171  ;;  %v2769_v7 = vadd.f32 %v2767_v1, %v2765_v30  ;;  %v2759_v13 = vadd.f32 1.0, %v4170_v29  ;;  %v7382_v1 = vld [vmem:[#allocation134_spill] sm:$0xff]  ;;  %v7383_v29 = vld [vmem:[#allocation111_spill] sm:$0xff] }
 0x5cb   :  { %v2770_v38 = vadd.f32 %v2768_v20, %v2766_v56  ;;  %v2760_v60 = vadd.f32 1.0, %v4172_v17  ;;  %v7384_v17 = vld [vmem:[#allocation135_spill] sm:$0xff] }
 0x5cc   :  { %4173 = vtanh.f32 %v2769_v7  ;;  %v5902_v46 = vsel %vm2778_vm14, %v2769_v7, %v5722_v31  ;;  %v7385_v7 = vld [vmem:[#allocation113_spill] sm:$0xff] }
 0x5cd   :  { %4175 = vrcp.f32 %v2759_v13  ;;  %v5907_v9 = vsel %vm2779_vm15, %v2770_v38, %v5727_v15  ;;  %v7386_v13 = vld [vmem:[#allocation136_spill] sm:$0xff] }
 0x5ce   :  { %4177 = vtanh.f32 %v2770_v38  ;;  %v7388_v38 = vld [vmem:[#allocation137_spill] sm:$0xff] }
 0x5cf   :  { %4179 = vrcp.f32 %v2760_v60  ;;  %v7389_v60 = vld [vmem:[#allocation116_spill] sm:$0xff] }
 0x5d6   :  { %v4174_v30 = vpop.eup %4173 }
 0x5d7   :  { %v4176_v51 = vpop.eup %4175 }
 0x5d8   :  { %v4178_v20 = vpop.eup %4177  ;;  %v2773_v56 = vmul.f32 %v4176_v51, %v4174_v30  ;;  %v7391_v30 = vld [vmem:[#allocation118_spill] sm:$0xff]  ;;  %v7392_v51 = vld [vmem:[#allocation139_spill] sm:$0xff] }
 0x5d9   :  { %v4180_v4 = vpop.eup %4179 }
 0x5da   :  { %v2774_v34 = vmul.f32 %v4180_v4, %v4178_v20  ;;  %v5912_v54 = vsel %vm2778_vm14, %v2773_v56, %v5732_v27  ;;  %v2784_v31 = vpack.c.bf16 %v2773_v56, %v2773_v56  ;;  %v7393_v20 = vld [vmem:[#allocation120_spill] sm:$0xff]  ;;  %v7395_v4 = vld [vmem:[#allocation122_spill] sm:$0xff] }
 0x5db   :  { %v7394_v56 = vld [vmem:[#allocation140_spill] sm:$0xff] }
 0x5dc   :  { %v2785_v21 = vpack.c.bf16 %v2774_v34, %v2774_v34  ;;  %v5917_v15 = vsel %vm2779_vm15, %v2774_v34, %v5737_v24  ;;  %v5931_v27 = vsel %vm2786_vm1, %v2784_v31, %v5751_v19  ;;  %v7376_v24 = vld [vmem:[#allocation131_spill] sm:$0xff]  ;;  %v7378_v19 = vld [vmem:[#allocation132_spill] sm:$0xff]  ;;  %v7396_v34 = vld [vmem:[#allocation141_spill] sm:$0xff] }
 0x5dd   :  { %v7397_v31 = vld [vmem:[#allocation124_spill] sm:$0xff] }
 0x5de   :  { %v5926_v35 = vsel %vm2787_vm0, %v2785_v21, %v5746_v50  ;;  %v7377_v50 = vld [vmem:[#allocation105_spill] sm:$0xff]  ;;  %v7398_v21 = vld [vmem:[#allocation142_spill] sm:$0xff] }
 0x5df   :  { %2831 = vmatprep.mubr.bf16.mxu1 %v5926_v35  ;;  %2872 = vmatprep.mubr.bf16.mxu0 %v5926_v35 }
 0x5e0   :  { %2832 = vmatmul.mubr.bf16.vlgmr.msra.gmra.mrb[64].mxu1 %v5931_v27  ;;  %2873 = vmatmul.mubr.bf16.vlgmr.msra.gmra.mrb[80].mxu0 %v5931_v27 }
 0x5e1   :  { %2882 = vmatpush1.bf16.msra.mxu1 %v7061_v45  ;;  %2923 = vmatpush1.bf16.msra.mxu0 %v7062_v57 }
 0x5e2   :  { %2913 = vmatprep.mubr.bf16.mxu1 %v5926_v35  ;;  %2954 = vmatprep.mubr.bf16.mxu0 %v5926_v35 }
 0x5e3   :  { %2883 = vmatprep.subr.bf16.mxu1 %v7063_v10  ;;  %2924 = vmatprep.subr.bf16.mxu0 %v7064_v47 }
 0x5e5   :  { %2884 = vmatpush1.bf16.msra.mxu1 %v7065_v8  ;;  %2925 = vmatpush1.bf16.msra.mxu0 %v7066_v5 }
 0x5e6   :  { %2885 = vmatprep.subr.bf16.mxu1 %v7067_v2  ;;  %2926 = vmatprep.subr.bf16.mxu0 %v7068_v26 }
 0x5e9   :  { %2886 = vmatpush1.bf16.msra.mxu1 %v7069_v61  ;;  %2927 = vmatpush1.bf16.msra.mxu0 %v7070_v55 }
 0x5ea   :  { %2887 = vmatprep.subr.bf16.mxu1 %v7071_v63  ;;  %2928 = vmatprep.subr.bf16.mxu0 %v7072_v37 }
 0x5ed   :  { %2888 = vmatpush1.bf16.msra.mxu1 %v7073_v36  ;;  %2929 = vmatpush1.bf16.msra.mxu0 %v7074_v41 }
 0x5ee   :  { %2889 = vmatprep.subr.bf16.mxu1 %v7075_v18  ;;  %2930 = vmatprep.subr.bf16.mxu0 %v7076_v23 }
 0x5f1   :  { %2890 = vmatpush1.bf16.msra.mxu1 %v7077_v53  ;;  %2931 = vmatpush1.bf16.msra.mxu0 %v4927_v44 }
 0x5f2   :  { %2891 = vmatprep.subr.bf16.mxu1 %v7078_v42  ;;  %2932 = vmatprep.subr.bf16.mxu0 %v7079_v58 }
 0x5f5   :  { %2892 = vmatpush1.bf16.msra.mxu1 %v7080_v48  ;;  %2933 = vmatpush1.bf16.msra.mxu0 %v7168_v3 }
 0x5f6   :  { %2893 = vmatprep.subr.bf16.mxu1 %v7081_v43  ;;  %2934 = vmatprep.subr.bf16.mxu0 %v7169_v39 }
 0x5f9   :  { %2894 = vmatpush1.bf16.msra.mxu1 %v7082_v6  ;;  %2935 = vmatpush1.bf16.msra.mxu0 %v7170_v22 }
 0x5fa   :  { %2895 = vmatprep.subr.bf16.mxu1 %v7083_v40  ;;  %2936 = vmatprep.subr.bf16.mxu0 %v7171_v49 }
 0x5fd   :  { %2896 = vmatpush1.bf16.msra.mxu1 %v7084_v52  ;;  %2937 = vmatpush1.bf16.msra.mxu0 %v7172_v16 }
 0x5fe   :  { %2897 = vmatprep.subr.bf16.mxu1 %v7085_v12  ;;  %2938 = vmatprep.subr.bf16.mxu0 %v7173_v59 }
 0x601   :  { %2898 = vmatpush1.bf16.msra.mxu1 %v7086_v0  ;;  %2939 = vmatpush1.bf16.msra.mxu0 %v7174_v28 }
 0x602   :  { %2899 = vmatprep.subr.bf16.mxu1 %v7087_v14  ;;  %2940 = vmatprep.subr.bf16.mxu0 %v7376_v24 }
 0x605   :  { %2900 = vmatpush1.bf16.msra.mxu1 %v7377_v50  ;;  %2941 = vmatpush1.bf16.msra.mxu0 %v7378_v19 }
 0x606   :  { %2901 = vmatprep.subr.bf16.mxu1 %v7379_v32  ;;  %2942 = vmatprep.subr.bf16.mxu0 %v7380_v25 }
 0x609   :  { %2902 = vmatpush1.bf16.msra.mxu1 %v7381_v33  ;;  %2943 = vmatpush1.bf16.msra.mxu0 %v7382_v1 }
 0x60a   :  { %2903 = vmatprep.subr.bf16.mxu1 %v7383_v29  ;;  %2944 = vmatprep.subr.bf16.mxu0 %v7384_v17  ;;  %v7471_v17 = vld [vmem:[#allocation158_spill] sm:$0xff]  ;;  %v7472_v29 = vld [vmem:[#allocation161_spill] sm:$0xff] }
 0x60d   :  { %2904 = vmatpush1.bf16.msra.mxu1 %v7385_v7  ;;  %2945 = vmatpush1.bf16.msra.mxu0 %v7386_v13  ;;  %v7470_v13 = vld [vmem:[#allocation159_spill] sm:$0xff] }
 0x60e   :  { %2905 = vmatprep.subr.bf16.mxu1 %v7387_v11  ;;  %2946 = vmatprep.subr.bf16.mxu0 %v7388_v38  ;;  %v7399_v38 = vld [vmem:[#allocation126_spill] sm:$0xff]  ;;  %v7469_v11 = vld [vmem:[#allocation157_spill] sm:$0xff] }
 0x611   :  { %2906 = vmatpush1.bf16.msra.mxu1 %v7389_v60  ;;  %2947 = vmatpush1.bf16.msra.mxu0 %v7390_v62  ;;  %v7400_v60 = vld [vmem:[#allocation143_spill] sm:$0xff]  ;;  %v7401_v62 = vld [vmem:[#allocation128_spill] sm:$0xff] }
 0x612   :  { %2907 = vmatprep.subr.bf16.mxu1 %v7391_v30  ;;  %2948 = vmatprep.subr.bf16.mxu0 %v7392_v51  ;;  %v7402_v30 = vld [vmem:[#allocation144_spill] sm:$0xff]  ;;  %v7403_v51 = vld [vmem:[#allocation18_spill] sm:$0xff] }
 0x615   :  { %2908 = vmatpush1.bf16.msra.mxu1 %v7393_v20  ;;  %2949 = vmatpush1.bf16.msra.mxu0 %v7394_v56  ;;  %v7404_v20 = vld [vmem:[#allocation21_spill] sm:$0xff] }
 0x616   :  { %2909 = vmatprep.subr.bf16.mxu1 %v7395_v4  ;;  %2950 = vmatprep.subr.bf16.mxu0 %v7396_v34  ;;  %v7405_v34 = vld [vmem:[#allocation19_spill] sm:$0xff]  ;;  %v7414_v4 = vld [vmem:[#allocation44_spill] sm:$0xff]  ;;  %v7415_v56 = vld [vmem:[#allocation25_spill] sm:$0xff] }
 0x619   :  { %2910 = vmatpush1.bf16.msra.mxu1 %v7397_v31  ;;  %2951 = vmatpush1.bf16.msra.mxu0 %v7398_v21  ;;  %v7406_v31 = vld [vmem:[#allocation36_spill] sm:$0xff] }
 0x61a   :  { %2911 = vmatprep.subr.bf16.mxu1 %v7399_v38  ;;  %2952 = vmatprep.subr.bf16.mxu0 %v7400_v60  ;;  %v7407_v21 = vld [vmem:[#allocation20_spill] sm:$0xff]  ;;  %v7408_v38 = vld [vmem:[#allocation38_spill] sm:$0xff] }
 0x61b   :  { %v7409_v60 = vld [vmem:[#allocation22_spill] sm:$0xff] }
 0x61d   :  { %2912 = vmatpush1.bf16.msra.mxu1 %v7401_v62  ;;  %2953 = vmatpush1.bf16.msra.mxu0 %v7402_v30  ;;  %v7410_v62 = vld [vmem:[#allocation40_spill] sm:$0xff]  ;;  %v7411_v30 = vld [vmem:[#allocation23_spill] sm:$0xff] }
 0x61e   :  { %3043 = vmatprep.subr.bf16.mxu1 %v7403_v51  ;;  %3084 = vmatprep.subr.bf16.mxu0 %v7404_v20  ;;  %v7412_v51 = vld [vmem:[#allocation42_spill] sm:$0xff]  ;;  %v7413_v20 = vld [vmem:[#allocation24_spill] sm:$0xff] }
 0x620   :  { %2914 = vmatmul.mubr.bf16.vlgmr.msra.gmra.mrb[68].mxu1 %v5931_v27  ;;  %2955 = vmatmul.mubr.bf16.vlgmr.msra.gmra.mrb[84].mxu0 %v5931_v27 }
 0x621   :  { %3044 = vmatpush1.bf16.msra.mxu1 %v7405_v34  ;;  %3085 = vmatpush1.bf16.msra.mxu0 %v7406_v31  ;;  %v7416_v34 = vld [vmem:[#allocation46_spill] sm:$0xff] }
 0x622   :  { %3045 = vmatprep.subr.bf16.mxu1 %v7407_v21  ;;  %3086 = vmatprep.subr.bf16.mxu0 %v7408_v38  ;;  %v7417_v31 = vld [vmem:[#allocation26_spill] sm:$0xff]  ;;  %v7418_v21 = vld [vmem:[#allocation48_spill] sm:$0xff]  ;;  %v7419_v38 = vld [vmem:[#allocation27_spill] sm:$0xff] }
 0x625   :  { %3046 = vmatpush1.bf16.msra.mxu1 %v7409_v60  ;;  %3087 = vmatpush1.bf16.msra.mxu0 %v7410_v62  ;;  %v7420_v60 = vld [vmem:[#allocation50_spill] sm:$0xff]  ;;  %v7421_v62 = vld [vmem:[#allocation28_spill] sm:$0xff] }
 0x626   :  { %3047 = vmatprep.subr.bf16.mxu1 %v7411_v30  ;;  %3088 = vmatprep.subr.bf16.mxu0 %v7412_v51  ;;  %v7422_v30 = vld [vmem:[#allocation52_spill] sm:$0xff]  ;;  %v7423_v51 = vld [vmem:[#allocation29_spill] sm:$0xff] }
 0x629   :  { %3048 = vmatpush1.bf16.msra.mxu1 %v7413_v20  ;;  %3089 = vmatpush1.bf16.msra.mxu0 %v7414_v4  ;;  %v7424_v20 = vld [vmem:[#allocation54_spill] sm:$0xff] }
 0x62a   :  { %3049 = vmatprep.subr.bf16.mxu1 %v7415_v56  ;;  %3090 = vmatprep.subr.bf16.mxu0 %v7416_v34  ;;  %v7425_v4 = vld [vmem:[#allocation30_spill] sm:$0xff]  ;;  %v7426_v56 = vld [vmem:[#allocation56_spill] sm:$0xff]  ;;  %v7427_v34 = vld [vmem:[#allocation31_spill] sm:$0xff] }
 0x62d   :  { %3050 = vmatpush1.bf16.msra.mxu1 %v7417_v31  ;;  %3091 = vmatpush1.bf16.msra.mxu0 %v7418_v21  ;;  %v7428_v31 = vld [vmem:[#allocation58_spill] sm:$0xff]  ;;  %v7429_v21 = vld [vmem:[#allocation32_spill] sm:$0xff] }
 0x62e   :  { %3051 = vmatprep.subr.bf16.mxu1 %v7419_v38  ;;  %3092 = vmatprep.subr.bf16.mxu0 %v7420_v60  ;;  %v7430_v38 = vld [vmem:[#allocation60_spill] sm:$0xff]  ;;  %v7431_v60 = vld [vmem:[#allocation33_spill] sm:$0xff] }
 0x631   :  { %3052 = vmatpush1.bf16.msra.mxu1 %v7421_v62  ;;  %3093 = vmatpush1.bf16.msra.mxu0 %v7422_v30  ;;  %v7432_v62 = vld [vmem:[#allocation62_spill] sm:$0xff] }
 0x632   :  { %3053 = vmatprep.subr.bf16.mxu1 %v7423_v51  ;;  %3094 = vmatprep.subr.bf16.mxu0 %v7424_v20  ;;  %v7433_v30 = vld [vmem:[#allocation34_spill] sm:$0xff]  ;;  %v7434_v51 = vld [vmem:[#allocation64_spill] sm:$0xff]  ;;  %v7435_v20 = vld [vmem:[#allocation35_spill] sm:$0xff] }
 0x635   :  { %3054 = vmatpush1.bf16.msra.mxu1 %v7425_v4  ;;  %3095 = vmatpush1.bf16.msra.mxu0 %v7426_v56  ;;  %v7436_v4 = vld [vmem:[#allocation66_spill] sm:$0xff]  ;;  %v7437_v56 = vld [vmem:[#allocation37_spill] sm:$0xff] }
 0x636   :  { %3055 = vmatprep.subr.bf16.mxu1 %v7427_v34  ;;  %3096 = vmatprep.subr.bf16.mxu0 %v7428_v31  ;;  %v7438_v34 = vld [vmem:[#allocation68_spill] sm:$0xff]  ;;  %v7439_v31 = vld [vmem:[#allocation39_spill] sm:$0xff] }
 0x639   :  { %3056 = vmatpush1.bf16.msra.mxu1 %v7429_v21  ;;  %3097 = vmatpush1.bf16.msra.mxu0 %v7430_v38  ;;  %v7440_v21 = vld [vmem:[#allocation70_spill] sm:$0xff]  ;;  %v7441_v38 = vld [vmem:[#allocation41_spill] sm:$0xff] }
 0x63a   :  { %3057 = vmatprep.subr.bf16.mxu1 %v7431_v60  ;;  %3098 = vmatprep.subr.bf16.mxu0 %v7432_v62  ;;  %v7442_v60 = vld [vmem:[#allocation72_spill] sm:$0xff]  ;;  %v7443_v62 = vld [vmem:[#allocation43_spill] sm:$0xff] }
 0x63d   :  { %3058 = vmatpush1.bf16.msra.mxu1 %v7433_v30  ;;  %3099 = vmatpush1.bf16.msra.mxu0 %v7434_v51  ;;  %v7444_v30 = vld [vmem:[#allocation74_spill] sm:$0xff]  ;;  %v7445_v51 = vld [vmem:[#allocation45_spill] sm:$0xff] }
 0x63e   :  { %3059 = vmatprep.subr.bf16.mxu1 %v7435_v20  ;;  %3100 = vmatprep.subr.bf16.mxu0 %v7436_v4  ;;  %v7446_v20 = vld [vmem:[#allocation76_spill] sm:$0xff]  ;;  %v7447_v4 = vld [vmem:[#allocation47_spill] sm:$0xff] }
 0x641   :  { %3060 = vmatpush1.bf16.msra.mxu1 %v7437_v56  ;;  %3101 = vmatpush1.bf16.msra.mxu0 %v7438_v34  ;;  %v7448_v56 = vld [vmem:[#allocation78_spill] sm:$0xff]  ;;  %v7449_v34 = vld [vmem:[#allocation49_spill] sm:$0xff] }
 0x642   :  { %3061 = vmatprep.subr.bf16.mxu1 %v7439_v31  ;;  %3102 = vmatprep.subr.bf16.mxu0 %v7440_v21  ;;  %v7450_v31 = vld [vmem:[#allocation80_spill] sm:$0xff]  ;;  %v7451_v21 = vld [vmem:[#allocation51_spill] sm:$0xff] }
 0x645   :  { %3062 = vmatpush1.bf16.msra.mxu1 %v7441_v38  ;;  %3103 = vmatpush1.bf16.msra.mxu0 %v7442_v60  ;;  %v7452_v38 = vld [vmem:[#allocation82_spill] sm:$0xff]  ;;  %v7453_v60 = vld [vmem:[#allocation53_spill] sm:$0xff] }
 0x646   :  { %3063 = vmatprep.subr.bf16.mxu1 %v7443_v62  ;;  %3104 = vmatprep.subr.bf16.mxu0 %v7444_v30  ;;  %v7454_v62 = vld [vmem:[#allocation84_spill] sm:$0xff]  ;;  %v7455_v30 = vld [vmem:[#allocation55_spill] sm:$0xff] }
 0x649   :  { %3064 = vmatpush1.bf16.msra.mxu1 %v7445_v51  ;;  %3105 = vmatpush1.bf16.msra.mxu0 %v7446_v20  ;;  %v7456_v51 = vld [vmem:[#allocation86_spill] sm:$0xff]  ;;  %v7457_v20 = vld [vmem:[#allocation57_spill] sm:$0xff] }
 0x64a   :  { %3065 = vmatprep.subr.bf16.mxu1 %v7447_v4  ;;  %3106 = vmatprep.subr.bf16.mxu0 %v7448_v56  ;;  %v7458_v4 = vld [vmem:[#allocation88_spill] sm:$0xff]  ;;  %v7459_v56 = vld [vmem:[#allocation59_spill] sm:$0xff] }
 0x64d   :  { %3066 = vmatpush1.bf16.msra.mxu1 %v7449_v34  ;;  %3107 = vmatpush1.bf16.msra.mxu0 %v7450_v31  ;;  %v7460_v34 = vld [vmem:[#allocation90_spill] sm:$0xff]  ;;  %v7461_v31 = vld [vmem:[#allocation61_spill] sm:$0xff] }
 0x64e   :  { %3067 = vmatprep.subr.bf16.mxu1 %v7451_v21  ;;  %3108 = vmatprep.subr.bf16.mxu0 %v7452_v38  ;;  %v7462_v21 = vld [vmem:[#allocation92_spill] sm:$0xff]  ;;  %v7463_v38 = vld [vmem:[#allocation63_spill] sm:$0xff] }
 0x651   :  { %3068 = vmatpush1.bf16.msra.mxu1 %v7453_v60  ;;  %3109 = vmatpush1.bf16.msra.mxu0 %v7454_v62  ;;  %v7464_v60 = vld [vmem:[#allocation94_spill] sm:$0xff]  ;;  %v7465_v62 = vld [vmem:[#allocation65_spill] sm:$0xff] }
 0x652   :  { %3069 = vmatprep.subr.bf16.mxu1 %v7455_v30  ;;  %3110 = vmatprep.subr.bf16.mxu0 %v7456_v51  ;;  %v7466_v30 = vld [vmem:[#allocation96_spill] sm:$0xff]  ;;  %v7467_v51 = vld [vmem:[#allocation67_spill] sm:$0xff] }
 0x655   :  { %3070 = vmatpush1.bf16.msra.mxu1 %v7457_v20  ;;  %3111 = vmatpush1.bf16.msra.mxu0 %v7458_v4  ;;  %v7468_v20 = vld [vmem:[#allocation98_spill] sm:$0xff] }
 0x656   :  { %3071 = vmatprep.subr.bf16.mxu1 %v7459_v56  ;;  %3112 = vmatprep.subr.bf16.mxu0 %v7460_v34 }
 0x659   :  { %3072 = vmatpush1.bf16.msra.mxu1 %v7461_v31  ;;  %3113 = vmatpush1.bf16.msra.mxu0 %v7462_v21 }
 0x65a   :  { %3073 = vmatprep.subr.bf16.mxu1 %v7463_v38  ;;  %3114 = vmatprep.subr.bf16.mxu0 %v7464_v60 }
 0x65d   :  { %3074 = vmatpush1.bf16.msra.mxu1 %v7465_v62  ;;  %3115 = vmatpush1.bf16.msra.mxu0 %v7466_v30 }
 0x65e   :  { %3125 = vmatprep.subr.bf16.mxu1 %v7467_v51  ;;  %3166 = vmatprep.subr.bf16.mxu0 %v7468_v20 }
 0x6b3   :  { %v2833_v4 = vpop.f32.mrb[64].mxu1  ;;  %v2874_v56 = vpop.f32.mrb[80].mxu0 }
 0x6b4   :  { %v2963_v34 = vadd.f32 %v2833_v4, %v7469_v11  ;;  %v2965_v31 = vadd.f32 %v2874_v56, %v7470_v13  ;;  %v2835_v7 = vpop.f32.mrb[65].mxu1  ;;  %v2876_v21 = vpop.f32.mrb[81].mxu0 }
 0x6b5   :  { %v2964_v38 = vadd.f32 %v2835_v7, %v7471_v17  ;;  %v2966_v60 = vadd.f32 %v2876_v21, %v7472_v29  ;;  %v2837_v1 = vpop.f32.mrb[66].mxu1  ;;  %v2878_v62 = vpop.f32.mrb[82].mxu0 }
 0x6b6   :  { %v4010_v33 = vmul.f32 -1.442695, %v2965_v31  ;;  %v2838_v30 = vpop.f32.mrb[67].mxu1  ;;  %v2879_v25 = vpop.f32.mrb[83].mxu0  ;;  %v4008_v1 = vmul.f32 -1.442695, %v2963_v34 }
 0x6b7   :  { %v4011_v51 = vmul.f32 -1.442695, %v2966_v60  ;;  %v4009_v7 = vmul.f32 -1.442695, %v2964_v38  ;;  %v7476_v34 = vld [vmem:[#allocation189_spill] sm:$0xff] }
 0x6b8   :  { %4181 = vpow2.f32 %v4010_v33 }
 0x6b9   :  { %4183 = vpow2.f32 %v4011_v51 }
 0x6c2   :  { %v4182_v20 = vpop.eup %4181 }
 0x6c3   :  { %v2989_v32 = vadd.f32 1.0, %v4182_v20  ;;  %v4184_v19 = vpop.eup %4183  ;;  %v7474_v20 = vld [vmem:[#allocation187_spill] sm:$0xff] }
 0x6c4   :  { %v2990_v11 = vadd.f32 1.0, %v4184_v19 }
 0x6c5   :  { %4185 = vrcp.f32 %v2989_v32  ;;  %v7473_v32 = vld [vmem:[#allocation185_spill] sm:$0xff] }
 0x6c6   :  { %4187 = vrcp.f32 %v2990_v11  ;;  %v7475_v11 = vld [vmem:[#allocation186_spill] sm:$0xff] }
 0x6c7   :  { %4189 = vpow2.f32 %v4008_v1 }
 0x6c8   :  { %4191 = vpow2.f32 %v4009_v7 }
 0x6cf   :  { %v4186_v13 = vpop.eup %4185 }
 0x6d0   :  { %v3009_v56 = vmul.f32 %v4186_v13, %v5902_v46  ;;  %v4188_v17 = vpop.eup %4187 }
 0x6d1   :  { %v3010_v29 = vmul.f32 %v4188_v17, %v5907_v9  ;;  %v4190_v25 = vpop.eup %4189 }
 0x6d2   :  { %v4192_v60 = vpop.eup %4191  ;;  %v2977_v33 = vadd.f32 1.0, %v4190_v25 }
 0x6d3   :  { %v2978_v62 = vadd.f32 1.0, %v4192_v60 }
 0x6d4   :  { %4193 = vrcp.f32 %v2977_v33 }
 0x6d5   :  { %4195 = vrcp.f32 %v2978_v62 }
 0x6de   :  { %v4194_v33 = vpop.eup %4193 }
 0x6f3   :  { %v2915_v30 = vpop.f32.mrb[68].mxu1  ;;  %v2956_v51 = vpop.f32.mrb[84].mxu0 }
 0x6f4   :  { %v2967_v19 = vadd.f32 %v2915_v30, %v7473_v32  ;;  %v2969_v4 = vadd.f32 %v2956_v51, %v7474_v20  ;;  %v2917_v31 = vpop.f32.mrb[69].mxu1  ;;  %v2958_v21 = vpop.f32.mrb[85].mxu0 }
 0x6f5   :  { %v2968_v13 = vadd.f32 %v2917_v31, %v7475_v11  ;;  %v2970_v38 = vadd.f32 %v2958_v21, %v7476_v34  ;;  %v2919_v17 = vpop.f32.mrb[70].mxu1  ;;  %v2960_v1 = vpop.f32.mrb[86].mxu0  ;;  %v7477_v34 = vld [vmem:[#allocation207_spill] sm:$0xff] }
 0x6f6   :  { %4197 = vtanh.f32 %v2967_v19  ;;  %v4012_v7 = vmul.f32 -1.442695, %v2969_v4  ;;  %v2920_v25 = vpop.f32.mrb[71].mxu1  ;;  %v2961_v60 = vpop.f32.mrb[87].mxu0  ;;  %vm3022_vm2 = vcmp.gt.f32.partialorder %v7477_v34, 0.0  ;;  %v7478_v17 = vld [vmem:[#allocation208_spill] sm:$0xff] }
 0x6f7   :  { %4199 = vtanh.f32 %v2968_v13  ;;  %v4013_v50 = vmul.f32 -1.442695, %v2970_v38  ;;  %v4196_v30 = vpop.eup %4195  ;;  %vm3023_vm3 = vcmp.gt.f32.partialorder %v7478_v17, 0.0  ;;  %vm3030_vm5 = vmpackc.low %vm3022_vm2, %vm3022_vm2  ;;  %v7490_v34 = vld [vmem:[#allocation115_spill] sm:$0xff]  ;;  %v7493_v17 = vld [vmem:[#allocation138_spill] sm:$0xff] }
 0x6f8   :  { %4201 = vpow2.f32 %v4012_v7  ;;  %vm3031_vm4 = vmpackc.low %vm3023_vm3, %vm3023_vm3 }
 0x6f9   :  { %4203 = vpow2.f32 %v4013_v50 }
 0x700   :  { %v4198_v51 = vpop.eup %4197 }
 0x701   :  { %v4200_v32 = vpop.eup %4199  ;;  %v3011_v20 = vmul.f32 %v4198_v51, %v4194_v33  ;;  %v7483_v51 = vld [vmem:[#allocation133_spill] sm:$0xff] }
 0x702   :  { %v4202_v62 = vpop.eup %4201  ;;  %v3012_v24 = vmul.f32 %v4200_v32, %v4196_v30  ;;  %v7482_v30 = vld [vmem:[#allocation107_spill] sm:$0xff]  ;;  %v7484_v32 = vld [vmem:[#allocation109_spill] sm:$0xff] }
 0x703   :  { %v4204_v31 = vpop.eup %4203  ;;  %v3013_v11 = vadd.f32 %v3011_v20, %v3009_v56  ;;  %v3003_v21 = vadd.f32 1.0, %v4202_v62  ;;  %v7485_v20 = vld [vmem:[#allocation134_spill] sm:$0xff]  ;;  %v7486_v62 = vld [vmem:[#allocation111_spill] sm:$0xff] }
 0x704   :  { %v3014_v19 = vadd.f32 %v3012_v24, %v3010_v29  ;;  %v3004_v4 = vadd.f32 1.0, %v4204_v31  ;;  %v7487_v31 = vld [vmem:[#allocation135_spill] sm:$0xff] }
 0x705   :  { %4205 = vtanh.f32 %v3013_v11  ;;  %v6082_v50 = vsel %vm3022_vm2, %v3013_v11, %v5902_v46  ;;  %v7488_v11 = vld [vmem:[#allocation113_spill] sm:$0xff] }
 0x706   :  { %4207 = vrcp.f32 %v3003_v21  ;;  %v6087_v13 = vsel %vm3023_vm3, %v3014_v19, %v5907_v9  ;;  %v7489_v21 = vld [vmem:[#allocation136_spill] sm:$0xff] }
 0x707   :  { %4209 = vtanh.f32 %v3014_v19  ;;  %v7491_v19 = vld [vmem:[#allocation137_spill] sm:$0xff] }
 0x708   :  { %4211 = vrcp.f32 %v3004_v4  ;;  %v7492_v4 = vld [vmem:[#allocation116_spill] sm:$0xff] }
 0x70f   :  { %v4206_v56 = vpop.eup %4205 }
 0x710   :  { %v4208_v38 = vpop.eup %4207 }
 0x711   :  { %v4210_v24 = vpop.eup %4209  ;;  %v3017_v29 = vmul.f32 %v4208_v38, %v4206_v56  ;;  %v7494_v56 = vld [vmem:[#allocation118_spill] sm:$0xff]  ;;  %v7495_v38 = vld [vmem:[#allocation139_spill] sm:$0xff] }
 0x712   :  { %v4212_v1 = vpop.eup %4211 }
 0x713   :  { %v3018_v7 = vmul.f32 %v4212_v1, %v4210_v24  ;;  %v6092_v25 = vsel %vm3022_vm2, %v3017_v29, %v5912_v54  ;;  %v3028_v46 = vpack.c.bf16 %v3017_v29, %v3017_v29  ;;  %v7496_v24 = vld [vmem:[#allocation120_spill] sm:$0xff]  ;;  %v7498_v1 = vld [vmem:[#allocation122_spill] sm:$0xff] }
 0x714   :  { %v7497_v29 = vld [vmem:[#allocation140_spill] sm:$0xff] }
 0x715   :  { %v3029_v60 = vpack.c.bf16 %v3018_v7, %v3018_v7  ;;  %v6097_v9 = vsel %vm3023_vm3, %v3018_v7, %v5917_v15  ;;  %v6111_v54 = vsel %vm3030_vm5, %v3028_v46, %v5931_v27  ;;  %v7479_v15 = vld [vmem:[#allocation131_spill] sm:$0xff]  ;;  %v7481_v27 = vld [vmem:[#allocation132_spill] sm:$0xff]  ;;  %v7499_v7 = vld [vmem:[#allocation141_spill] sm:$0xff] }
 0x716   :  { %v7500_v46 = vld [vmem:[#allocation124_spill] sm:$0xff] }
 0x717   :  { %v6106_v33 = vsel %vm3031_vm4, %v3029_v60, %v5926_v35  ;;  %v7480_v35 = vld [vmem:[#allocation105_spill] sm:$0xff]  ;;  %v7501_v60 = vld [vmem:[#allocation142_spill] sm:$0xff] }
 0x718   :  { %3075 = vmatprep.mubr.bf16.mxu1 %v6106_v33  ;;  %3116 = vmatprep.mubr.bf16.mxu0 %v6106_v33 }
 0x719   :  { %3076 = vmatmul.mubr.bf16.vlgmr.msra.gmra.mrb[72].mxu1 %v6111_v54  ;;  %3117 = vmatmul.mubr.bf16.vlgmr.msra.gmra.mrb[88].mxu0 %v6111_v54 }
 0x71a   :  { %3126 = vmatpush1.bf16.msra.mxu1 %v7061_v45  ;;  %3167 = vmatpush1.bf16.msra.mxu0 %v7062_v57 }
 0x71b   :  { %3157 = vmatprep.mubr.bf16.mxu1 %v6106_v33  ;;  %3198 = vmatprep.mubr.bf16.mxu0 %v6106_v33 }
 0x71c   :  { %3127 = vmatprep.subr.bf16.mxu1 %v7063_v10  ;;  %3168 = vmatprep.subr.bf16.mxu0 %v7064_v47 }
 0x71e   :  { %3128 = vmatpush1.bf16.msra.mxu1 %v7065_v8  ;;  %3169 = vmatpush1.bf16.msra.mxu0 %v7066_v5 }
 0x71f   :  { %3129 = vmatprep.subr.bf16.mxu1 %v7067_v2  ;;  %3170 = vmatprep.subr.bf16.mxu0 %v7068_v26 }
 0x722   :  { %3130 = vmatpush1.bf16.msra.mxu1 %v7069_v61  ;;  %3171 = vmatpush1.bf16.msra.mxu0 %v7070_v55 }
 0x723   :  { %3131 = vmatprep.subr.bf16.mxu1 %v7071_v63  ;;  %3172 = vmatprep.subr.bf16.mxu0 %v7072_v37 }
 0x726   :  { %3132 = vmatpush1.bf16.msra.mxu1 %v7073_v36  ;;  %3173 = vmatpush1.bf16.msra.mxu0 %v7074_v41 }
 0x727   :  { %3133 = vmatprep.subr.bf16.mxu1 %v7075_v18  ;;  %3174 = vmatprep.subr.bf16.mxu0 %v7076_v23 }
 0x72a   :  { %3134 = vmatpush1.bf16.msra.mxu1 %v7077_v53  ;;  %3175 = vmatpush1.bf16.msra.mxu0 %v4927_v44 }
 0x72b   :  { %3135 = vmatprep.subr.bf16.mxu1 %v7078_v42  ;;  %3176 = vmatprep.subr.bf16.mxu0 %v7079_v58 }
 0x72e   :  { %3136 = vmatpush1.bf16.msra.mxu1 %v7080_v48  ;;  %3177 = vmatpush1.bf16.msra.mxu0 %v7168_v3 }
 0x72f   :  { %3137 = vmatprep.subr.bf16.mxu1 %v7081_v43  ;;  %3178 = vmatprep.subr.bf16.mxu0 %v7169_v39 }
 0x732   :  { %3138 = vmatpush1.bf16.msra.mxu1 %v7082_v6  ;;  %3179 = vmatpush1.bf16.msra.mxu0 %v7170_v22 }
 0x733   :  { %3139 = vmatprep.subr.bf16.mxu1 %v7083_v40  ;;  %3180 = vmatprep.subr.bf16.mxu0 %v7171_v49 }
 0x736   :  { %3140 = vmatpush1.bf16.msra.mxu1 %v7084_v52  ;;  %3181 = vmatpush1.bf16.msra.mxu0 %v7172_v16 }
 0x737   :  { %3141 = vmatprep.subr.bf16.mxu1 %v7085_v12  ;;  %3182 = vmatprep.subr.bf16.mxu0 %v7173_v59 }
 0x73a   :  { %3142 = vmatpush1.bf16.msra.mxu1 %v7086_v0  ;;  %3183 = vmatpush1.bf16.msra.mxu0 %v7174_v28 }
 0x73b   :  { %3143 = vmatprep.subr.bf16.mxu1 %v7087_v14  ;;  %3184 = vmatprep.subr.bf16.mxu0 %v7479_v15 }
 0x73e   :  { %3144 = vmatpush1.bf16.msra.mxu1 %v7480_v35  ;;  %3185 = vmatpush1.bf16.msra.mxu0 %v7481_v27 }
 0x73f   :  { %3145 = vmatprep.subr.bf16.mxu1 %v7482_v30  ;;  %3186 = vmatprep.subr.bf16.mxu0 %v7483_v51 }
 0x742   :  { %3146 = vmatpush1.bf16.msra.mxu1 %v7484_v32  ;;  %3187 = vmatpush1.bf16.msra.mxu0 %v7485_v20 }
 0x743   :  { %3147 = vmatprep.subr.bf16.mxu1 %v7486_v62  ;;  %3188 = vmatprep.subr.bf16.mxu0 %v7487_v31  ;;  %v7574_v31 = vld [vmem:[#allocation162_spill] sm:$0xff]  ;;  %v7575_v62 = vld [vmem:[#allocation164_spill] sm:$0xff] }
 0x746   :  { %3148 = vmatpush1.bf16.msra.mxu1 %v7488_v11  ;;  %3189 = vmatpush1.bf16.msra.mxu0 %v7489_v21  ;;  %v7573_v21 = vld [vmem:[#allocation163_spill] sm:$0xff] }
 0x747   :  { %3149 = vmatprep.subr.bf16.mxu1 %v7490_v34  ;;  %3190 = vmatprep.subr.bf16.mxu0 %v7491_v19  ;;  %v7502_v19 = vld [vmem:[#allocation126_spill] sm:$0xff]  ;;  %v7572_v34 = vld [vmem:[#allocation160_spill] sm:$0xff] }
 0x74a   :  { %3150 = vmatpush1.bf16.msra.mxu1 %v7492_v4  ;;  %3191 = vmatpush1.bf16.msra.mxu0 %v7493_v17  ;;  %v7503_v4 = vld [vmem:[#allocation143_spill] sm:$0xff]  ;;  %v7504_v17 = vld [vmem:[#allocation128_spill] sm:$0xff] }
 0x74b   :  { %3151 = vmatprep.subr.bf16.mxu1 %v7494_v56  ;;  %3192 = vmatprep.subr.bf16.mxu0 %v7495_v38  ;;  %v7505_v56 = vld [vmem:[#allocation144_spill] sm:$0xff]  ;;  %v7506_v38 = vld [vmem:[#allocation18_spill] sm:$0xff] }
 0x74e   :  { %3152 = vmatpush1.bf16.msra.mxu1 %v7496_v24  ;;  %3193 = vmatpush1.bf16.msra.mxu0 %v7497_v29  ;;  %v7507_v24 = vld [vmem:[#allocation21_spill] sm:$0xff] }
 0x74f   :  { %3153 = vmatprep.subr.bf16.mxu1 %v7498_v1  ;;  %3194 = vmatprep.subr.bf16.mxu0 %v7499_v7  ;;  %v7508_v7 = vld [vmem:[#allocation19_spill] sm:$0xff]  ;;  %v7517_v1 = vld [vmem:[#allocation44_spill] sm:$0xff]  ;;  %v7518_v29 = vld [vmem:[#allocation25_spill] sm:$0xff] }
 0x752   :  { %3154 = vmatpush1.bf16.msra.mxu1 %v7500_v46  ;;  %3195 = vmatpush1.bf16.msra.mxu0 %v7501_v60  ;;  %v7509_v46 = vld [vmem:[#allocation36_spill] sm:$0xff] }
 0x753   :  { %3155 = vmatprep.subr.bf16.mxu1 %v7502_v19  ;;  %3196 = vmatprep.subr.bf16.mxu0 %v7503_v4  ;;  %v7510_v60 = vld [vmem:[#allocation20_spill] sm:$0xff]  ;;  %v7511_v19 = vld [vmem:[#allocation38_spill] sm:$0xff] }
 0x754   :  { %v7512_v4 = vld [vmem:[#allocation22_spill] sm:$0xff] }
 0x756   :  { %3156 = vmatpush1.bf16.msra.mxu1 %v7504_v17  ;;  %3197 = vmatpush1.bf16.msra.mxu0 %v7505_v56  ;;  %v7513_v17 = vld [vmem:[#allocation40_spill] sm:$0xff]  ;;  %v7514_v56 = vld [vmem:[#allocation23_spill] sm:$0xff] }
 0x757   :  { %3287 = vmatprep.subr.bf16.mxu1 %v7506_v38  ;;  %3328 = vmatprep.subr.bf16.mxu0 %v7507_v24  ;;  %v7515_v38 = vld [vmem:[#allocation42_spill] sm:$0xff]  ;;  %v7516_v24 = vld [vmem:[#allocation24_spill] sm:$0xff] }
 0x759   :  { %3158 = vmatmul.mubr.bf16.vlgmr.msra.gmra.mrb[76].mxu1 %v6111_v54  ;;  %3199 = vmatmul.mubr.bf16.vlgmr.msra.gmra.mrb[92].mxu0 %v6111_v54 }
 0x75a   :  { %3288 = vmatpush1.bf16.msra.mxu1 %v7508_v7  ;;  %3329 = vmatpush1.bf16.msra.mxu0 %v7509_v46  ;;  %v7519_v7 = vld [vmem:[#allocation46_spill] sm:$0xff] }
 0x75b   :  { %3289 = vmatprep.subr.bf16.mxu1 %v7510_v60  ;;  %3330 = vmatprep.subr.bf16.mxu0 %v7511_v19  ;;  %v7520_v46 = vld [vmem:[#allocation26_spill] sm:$0xff]  ;;  %v7521_v60 = vld [vmem:[#allocation48_spill] sm:$0xff]  ;;  %v7522_v19 = vld [vmem:[#allocation27_spill] sm:$0xff] }
 0x75e   :  { %3290 = vmatpush1.bf16.msra.mxu1 %v7512_v4  ;;  %3331 = vmatpush1.bf16.msra.mxu0 %v7513_v17  ;;  %v7523_v4 = vld [vmem:[#allocation50_spill] sm:$0xff]  ;;  %v7524_v17 = vld [vmem:[#allocation28_spill] sm:$0xff] }
 0x75f   :  { %3291 = vmatprep.subr.bf16.mxu1 %v7514_v56  ;;  %3332 = vmatprep.subr.bf16.mxu0 %v7515_v38  ;;  %v7525_v56 = vld [vmem:[#allocation52_spill] sm:$0xff]  ;;  %v7526_v38 = vld [vmem:[#allocation29_spill] sm:$0xff] }
 0x762   :  { %3292 = vmatpush1.bf16.msra.mxu1 %v7516_v24  ;;  %3333 = vmatpush1.bf16.msra.mxu0 %v7517_v1  ;;  %v7527_v24 = vld [vmem:[#allocation54_spill] sm:$0xff] }
 0x763   :  { %3293 = vmatprep.subr.bf16.mxu1 %v7518_v29  ;;  %3334 = vmatprep.subr.bf16.mxu0 %v7519_v7  ;;  %v7528_v1 = vld [vmem:[#allocation30_spill] sm:$0xff]  ;;  %v7529_v29 = vld [vmem:[#allocation56_spill] sm:$0xff]  ;;  %v7530_v7 = vld [vmem:[#allocation31_spill] sm:$0xff] }
 0x766   :  { %3294 = vmatpush1.bf16.msra.mxu1 %v7520_v46  ;;  %3335 = vmatpush1.bf16.msra.mxu0 %v7521_v60  ;;  %v7531_v46 = vld [vmem:[#allocation58_spill] sm:$0xff]  ;;  %v7532_v60 = vld [vmem:[#allocation32_spill] sm:$0xff] }
 0x767   :  { %3295 = vmatprep.subr.bf16.mxu1 %v7522_v19  ;;  %3336 = vmatprep.subr.bf16.mxu0 %v7523_v4  ;;  %v7533_v19 = vld [vmem:[#allocation60_spill] sm:$0xff]  ;;  %v7534_v4 = vld [vmem:[#allocation33_spill] sm:$0xff] }
 0x76a   :  { %3296 = vmatpush1.bf16.msra.mxu1 %v7524_v17  ;;  %3337 = vmatpush1.bf16.msra.mxu0 %v7525_v56  ;;  %v7535_v17 = vld [vmem:[#allocation62_spill] sm:$0xff] }
 0x76b   :  { %3297 = vmatprep.subr.bf16.mxu1 %v7526_v38  ;;  %3338 = vmatprep.subr.bf16.mxu0 %v7527_v24  ;;  %v7536_v56 = vld [vmem:[#allocation34_spill] sm:$0xff]  ;;  %v7537_v38 = vld [vmem:[#allocation64_spill] sm:$0xff]  ;;  %v7538_v24 = vld [vmem:[#allocation35_spill] sm:$0xff] }
 0x76e   :  { %3298 = vmatpush1.bf16.msra.mxu1 %v7528_v1  ;;  %3339 = vmatpush1.bf16.msra.mxu0 %v7529_v29  ;;  %v7539_v1 = vld [vmem:[#allocation66_spill] sm:$0xff]  ;;  %v7540_v29 = vld [vmem:[#allocation37_spill] sm:$0xff] }
 0x76f   :  { %3299 = vmatprep.subr.bf16.mxu1 %v7530_v7  ;;  %3340 = vmatprep.subr.bf16.mxu0 %v7531_v46  ;;  %v7541_v7 = vld [vmem:[#allocation68_spill] sm:$0xff]  ;;  %v7542_v46 = vld [vmem:[#allocation39_spill] sm:$0xff] }
 0x772   :  { %3300 = vmatpush1.bf16.msra.mxu1 %v7532_v60  ;;  %3341 = vmatpush1.bf16.msra.mxu0 %v7533_v19  ;;  %v7543_v60 = vld [vmem:[#allocation70_spill] sm:$0xff]  ;;  %v7544_v19 = vld [vmem:[#allocation41_spill] sm:$0xff] }
 0x773   :  { %3301 = vmatprep.subr.bf16.mxu1 %v7534_v4  ;;  %3342 = vmatprep.subr.bf16.mxu0 %v7535_v17  ;;  %v7545_v4 = vld [vmem:[#allocation72_spill] sm:$0xff]  ;;  %v7546_v17 = vld [vmem:[#allocation43_spill] sm:$0xff] }
 0x776   :  { %3302 = vmatpush1.bf16.msra.mxu1 %v7536_v56  ;;  %3343 = vmatpush1.bf16.msra.mxu0 %v7537_v38  ;;  %v7547_v56 = vld [vmem:[#allocation74_spill] sm:$0xff]  ;;  %v7548_v38 = vld [vmem:[#allocation45_spill] sm:$0xff] }
 0x777   :  { %3303 = vmatprep.subr.bf16.mxu1 %v7538_v24  ;;  %3344 = vmatprep.subr.bf16.mxu0 %v7539_v1  ;;  %v7549_v24 = vld [vmem:[#allocation76_spill] sm:$0xff]  ;;  %v7550_v1 = vld [vmem:[#allocation47_spill] sm:$0xff] }
 0x77a   :  { %3304 = vmatpush1.bf16.msra.mxu1 %v7540_v29  ;;  %3345 = vmatpush1.bf16.msra.mxu0 %v7541_v7  ;;  %v7551_v29 = vld [vmem:[#allocation78_spill] sm:$0xff]  ;;  %v7552_v7 = vld [vmem:[#allocation49_spill] sm:$0xff] }
 0x77b   :  { %3305 = vmatprep.subr.bf16.mxu1 %v7542_v46  ;;  %3346 = vmatprep.subr.bf16.mxu0 %v7543_v60  ;;  %v7553_v46 = vld [vmem:[#allocation80_spill] sm:$0xff]  ;;  %v7554_v60 = vld [vmem:[#allocation51_spill] sm:$0xff] }
 0x77e   :  { %3306 = vmatpush1.bf16.msra.mxu1 %v7544_v19  ;;  %3347 = vmatpush1.bf16.msra.mxu0 %v7545_v4  ;;  %v7555_v19 = vld [vmem:[#allocation82_spill] sm:$0xff]  ;;  %v7556_v4 = vld [vmem:[#allocation53_spill] sm:$0xff] }
 0x77f   :  { %3307 = vmatprep.subr.bf16.mxu1 %v7546_v17  ;;  %3348 = vmatprep.subr.bf16.mxu0 %v7547_v56  ;;  %v7557_v17 = vld [vmem:[#allocation84_spill] sm:$0xff]  ;;  %v7558_v56 = vld [vmem:[#allocation55_spill] sm:$0xff] }
 0x782   :  { %3308 = vmatpush1.bf16.msra.mxu1 %v7548_v38  ;;  %3349 = vmatpush1.bf16.msra.mxu0 %v7549_v24  ;;  %v7559_v38 = vld [vmem:[#allocation86_spill] sm:$0xff]  ;;  %v7560_v24 = vld [vmem:[#allocation57_spill] sm:$0xff] }
 0x783   :  { %3309 = vmatprep.subr.bf16.mxu1 %v7550_v1  ;;  %3350 = vmatprep.subr.bf16.mxu0 %v7551_v29  ;;  %v7561_v1 = vld [vmem:[#allocation88_spill] sm:$0xff]  ;;  %v7562_v29 = vld [vmem:[#allocation59_spill] sm:$0xff] }
 0x786   :  { %3310 = vmatpush1.bf16.msra.mxu1 %v7552_v7  ;;  %3351 = vmatpush1.bf16.msra.mxu0 %v7553_v46  ;;  %v7563_v7 = vld [vmem:[#allocation90_spill] sm:$0xff]  ;;  %v7564_v46 = vld [vmem:[#allocation61_spill] sm:$0xff] }
 0x787   :  { %3311 = vmatprep.subr.bf16.mxu1 %v7554_v60  ;;  %3352 = vmatprep.subr.bf16.mxu0 %v7555_v19  ;;  %v7565_v60 = vld [vmem:[#allocation92_spill] sm:$0xff]  ;;  %v7566_v19 = vld [vmem:[#allocation63_spill] sm:$0xff] }
 0x78a   :  { %3312 = vmatpush1.bf16.msra.mxu1 %v7556_v4  ;;  %3353 = vmatpush1.bf16.msra.mxu0 %v7557_v17  ;;  %v7567_v4 = vld [vmem:[#allocation94_spill] sm:$0xff]  ;;  %v7568_v17 = vld [vmem:[#allocation65_spill] sm:$0xff] }
 0x78b   :  { %3313 = vmatprep.subr.bf16.mxu1 %v7558_v56  ;;  %3354 = vmatprep.subr.bf16.mxu0 %v7559_v38  ;;  %v7569_v56 = vld [vmem:[#allocation96_spill] sm:$0xff]  ;;  %v7570_v38 = vld [vmem:[#allocation67_spill] sm:$0xff] }
 0x78e   :  { %3314 = vmatpush1.bf16.msra.mxu1 %v7560_v24  ;;  %3355 = vmatpush1.bf16.msra.mxu0 %v7561_v1  ;;  %v7571_v24 = vld [vmem:[#allocation98_spill] sm:$0xff] }
 0x78f   :  { %3315 = vmatprep.subr.bf16.mxu1 %v7562_v29  ;;  %3356 = vmatprep.subr.bf16.mxu0 %v7563_v7 }
 0x792   :  { %3316 = vmatpush1.bf16.msra.mxu1 %v7564_v46  ;;  %3357 = vmatpush1.bf16.msra.mxu0 %v7565_v60 }
 0x793   :  { %3317 = vmatprep.subr.bf16.mxu1 %v7566_v19  ;;  %3358 = vmatprep.subr.bf16.mxu0 %v7567_v4 }
 0x796   :  { %3318 = vmatpush1.bf16.msra.mxu1 %v7568_v17  ;;  %3359 = vmatpush1.bf16.msra.mxu0 %v7569_v56 }
 0x797   :  { %3369 = vmatprep.subr.bf16.mxu1 %v7570_v38  ;;  %3410 = vmatprep.subr.bf16.mxu0 %v7571_v24 }
 0x7ec   :  { %v3077_v1 = vpop.f32.mrb[72].mxu1  ;;  %v3118_v29 = vpop.f32.mrb[88].mxu0 }
 0x7ed   :  { %v3207_v7 = vadd.f32 %v3077_v1, %v7572_v34  ;;  %v3209_v46 = vadd.f32 %v3118_v29, %v7573_v21  ;;  %v3079_v11 = vpop.f32.mrb[73].mxu1  ;;  %v3120_v60 = vpop.f32.mrb[89].mxu0 }
 0x7ee   :  { %v3208_v19 = vadd.f32 %v3079_v11, %v7574_v31  ;;  %v3210_v4 = vadd.f32 %v3120_v60, %v7575_v62  ;;  %v3081_v20 = vpop.f32.mrb[74].mxu1  ;;  %v3122_v17 = vpop.f32.mrb[90].mxu0 }
 0x7ef   :  { %v4016_v32 = vmul.f32 -1.442695, %v3209_v46  ;;  %v3082_v56 = vpop.f32.mrb[75].mxu1  ;;  %v3123_v51 = vpop.f32.mrb[91].mxu0  ;;  %v4014_v20 = vmul.f32 -1.442695, %v3207_v7 }
 0x7f0   :  { %v4017_v38 = vmul.f32 -1.442695, %v3210_v4  ;;  %v4015_v11 = vmul.f32 -1.442695, %v3208_v19  ;;  %v7579_v7 = vld [vmem:[#allocation192_spill] sm:$0xff] }
 0x7f1   :  { %4213 = vpow2.f32 %v4016_v32 }
 0x7f2   :  { %4215 = vpow2.f32 %v4017_v38 }
 0x7fb   :  { %v4214_v24 = vpop.eup %4213 }
 0x7fc   :  { %v3233_v30 = vadd.f32 1.0, %v4214_v24  ;;  %v4216_v27 = vpop.eup %4215  ;;  %v7577_v24 = vld [vmem:[#allocation191_spill] sm:$0xff] }
 0x7fd   :  { %v3234_v34 = vadd.f32 1.0, %v4216_v27 }
 0x7fe   :  { %4217 = vrcp.f32 %v3233_v30  ;;  %v7576_v30 = vld [vmem:[#allocation188_spill] sm:$0xff] }
 0x7ff   :  { %4219 = vrcp.f32 %v3234_v34  ;;  %v7578_v34 = vld [vmem:[#allocation190_spill] sm:$0xff] }
 0x800   :  { %4221 = vpow2.f32 %v4014_v20 }
 0x801   :  { %4223 = vpow2.f32 %v4015_v11 }
 0x808   :  { %v4218_v21 = vpop.eup %4217 }
 0x809   :  { %v3253_v29 = vmul.f32 %v4218_v21, %v6082_v50  ;;  %v4220_v31 = vpop.eup %4219 }
 0x80a   :  { %v3254_v62 = vmul.f32 %v4220_v31, %v6087_v13  ;;  %v4222_v51 = vpop.eup %4221 }
 0x80b   :  { %v4224_v4 = vpop.eup %4223  ;;  %v3221_v32 = vadd.f32 1.0, %v4222_v51 }
 0x80c   :  { %v3222_v17 = vadd.f32 1.0, %v4224_v4 }
 0x80d   :  { %4225 = vrcp.f32 %v3221_v32 }
 0x80e   :  { %4227 = vrcp.f32 %v3222_v17 }
 0x817   :  { %v4226_v32 = vpop.eup %4225 }
 0x82c   :  { %v3159_v56 = vpop.f32.mrb[76].mxu1  ;;  %v3200_v38 = vpop.f32.mrb[92].mxu0 }
 0x82d   :  { %v3211_v27 = vadd.f32 %v3159_v56, %v7576_v30  ;;  %v3213_v1 = vadd.f32 %v3200_v38, %v7577_v24  ;;  %v3161_v46 = vpop.f32.mrb[77].mxu1  ;;  %v3202_v60 = vpop.f32.mrb[93].mxu0 }
 0x82e   :  { %v3212_v21 = vadd.f32 %v3161_v46, %v7578_v34  ;;  %v3214_v19 = vadd.f32 %v3202_v60, %v7579_v7  ;;  %v3163_v31 = vpop.f32.mrb[78].mxu1  ;;  %v3204_v20 = vpop.f32.mrb[94].mxu0  ;;  %v7580_v7 = vld [vmem:[#allocation209_spill] sm:$0xff] }
 0x82f   :  { %4229 = vtanh.f32 %v3211_v27  ;;  %v4018_v11 = vmul.f32 -1.442695, %v3213_v1  ;;  %v3164_v51 = vpop.f32.mrb[79].mxu1  ;;  %v3205_v4 = vpop.f32.mrb[95].mxu0  ;;  %vm3266_vm6 = vcmp.gt.f32.partialorder %v7580_v7, 0.0  ;;  %v7581_v31 = vld [vmem:[#allocation210_spill] sm:$0xff] }
 0x830   :  { %4231 = vtanh.f32 %v3212_v21  ;;  %v4019_v35 = vmul.f32 -1.442695, %v3214_v19  ;;  %v4228_v56 = vpop.eup %4227  ;;  %vm3267_vm7 = vcmp.gt.f32.partialorder %v7581_v31, 0.0  ;;  %vm3274_vm9 = vmpackc.low %vm3266_vm6, %vm3266_vm6  ;;  %v7593_v7 = vld [vmem:[#allocation115_spill] sm:$0xff]  ;;  %v7596_v31 = vld [vmem:[#allocation138_spill] sm:$0xff] }
 0x831   :  { %4233 = vpow2.f32 %v4018_v11  ;;  %vm3275_vm8 = vmpackc.low %vm3267_vm7, %vm3267_vm7 }
 0x832   :  { %4235 = vpow2.f32 %v4019_v35 }
 0x839   :  { %v4230_v38 = vpop.eup %4229 }
 0x83a   :  { %v4232_v30 = vpop.eup %4231  ;;  %v3255_v24 = vmul.f32 %v4230_v38, %v4226_v32  ;;  %v7586_v38 = vld [vmem:[#allocation133_spill] sm:$0xff] }
 0x83b   :  { %v4234_v17 = vpop.eup %4233  ;;  %v3256_v15 = vmul.f32 %v4232_v30, %v4228_v56  ;;  %v7585_v56 = vld [vmem:[#allocation107_spill] sm:$0xff]  ;;  %v7587_v30 = vld [vmem:[#allocation109_spill] sm:$0xff] }
 0x83c   :  { %v4236_v46 = vpop.eup %4235  ;;  %v3257_v34 = vadd.f32 %v3255_v24, %v3253_v29  ;;  %v3247_v60 = vadd.f32 1.0, %v4234_v17  ;;  %v7588_v24 = vld [vmem:[#allocation134_spill] sm:$0xff]  ;;  %v7589_v17 = vld [vmem:[#allocation111_spill] sm:$0xff] }
 0x83d   :  { %v3258_v27 = vadd.f32 %v3256_v15, %v3254_v62  ;;  %v3248_v1 = vadd.f32 1.0, %v4236_v46  ;;  %v7590_v46 = vld [vmem:[#allocation135_spill] sm:$0xff] }
 0x83e   :  { %4237 = vtanh.f32 %v3257_v34  ;;  %v6262_v35 = vsel %vm3266_vm6, %v3257_v34, %v6082_v50  ;;  %v7591_v34 = vld [vmem:[#allocation113_spill] sm:$0xff] }
 0x83f   :  { %4239 = vrcp.f32 %v3247_v60  ;;  %v6267_v21 = vsel %vm3267_vm7, %v3258_v27, %v6087_v13  ;;  %v7592_v60 = vld [vmem:[#allocation136_spill] sm:$0xff] }
 0x840   :  { %4241 = vtanh.f32 %v3258_v27  ;;  %v7594_v27 = vld [vmem:[#allocation137_spill] sm:$0xff] }
 0x841   :  { %4243 = vrcp.f32 %v3248_v1  ;;  %v7595_v1 = vld [vmem:[#allocation116_spill] sm:$0xff] }
 0x848   :  { %v4238_v29 = vpop.eup %4237 }
 0x849   :  { %v4240_v19 = vpop.eup %4239 }
 0x84a   :  { %v4242_v15 = vpop.eup %4241  ;;  %v3261_v62 = vmul.f32 %v4240_v19, %v4238_v29  ;;  %v7597_v29 = vld [vmem:[#allocation118_spill] sm:$0xff]  ;;  %v7598_v19 = vld [vmem:[#allocation139_spill] sm:$0xff] }
 0x84b   :  { %v4244_v20 = vpop.eup %4243 }
 0x84c   :  { %v3262_v11 = vmul.f32 %v4244_v20, %v4242_v15  ;;  %v6272_v51 = vsel %vm3266_vm6, %v3261_v62, %v6092_v25  ;;  %v3272_v50 = vpack.c.bf16 %v3261_v62, %v3261_v62  ;;  %v7599_v15 = vld [vmem:[#allocation120_spill] sm:$0xff]  ;;  %v7601_v20 = vld [vmem:[#allocation122_spill] sm:$0xff] }
 0x84d   :  { %v7600_v62 = vld [vmem:[#allocation140_spill] sm:$0xff] }
 0x84e   :  { %v3273_v4 = vpack.c.bf16 %v3262_v11, %v3262_v11  ;;  %v6277_v13 = vsel %vm3267_vm7, %v3262_v11, %v6097_v9  ;;  %v6291_v25 = vsel %vm3274_vm9, %v3272_v50, %v6111_v54  ;;  %v7582_v9 = vld [vmem:[#allocation131_spill] sm:$0xff]  ;;  %v7584_v54 = vld [vmem:[#allocation132_spill] sm:$0xff]  ;;  %v7602_v11 = vld [vmem:[#allocation141_spill] sm:$0xff] }
 0x84f   :  { %v7603_v50 = vld [vmem:[#allocation124_spill] sm:$0xff] }
 0x850   :  { %v6286_v32 = vsel %vm3275_vm8, %v3273_v4, %v6106_v33  ;;  %v7583_v33 = vld [vmem:[#allocation105_spill] sm:$0xff]  ;;  %v7604_v4 = vld [vmem:[#allocation142_spill] sm:$0xff] }
 0x851   :  { %3319 = vmatprep.mubr.bf16.mxu1 %v6286_v32  ;;  %3360 = vmatprep.mubr.bf16.mxu0 %v6286_v32 }
 0x852   :  { %3320 = vmatmul.mubr.bf16.vlgmr.msra.gmra.mrb[80].mxu1 %v6291_v25  ;;  %3361 = vmatmul.mubr.bf16.vlgmr.msra.gmra.mrb[96].mxu0 %v6291_v25 }
 0x853   :  { %3370 = vmatpush1.bf16.msra.mxu1 %v7061_v45  ;;  %3411 = vmatpush1.bf16.msra.mxu0 %v7062_v57 }
 0x854   :  { %3401 = vmatprep.mubr.bf16.mxu1 %v6286_v32  ;;  %3442 = vmatprep.mubr.bf16.mxu0 %v6286_v32 }
 0x855   :  { %3371 = vmatprep.subr.bf16.mxu1 %v7063_v10  ;;  %3412 = vmatprep.subr.bf16.mxu0 %v7064_v47 }
 0x857   :  { %3372 = vmatpush1.bf16.msra.mxu1 %v7065_v8  ;;  %3413 = vmatpush1.bf16.msra.mxu0 %v7066_v5 }
 0x858   :  { %3373 = vmatprep.subr.bf16.mxu1 %v7067_v2  ;;  %3414 = vmatprep.subr.bf16.mxu0 %v7068_v26 }
 0x85b   :  { %3374 = vmatpush1.bf16.msra.mxu1 %v7069_v61  ;;  %3415 = vmatpush1.bf16.msra.mxu0 %v7070_v55 }
 0x85c   :  { %3375 = vmatprep.subr.bf16.mxu1 %v7071_v63  ;;  %3416 = vmatprep.subr.bf16.mxu0 %v7072_v37 }
 0x85f   :  { %3376 = vmatpush1.bf16.msra.mxu1 %v7073_v36  ;;  %3417 = vmatpush1.bf16.msra.mxu0 %v7074_v41 }
 0x860   :  { %3377 = vmatprep.subr.bf16.mxu1 %v7075_v18  ;;  %3418 = vmatprep.subr.bf16.mxu0 %v7076_v23 }
 0x863   :  { %3378 = vmatpush1.bf16.msra.mxu1 %v7077_v53  ;;  %3419 = vmatpush1.bf16.msra.mxu0 %v4927_v44 }
 0x864   :  { %3379 = vmatprep.subr.bf16.mxu1 %v7078_v42  ;;  %3420 = vmatprep.subr.bf16.mxu0 %v7079_v58 }
 0x867   :  { %3380 = vmatpush1.bf16.msra.mxu1 %v7080_v48  ;;  %3421 = vmatpush1.bf16.msra.mxu0 %v7168_v3 }
 0x868   :  { %3381 = vmatprep.subr.bf16.mxu1 %v7081_v43  ;;  %3422 = vmatprep.subr.bf16.mxu0 %v7169_v39 }
 0x86b   :  { %3382 = vmatpush1.bf16.msra.mxu1 %v7082_v6  ;;  %3423 = vmatpush1.bf16.msra.mxu0 %v7170_v22 }
 0x86c   :  { %3383 = vmatprep.subr.bf16.mxu1 %v7083_v40  ;;  %3424 = vmatprep.subr.bf16.mxu0 %v7171_v49 }
 0x86f   :  { %3384 = vmatpush1.bf16.msra.mxu1 %v7084_v52  ;;  %3425 = vmatpush1.bf16.msra.mxu0 %v7172_v16 }
 0x870   :  { %3385 = vmatprep.subr.bf16.mxu1 %v7085_v12  ;;  %3426 = vmatprep.subr.bf16.mxu0 %v7173_v59 }
 0x873   :  { %3386 = vmatpush1.bf16.msra.mxu1 %v7086_v0  ;;  %3427 = vmatpush1.bf16.msra.mxu0 %v7174_v28 }
 0x874   :  { %3387 = vmatprep.subr.bf16.mxu1 %v7087_v14  ;;  %3428 = vmatprep.subr.bf16.mxu0 %v7582_v9 }
 0x877   :  { %3388 = vmatpush1.bf16.msra.mxu1 %v7583_v33  ;;  %3429 = vmatpush1.bf16.msra.mxu0 %v7584_v54 }
 0x878   :  { %3389 = vmatprep.subr.bf16.mxu1 %v7585_v56  ;;  %3430 = vmatprep.subr.bf16.mxu0 %v7586_v38 }
 0x87b   :  { %3390 = vmatpush1.bf16.msra.mxu1 %v7587_v30  ;;  %3431 = vmatpush1.bf16.msra.mxu0 %v7588_v24 }
 0x87c   :  { %3391 = vmatprep.subr.bf16.mxu1 %v7589_v17  ;;  %3432 = vmatprep.subr.bf16.mxu0 %v7590_v46  ;;  %v7677_v46 = vld [vmem:[#allocation166_spill] sm:$0xff]  ;;  %v7678_v17 = vld [vmem:[#allocation169_spill] sm:$0xff] }
 0x87f   :  { %3392 = vmatpush1.bf16.msra.mxu1 %v7591_v34  ;;  %3433 = vmatpush1.bf16.msra.mxu0 %v7592_v60  ;;  %v7676_v60 = vld [vmem:[#allocation167_spill] sm:$0xff] }
 0x880   :  { %3393 = vmatprep.subr.bf16.mxu1 %v7593_v7  ;;  %3434 = vmatprep.subr.bf16.mxu0 %v7594_v27  ;;  %v7605_v27 = vld [vmem:[#allocation126_spill] sm:$0xff]  ;;  %v7675_v7 = vld [vmem:[#allocation165_spill] sm:$0xff] }
 0x883   :  { %3394 = vmatpush1.bf16.msra.mxu1 %v7595_v1  ;;  %3435 = vmatpush1.bf16.msra.mxu0 %v7596_v31  ;;  %v7606_v1 = vld [vmem:[#allocation143_spill] sm:$0xff]  ;;  %v7607_v31 = vld [vmem:[#allocation128_spill] sm:$0xff] }
 0x884   :  { %3395 = vmatprep.subr.bf16.mxu1 %v7597_v29  ;;  %3436 = vmatprep.subr.bf16.mxu0 %v7598_v19  ;;  %v7608_v29 = vld [vmem:[#allocation144_spill] sm:$0xff]  ;;  %v7609_v19 = vld [vmem:[#allocation18_spill] sm:$0xff] }
 0x887   :  { %3396 = vmatpush1.bf16.msra.mxu1 %v7599_v15  ;;  %3437 = vmatpush1.bf16.msra.mxu0 %v7600_v62  ;;  %v7610_v15 = vld [vmem:[#allocation21_spill] sm:$0xff] }
 0x888   :  { %3397 = vmatprep.subr.bf16.mxu1 %v7601_v20  ;;  %3438 = vmatprep.subr.bf16.mxu0 %v7602_v11  ;;  %v7611_v11 = vld [vmem:[#allocation19_spill] sm:$0xff]  ;;  %v7620_v20 = vld [vmem:[#allocation44_spill] sm:$0xff]  ;;  %v7621_v62 = vld [vmem:[#allocation25_spill] sm:$0xff] }
 0x88b   :  { %3398 = vmatpush1.bf16.msra.mxu1 %v7603_v50  ;;  %3439 = vmatpush1.bf16.msra.mxu0 %v7604_v4  ;;  %v7612_v50 = vld [vmem:[#allocation36_spill] sm:$0xff] }
 0x88c   :  { %3399 = vmatprep.subr.bf16.mxu1 %v7605_v27  ;;  %3440 = vmatprep.subr.bf16.mxu0 %v7606_v1  ;;  %v7613_v4 = vld [vmem:[#allocation20_spill] sm:$0xff]  ;;  %v7614_v27 = vld [vmem:[#allocation38_spill] sm:$0xff] }
 0x88d   :  { %v7615_v1 = vld [vmem:[#allocation22_spill] sm:$0xff] }
 0x88f   :  { %3400 = vmatpush1.bf16.msra.mxu1 %v7607_v31  ;;  %3441 = vmatpush1.bf16.msra.mxu0 %v7608_v29  ;;  %v7616_v31 = vld [vmem:[#allocation40_spill] sm:$0xff]  ;;  %v7617_v29 = vld [vmem:[#allocation23_spill] sm:$0xff] }
 0x890   :  { %3531 = vmatprep.subr.bf16.mxu1 %v7609_v19  ;;  %3572 = vmatprep.subr.bf16.mxu0 %v7610_v15  ;;  %v7618_v19 = vld [vmem:[#allocation42_spill] sm:$0xff]  ;;  %v7619_v15 = vld [vmem:[#allocation24_spill] sm:$0xff] }
 0x892   :  { %3402 = vmatmul.mubr.bf16.vlgmr.msra.gmra.mrb[84].mxu1 %v6291_v25  ;;  %3443 = vmatmul.mubr.bf16.vlgmr.msra.gmra.mrb[100].mxu0 %v6291_v25 }
 0x893   :  { %3532 = vmatpush1.bf16.msra.mxu1 %v7611_v11  ;;  %3573 = vmatpush1.bf16.msra.mxu0 %v7612_v50  ;;  %v7622_v11 = vld [vmem:[#allocation46_spill] sm:$0xff] }
 0x894   :  { %3533 = vmatprep.subr.bf16.mxu1 %v7613_v4  ;;  %3574 = vmatprep.subr.bf16.mxu0 %v7614_v27  ;;  %v7623_v50 = vld [vmem:[#allocation26_spill] sm:$0xff]  ;;  %v7624_v4 = vld [vmem:[#allocation48_spill] sm:$0xff]  ;;  %v7625_v27 = vld [vmem:[#allocation27_spill] sm:$0xff] }
 0x897   :  { %3534 = vmatpush1.bf16.msra.mxu1 %v7615_v1  ;;  %3575 = vmatpush1.bf16.msra.mxu0 %v7616_v31  ;;  %v7626_v1 = vld [vmem:[#allocation50_spill] sm:$0xff]  ;;  %v7627_v31 = vld [vmem:[#allocation28_spill] sm:$0xff] }
 0x898   :  { %3535 = vmatprep.subr.bf16.mxu1 %v7617_v29  ;;  %3576 = vmatprep.subr.bf16.mxu0 %v7618_v19  ;;  %v7628_v29 = vld [vmem:[#allocation52_spill] sm:$0xff]  ;;  %v7629_v19 = vld [vmem:[#allocation29_spill] sm:$0xff] }
 0x89b   :  { %3536 = vmatpush1.bf16.msra.mxu1 %v7619_v15  ;;  %3577 = vmatpush1.bf16.msra.mxu0 %v7620_v20  ;;  %v7630_v15 = vld [vmem:[#allocation54_spill] sm:$0xff] }
 0x89c   :  { %3537 = vmatprep.subr.bf16.mxu1 %v7621_v62  ;;  %3578 = vmatprep.subr.bf16.mxu0 %v7622_v11  ;;  %v7631_v20 = vld [vmem:[#allocation30_spill] sm:$0xff]  ;;  %v7632_v62 = vld [vmem:[#allocation56_spill] sm:$0xff]  ;;  %v7633_v11 = vld [vmem:[#allocation31_spill] sm:$0xff] }
 0x89f   :  { %3538 = vmatpush1.bf16.msra.mxu1 %v7623_v50  ;;  %3579 = vmatpush1.bf16.msra.mxu0 %v7624_v4  ;;  %v7634_v50 = vld [vmem:[#allocation58_spill] sm:$0xff]  ;;  %v7635_v4 = vld [vmem:[#allocation32_spill] sm:$0xff] }
 0x8a0   :  { %3539 = vmatprep.subr.bf16.mxu1 %v7625_v27  ;;  %3580 = vmatprep.subr.bf16.mxu0 %v7626_v1  ;;  %v7636_v27 = vld [vmem:[#allocation60_spill] sm:$0xff]  ;;  %v7637_v1 = vld [vmem:[#allocation33_spill] sm:$0xff] }
 0x8a3   :  { %3540 = vmatpush1.bf16.msra.mxu1 %v7627_v31  ;;  %3581 = vmatpush1.bf16.msra.mxu0 %v7628_v29  ;;  %v7638_v31 = vld [vmem:[#allocation62_spill] sm:$0xff] }
 0x8a4   :  { %3541 = vmatprep.subr.bf16.mxu1 %v7629_v19  ;;  %3582 = vmatprep.subr.bf16.mxu0 %v7630_v15  ;;  %v7639_v29 = vld [vmem:[#allocation34_spill] sm:$0xff]  ;;  %v7640_v19 = vld [vmem:[#allocation64_spill] sm:$0xff]  ;;  %v7641_v15 = vld [vmem:[#allocation35_spill] sm:$0xff] }
 0x8a7   :  { %3542 = vmatpush1.bf16.msra.mxu1 %v7631_v20  ;;  %3583 = vmatpush1.bf16.msra.mxu0 %v7632_v62  ;;  %v7642_v20 = vld [vmem:[#allocation66_spill] sm:$0xff]  ;;  %v7643_v62 = vld [vmem:[#allocation37_spill] sm:$0xff] }
 0x8a8   :  { %3543 = vmatprep.subr.bf16.mxu1 %v7633_v11  ;;  %3584 = vmatprep.subr.bf16.mxu0 %v7634_v50  ;;  %v7644_v11 = vld [vmem:[#allocation68_spill] sm:$0xff]  ;;  %v7645_v50 = vld [vmem:[#allocation39_spill] sm:$0xff] }
 0x8ab   :  { %3544 = vmatpush1.bf16.msra.mxu1 %v7635_v4  ;;  %3585 = vmatpush1.bf16.msra.mxu0 %v7636_v27  ;;  %v7646_v4 = vld [vmem:[#allocation70_spill] sm:$0xff]  ;;  %v7647_v27 = vld [vmem:[#allocation41_spill] sm:$0xff] }
 0x8ac   :  { %3545 = vmatprep.subr.bf16.mxu1 %v7637_v1  ;;  %3586 = vmatprep.subr.bf16.mxu0 %v7638_v31  ;;  %v7648_v1 = vld [vmem:[#allocation72_spill] sm:$0xff]  ;;  %v7649_v31 = vld [vmem:[#allocation43_spill] sm:$0xff] }
 0x8af   :  { %3546 = vmatpush1.bf16.msra.mxu1 %v7639_v29  ;;  %3587 = vmatpush1.bf16.msra.mxu0 %v7640_v19  ;;  %v7650_v29 = vld [vmem:[#allocation74_spill] sm:$0xff]  ;;  %v7651_v19 = vld [vmem:[#allocation45_spill] sm:$0xff] }
 0x8b0   :  { %3547 = vmatprep.subr.bf16.mxu1 %v7641_v15  ;;  %3588 = vmatprep.subr.bf16.mxu0 %v7642_v20  ;;  %v7652_v15 = vld [vmem:[#allocation76_spill] sm:$0xff]  ;;  %v7653_v20 = vld [vmem:[#allocation47_spill] sm:$0xff] }
 0x8b3   :  { %3548 = vmatpush1.bf16.msra.mxu1 %v7643_v62  ;;  %3589 = vmatpush1.bf16.msra.mxu0 %v7644_v11  ;;  %v7654_v62 = vld [vmem:[#allocation78_spill] sm:$0xff]  ;;  %v7655_v11 = vld [vmem:[#allocation49_spill] sm:$0xff] }
 0x8b4   :  { %3549 = vmatprep.subr.bf16.mxu1 %v7645_v50  ;;  %3590 = vmatprep.subr.bf16.mxu0 %v7646_v4  ;;  %v7656_v50 = vld [vmem:[#allocation80_spill] sm:$0xff]  ;;  %v7657_v4 = vld [vmem:[#allocation51_spill] sm:$0xff] }
 0x8b7   :  { %3550 = vmatpush1.bf16.msra.mxu1 %v7647_v27  ;;  %3591 = vmatpush1.bf16.msra.mxu0 %v7648_v1  ;;  %v7658_v27 = vld [vmem:[#allocation82_spill] sm:$0xff]  ;;  %v7659_v1 = vld [vmem:[#allocation53_spill] sm:$0xff] }
 0x8b8   :  { %3551 = vmatprep.subr.bf16.mxu1 %v7649_v31  ;;  %3592 = vmatprep.subr.bf16.mxu0 %v7650_v29  ;;  %v7660_v31 = vld [vmem:[#allocation84_spill] sm:$0xff]  ;;  %v7661_v29 = vld [vmem:[#allocation55_spill] sm:$0xff] }
 0x8bb   :  { %3552 = vmatpush1.bf16.msra.mxu1 %v7651_v19  ;;  %3593 = vmatpush1.bf16.msra.mxu0 %v7652_v15  ;;  %v7662_v19 = vld [vmem:[#allocation86_spill] sm:$0xff]  ;;  %v7663_v15 = vld [vmem:[#allocation57_spill] sm:$0xff] }
 0x8bc   :  { %3553 = vmatprep.subr.bf16.mxu1 %v7653_v20  ;;  %3594 = vmatprep.subr.bf16.mxu0 %v7654_v62  ;;  %v7664_v20 = vld [vmem:[#allocation88_spill] sm:$0xff]  ;;  %v7665_v62 = vld [vmem:[#allocation59_spill] sm:$0xff] }
 0x8bf   :  { %3554 = vmatpush1.bf16.msra.mxu1 %v7655_v11  ;;  %3595 = vmatpush1.bf16.msra.mxu0 %v7656_v50  ;;  %v7666_v11 = vld [vmem:[#allocation90_spill] sm:$0xff]  ;;  %v7667_v50 = vld [vmem:[#allocation61_spill] sm:$0xff] }
 0x8c0   :  { %3555 = vmatprep.subr.bf16.mxu1 %v7657_v4  ;;  %3596 = vmatprep.subr.bf16.mxu0 %v7658_v27  ;;  %v7668_v4 = vld [vmem:[#allocation92_spill] sm:$0xff]  ;;  %v7669_v27 = vld [vmem:[#allocation63_spill] sm:$0xff] }
 0x8c3   :  { %3556 = vmatpush1.bf16.msra.mxu1 %v7659_v1  ;;  %3597 = vmatpush1.bf16.msra.mxu0 %v7660_v31  ;;  %v7670_v1 = vld [vmem:[#allocation94_spill] sm:$0xff]  ;;  %v7671_v31 = vld [vmem:[#allocation65_spill] sm:$0xff] }
 0x8c4   :  { %3557 = vmatprep.subr.bf16.mxu1 %v7661_v29  ;;  %3598 = vmatprep.subr.bf16.mxu0 %v7662_v19  ;;  %v7672_v29 = vld [vmem:[#allocation96_spill] sm:$0xff]  ;;  %v7673_v19 = vld [vmem:[#allocation67_spill] sm:$0xff] }
 0x8c7   :  { %3558 = vmatpush1.bf16.msra.mxu1 %v7663_v15  ;;  %3599 = vmatpush1.bf16.msra.mxu0 %v7664_v20  ;;  %v7674_v15 = vld [vmem:[#allocation98_spill] sm:$0xff] }
 0x8c8   :  { %3559 = vmatprep.subr.bf16.mxu1 %v7665_v62  ;;  %3600 = vmatprep.subr.bf16.mxu0 %v7666_v11 }
 0x8cb   :  { %3560 = vmatpush1.bf16.msra.mxu1 %v7667_v50  ;;  %3601 = vmatpush1.bf16.msra.mxu0 %v7668_v4 }
 0x8cc   :  { %3561 = vmatprep.subr.bf16.mxu1 %v7669_v27  ;;  %3602 = vmatprep.subr.bf16.mxu0 %v7670_v1 }
 0x8cf   :  { %3562 = vmatpush1.bf16.msra.mxu1 %v7671_v31  ;;  %3603 = vmatpush1.bf16.msra.mxu0 %v7672_v29 }
 0x8d0   :  { %3613 = vmatprep.subr.bf16.mxu1 %v7673_v19  ;;  %3654 = vmatprep.subr.bf16.mxu0 %v7674_v15 }
 0x925   :  { %v3321_v20 = vpop.f32.mrb[80].mxu1  ;;  %v3362_v62 = vpop.f32.mrb[96].mxu0 }
 0x926   :  { %v3451_v11 = vadd.f32 %v3321_v20, %v7675_v7  ;;  %v3453_v50 = vadd.f32 %v3362_v62, %v7676_v60  ;;  %v3323_v34 = vpop.f32.mrb[81].mxu1  ;;  %v3364_v4 = vpop.f32.mrb[97].mxu0 }
 0x927   :  { %v3452_v27 = vadd.f32 %v3323_v34, %v7677_v46  ;;  %v3454_v1 = vadd.f32 %v3364_v4, %v7678_v17  ;;  %v3325_v24 = vpop.f32.mrb[82].mxu1  ;;  %v3366_v31 = vpop.f32.mrb[98].mxu0 }
 0x928   :  { %v4022_v30 = vmul.f32 -1.442695, %v3453_v50  ;;  %v3326_v29 = vpop.f32.mrb[83].mxu1  ;;  %v3367_v38 = vpop.f32.mrb[99].mxu0  ;;  %v4020_v24 = vmul.f32 -1.442695, %v3451_v11 }
 0x929   :  { %v4023_v19 = vmul.f32 -1.442695, %v3454_v1  ;;  %v4021_v34 = vmul.f32 -1.442695, %v3452_v27  ;;  %v7680_v31 = vld [vmem:[#allocation195_spill] sm:$0xff]  ;;  %v7682_v11 = vld [vmem:[#allocation197_spill] sm:$0xff] }
 0x92a   :  { %4245 = vpow2.f32 %v4022_v30 }
 0x92b   :  { %4247 = vpow2.f32 %v4023_v19 }
 0x934   :  { %v4246_v15 = vpop.eup %4245 }
 0x935   :  { %v3477_v56 = vadd.f32 1.0, %v4246_v15  ;;  %v4248_v54 = vpop.eup %4247 }
 0x936   :  { %v3478_v7 = vadd.f32 1.0, %v4248_v54 }
 0x937   :  { %4249 = vrcp.f32 %v3477_v56  ;;  %v7679_v56 = vld [vmem:[#allocation193_spill] sm:$0xff] }
 0x938   :  { %4251 = vrcp.f32 %v3478_v7  ;;  %v7681_v7 = vld [vmem:[#allocation194_spill] sm:$0xff] }
 0x939   :  { %4253 = vpow2.f32 %v4020_v24 }
 0x93a   :  { %4255 = vpow2.f32 %v4021_v34 }
 0x941   :  { %v4250_v60 = vpop.eup %4249 }
 0x942   :  { %v3497_v20 = vmul.f32 %v4250_v60, %v6262_v35  ;;  %v4252_v46 = vpop.eup %4251 }
 0x943   :  { %v3498_v17 = vmul.f32 %v4252_v46, %v6267_v21  ;;  %v4254_v38 = vpop.eup %4253 }
 0x944   :  { %v4256_v62 = vpop.eup %4255  ;;  %v3465_v30 = vadd.f32 1.0, %v4254_v38 }
 0x945   :  { %v3466_v50 = vadd.f32 1.0, %v4256_v62 }
 0x946   :  { %4257 = vrcp.f32 %v3465_v30 }
 0x947   :  { %4259 = vrcp.f32 %v3466_v50 }
 0x950   :  { %v4258_v30 = vpop.eup %4257 }
 0x965   :  { %v3403_v4 = vpop.f32.mrb[84].mxu1  ;;  %v3444_v1 = vpop.f32.mrb[100].mxu0 }
 0x966   :  { %v3455_v54 = vadd.f32 %v3403_v4, %v7679_v56  ;;  %v3457_v29 = vadd.f32 %v3444_v1, %v7680_v31  ;;  %v3405_v19 = vpop.f32.mrb[85].mxu1  ;;  %v3446_v15 = vpop.f32.mrb[101].mxu0 }
 0x967   :  { %v3456_v60 = vadd.f32 %v3405_v19, %v7681_v7  ;;  %v3458_v27 = vadd.f32 %v3446_v15, %v7682_v11  ;;  %v3407_v46 = vpop.f32.mrb[86].mxu1  ;;  %v3448_v24 = vpop.f32.mrb[102].mxu0  ;;  %v7683_v11 = vld [vmem:[#allocation211_spill] sm:$0xff] }
 0x968   :  { %4261 = vtanh.f32 %v3455_v54  ;;  %v4024_v34 = vmul.f32 -1.442695, %v3457_v29  ;;  %v3408_v38 = vpop.f32.mrb[87].mxu1  ;;  %v3449_v62 = vpop.f32.mrb[103].mxu0  ;;  %vm3510_vm10 = vcmp.gt.f32.partialorder %v7683_v11, 0.0  ;;  %v7684_v46 = vld [vmem:[#allocation212_spill] sm:$0xff] }
 0x969   :  { %4263 = vtanh.f32 %v3456_v60  ;;  %v4025_v33 = vmul.f32 -1.442695, %v3458_v27  ;;  %v4260_v4 = vpop.eup %4259  ;;  %vm3511_vm11 = vcmp.gt.f32.partialorder %v7684_v46, 0.0  ;;  %vm3518_vm13 = vmpackc.low %vm3510_vm10, %vm3510_vm10 }
 0x96a   :  { %4265 = vpow2.f32 %v4024_v34  ;;  %vm3519_vm12 = vmpackc.low %vm3511_vm11, %vm3511_vm11 }
 0x96b   :  { %4267 = vpow2.f32 %v4025_v33 }
 0x972   :  { %v4262_v1 = vpop.eup %4261 }
 0x973   :  { %v4264_v56 = vpop.eup %4263  ;;  %v3499_v31 = vmul.f32 %v4262_v1, %v4258_v30 }
 0x974   :  { %v4266_v50 = vpop.eup %4265  ;;  %v3500_v9 = vmul.f32 %v4264_v56, %v4260_v4 }
 0x975   :  { %v4268_v19 = vpop.eup %4267  ;;  %v3501_v7 = vadd.f32 %v3499_v31, %v3497_v20  ;;  %v3491_v15 = vadd.f32 1.0, %v4266_v50 }
 0x976   :  { %v3502_v54 = vadd.f32 %v3500_v9, %v3498_v17  ;;  %v3492_v29 = vadd.f32 1.0, %v4268_v19 }
 0x977   :  { %4269 = vtanh.f32 %v3501_v7  ;;  %v6442_v33 = vsel %vm3510_vm10, %v3501_v7, %v6262_v35 }
 0x978   :  { %4271 = vrcp.f32 %v3491_v15  ;;  %v6447_v60 = vsel %vm3511_vm11, %v3502_v54, %v6267_v21 }
 0x979   :  { %4273 = vtanh.f32 %v3502_v54 }
 0x97a   :  { %4275 = vrcp.f32 %v3492_v29 }
 0x981   :  { %v4270_v20 = vpop.eup %4269 }
 0x982   :  { %v4272_v27 = vpop.eup %4271 }
 0x983   :  { %v4274_v9 = vpop.eup %4273  ;;  %v3505_v17 = vmul.f32 %v4272_v27, %v4270_v20 }
 0x984   :  { %v4276_v24 = vpop.eup %4275 }
 0x985   :  { %v3506_v34 = vmul.f32 %v4276_v24, %v4274_v9  ;;  %v6452_v38 = vsel %vm3510_vm10, %v3505_v17, %v6272_v51  ;;  %v3516_v35 = vpack.c.bf16 %v3505_v17, %v3505_v17 }
 0x987   :  { %v3517_v62 = vpack.c.bf16 %v3506_v34, %v3506_v34  ;;  %v6457_v21 = vsel %vm3511_vm11, %v3506_v34, %v6277_v13  ;;  %v6467_v51 = vsel %vm3518_vm13, %v3516_v35, %v6291_v25  ;;  %v7714_v13 = vld [vmem:[#allocation170_spill] sm:$0xff]  ;;  %v7715_v25 = vld [vmem:[#allocation172_spill] sm:$0xff] }
 0x989   :  { %v3521_v30 = vsel %vm3519_vm12, %v3517_v62, %v6286_v32 }
 0x98a   :  { %3563 = vmatprep.mubr.bf16.mxu1 %v3521_v30  ;;  %3604 = vmatprep.mubr.bf16.mxu0 %v3521_v30 }
 0x98b   :  { %3564 = vmatmul.mubr.bf16.vlgmr.msra.gmra.mrb[88].mxu1 %v6467_v51  ;;  %3605 = vmatmul.mubr.bf16.vlgmr.msra.gmra.mrb[104].mxu0 %v6467_v51 }
 0x98c   :  { %3614 = vmatpush1.bf16.msra.mxu1 %v7061_v45  ;;  %3655 = vmatpush1.bf16.msra.mxu0 %v7062_v57  ;;  %v7686_v45 = vld [vmem:[#allocation105_spill] sm:$0xff]  ;;  %v7687_v57 = vld [vmem:[#allocation132_spill] sm:$0xff] }
 0x98d   :  { %3645 = vmatprep.mubr.bf16.mxu1 %v3521_v30  ;;  %3686 = vmatprep.mubr.bf16.mxu0 %v3521_v30 }
 0x98e   :  { %3615 = vmatprep.subr.bf16.mxu1 %v7063_v10  ;;  %3656 = vmatprep.subr.bf16.mxu0 %v7064_v47  ;;  %v7688_v10 = vld [vmem:[#allocation107_spill] sm:$0xff]  ;;  %v7689_v47 = vld [vmem:[#allocation133_spill] sm:$0xff] }
 0x990   :  { %3616 = vmatpush1.bf16.msra.mxu1 %v7065_v8  ;;  %3657 = vmatpush1.bf16.msra.mxu0 %v7066_v5  ;;  %v7690_v8 = vld [vmem:[#allocation109_spill] sm:$0xff]  ;;  %v7691_v5 = vld [vmem:[#allocation134_spill] sm:$0xff] }
 0x991   :  { %3617 = vmatprep.subr.bf16.mxu1 %v7067_v2  ;;  %3658 = vmatprep.subr.bf16.mxu0 %v7068_v26  ;;  %v7692_v2 = vld [vmem:[#allocation111_spill] sm:$0xff]  ;;  %v7694_v26 = vld [vmem:[#allocation113_spill] sm:$0xff] }
 0x994   :  { %3618 = vmatpush1.bf16.msra.mxu1 %v7069_v61  ;;  %3659 = vmatpush1.bf16.msra.mxu0 %v7070_v55  ;;  %v7696_v61 = vld [vmem:[#allocation115_spill] sm:$0xff]  ;;  %v7697_v55 = vld [vmem:[#allocation137_spill] sm:$0xff] }
 0x995   :  { %3619 = vmatprep.subr.bf16.mxu1 %v7071_v63  ;;  %3660 = vmatprep.subr.bf16.mxu0 %v7072_v37  ;;  %v7698_v63 = vld [vmem:[#allocation116_spill] sm:$0xff]  ;;  %v7699_v37 = vld [vmem:[#allocation138_spill] sm:$0xff] }
 0x998   :  { %3620 = vmatpush1.bf16.msra.mxu1 %v7073_v36  ;;  %3661 = vmatpush1.bf16.msra.mxu0 %v7074_v41  ;;  %v7700_v36 = vld [vmem:[#allocation118_spill] sm:$0xff]  ;;  %v7701_v41 = vld [vmem:[#allocation139_spill] sm:$0xff] }
 0x999   :  { %3621 = vmatprep.subr.bf16.mxu1 %v7075_v18  ;;  %3662 = vmatprep.subr.bf16.mxu0 %v7076_v23  ;;  %v7702_v18 = vld [vmem:[#allocation120_spill] sm:$0xff] }
 0x99a   :  { %v7703_v23 = vld [vmem:[#allocation140_spill] sm:$0xff] }
 0x99c   :  { %3622 = vmatpush1.bf16.msra.mxu1 %v7077_v53  ;;  %3663 = vmatpush1.bf16.msra.mxu0 %v4927_v44  ;;  %v7685_v44 = vld [vmem:[#allocation131_spill] sm:$0xff]  ;;  %v7704_v53 = vld [vmem:[#allocation122_spill] sm:$0xff] }
 0x99d   :  { %3623 = vmatprep.subr.bf16.mxu1 %v7078_v42  ;;  %3664 = vmatprep.subr.bf16.mxu0 %v7079_v58  ;;  %v7705_v42 = vld [vmem:[#allocation141_spill] sm:$0xff]  ;;  %v7706_v58 = vld [vmem:[#allocation124_spill] sm:$0xff] }
 0x9a0   :  { %3624 = vmatpush1.bf16.msra.mxu1 %v7080_v48  ;;  %3665 = vmatpush1.bf16.msra.mxu0 %v7168_v3  ;;  %v7707_v48 = vld [vmem:[#allocation142_spill] sm:$0xff] }
 0x9a1   :  { %3625 = vmatprep.subr.bf16.mxu1 %v7081_v43  ;;  %3666 = vmatprep.subr.bf16.mxu0 %v7169_v39  ;;  %v7708_v43 = vld [vmem:[#allocation126_spill] sm:$0xff]  ;;  %v7712_v39 = vld [vmem:[#allocation168_spill] sm:$0xff] }
 0x9a4   :  { %3626 = vmatpush1.bf16.msra.mxu1 %v7082_v6  ;;  %3667 = vmatpush1.bf16.msra.mxu0 %v7170_v22  ;;  %v7709_v6 = vld [vmem:[#allocation143_spill] sm:$0xff] }
 0x9a5   :  { %3627 = vmatprep.subr.bf16.mxu1 %v7083_v40  ;;  %3668 = vmatprep.subr.bf16.mxu0 %v7171_v49  ;;  %v7710_v40 = vld [vmem:[#allocation128_spill] sm:$0xff]  ;;  %v7713_v49 = vld [vmem:[#allocation171_spill] sm:$0xff] }
 0x9a8   :  { %3628 = vmatpush1.bf16.msra.mxu1 %v7084_v52  ;;  %3669 = vmatpush1.bf16.msra.mxu0 %v7172_v16  ;;  %v7711_v52 = vld [vmem:[#allocation144_spill] sm:$0xff] }
 0x9a9   :  { %3629 = vmatprep.subr.bf16.mxu1 %v7085_v12  ;;  %3670 = vmatprep.subr.bf16.mxu0 %v7173_v59 }
 0x9ac   :  { %3630 = vmatpush1.bf16.msra.mxu1 %v7086_v0  ;;  %3671 = vmatpush1.bf16.msra.mxu0 %v7174_v28  ;;  %v7693_v0 = vld [vmem:[#allocation135_spill] sm:$0xff] }
 0x9ad   :  { %3631 = vmatprep.subr.bf16.mxu1 %v7087_v14  ;;  %3672 = vmatprep.subr.bf16.mxu0 %v7685_v44  ;;  %v7695_v14 = vld [vmem:[#allocation136_spill] sm:$0xff] }
 0x9b0   :  { %3632 = vmatpush1.bf16.msra.mxu1 %v7686_v45  ;;  %3673 = vmatpush1.bf16.msra.mxu0 %v7687_v57  ;;  %v7716_v45 = vld [vmem:[#allocation196_spill] sm:$0xff] }
 0x9b1   :  { %3633 = vmatprep.subr.bf16.mxu1 %v7688_v10  ;;  %3674 = vmatprep.subr.bf16.mxu0 %v7689_v47  ;;  %v7717_v10 = vld [vmem:[#allocation199_spill] sm:$0xff] }
 0x9b4   :  { %3634 = vmatpush1.bf16.msra.mxu1 %v7690_v8  ;;  %3675 = vmatpush1.bf16.msra.mxu0 %v7691_v5  ;;  %v7718_v5 = vld [vmem:[#allocation198_spill] sm:$0xff] }
 0x9b5   :  { %3635 = vmatprep.subr.bf16.mxu1 %v7692_v2  ;;  %3676 = vmatprep.subr.bf16.mxu0 %v7693_v0  ;;  %v7719_v2 = vld [vmem:[#allocation200_spill] sm:$0xff] }
 0x9b8   :  { %3636 = vmatpush1.bf16.msra.mxu1 %v7694_v26  ;;  %3677 = vmatpush1.bf16.msra.mxu0 %v7695_v14 }
 0x9b9   :  { %3637 = vmatprep.subr.bf16.mxu1 %v7696_v61  ;;  %3678 = vmatprep.subr.bf16.mxu0 %v7697_v55 }
 0x9bc   :  { %3638 = vmatpush1.bf16.msra.mxu1 %v7698_v63  ;;  %3679 = vmatpush1.bf16.msra.mxu0 %v7699_v37 }
 0x9bd   :  { %3639 = vmatprep.subr.bf16.mxu1 %v7700_v36  ;;  %3680 = vmatprep.subr.bf16.mxu0 %v7701_v41 }
 0x9c0   :  { %3640 = vmatpush1.bf16.msra.mxu1 %v7702_v18  ;;  %3681 = vmatpush1.bf16.msra.mxu0 %v7703_v23 }
 0x9c1   :  { %3641 = vmatprep.subr.bf16.mxu1 %v7704_v53  ;;  %3682 = vmatprep.subr.bf16.mxu0 %v7705_v42 }
 0x9c4   :  { %3642 = vmatpush1.bf16.msra.mxu1 %v7706_v58  ;;  %3683 = vmatpush1.bf16.msra.mxu0 %v7707_v48 }
 0x9c5   :  { %3643 = vmatprep.subr.bf16.mxu1 %v7708_v43  ;;  %3684 = vmatprep.subr.bf16.mxu0 %v7709_v6 }
 0x9c8   :  { %3644 = vmatpush1.bf16.msra.mxu1 %v7710_v40  ;;  %3685 = vmatpush1.bf16.msra.mxu0 %v7711_v52 }
 0x9cb   :  { %3646 = vmatmul.mubr.bf16.vlgmr.msra.gmra.mrb[92].mxu1 %v6467_v51  ;;  %3687 = vmatmul.mubr.bf16.vlgmr.msra.gmra.mrb[108].mxu0 %v6467_v51 }
 0xa5e   :  { %v3565_v12 = vpop.f32.mrb[88].mxu1  ;;  %v3606_v3 = vpop.f32.mrb[104].mxu0 }
 0xa5f   :  { %v3695_v22 = vadd.f32 %v3565_v12, %v7712_v39  ;;  %v3697_v16 = vadd.f32 %v3606_v3, %v7713_v49  ;;  %v3567_v59 = vpop.f32.mrb[89].mxu1  ;;  %v3608_v28 = vpop.f32.mrb[105].mxu0 }
 0xa60   :  { %v3696_v32 = vadd.f32 %v3567_v59, %v7714_v13  ;;  %v3698_v4 = vadd.f32 %v3608_v28, %v7715_v25  ;;  %v3569_v1 = vpop.f32.mrb[90].mxu1  ;;  %v3610_v56 = vpop.f32.mrb[106].mxu0  ;;  %v7721_v13 = vld [vmem:[#allocation214_spill] sm:$0xff] }
 0xa61   :  { %v4028_v31 = vmul.f32 -1.442695, %v3697_v16  ;;  %v3570_v50 = vpop.f32.mrb[91].mxu1  ;;  %v3611_v19 = vpop.f32.mrb[107].mxu0  ;;  %v4026_v17 = vmul.f32 -1.442695, %v3695_v22 }
 0xa62   :  { %v4029_v7 = vmul.f32 -1.442695, %v3698_v4  ;;  %v4027_v24 = vmul.f32 -1.442695, %v3696_v32  ;;  %v7720_v16 = vld [vmem:[#allocation213_spill] sm:$0xff]  ;;  %vm3755_vm15 = vcmp.gt.f32.partialorder %v7721_v13, 0.0 }
 0xa63   :  { %4277 = vpow2.f32 %v4028_v31  ;;  %vm3754_vm14 = vcmp.gt.f32.partialorder %v7720_v16, 0.0 }
 0xa64   :  { %4279 = vpow2.f32 %v4029_v7 }
 0xa6d   :  { %v4278_v15 = vpop.eup %4277 }
 0xa6e   :  { %v3721_v11 = vadd.f32 1.0, %v4278_v15  ;;  %v4280_v54 = vpop.eup %4279 }
 0xa6f   :  { %v3722_v29 = vadd.f32 1.0, %v4280_v54 }
 0xa70   :  { %4281 = vrcp.f32 %v3721_v11 }
 0xa71   :  { %4283 = vrcp.f32 %v3722_v29 }
 0xa72   :  { %4285 = vpow2.f32 %v4026_v17 }
 0xa73   :  { %4287 = vpow2.f32 %v4027_v24 }
 0xa7a   :  { %v4282_v46 = vpop.eup %4281 }
 0xa7b   :  { %v3741_v20 = vmul.f32 %v4282_v46, %v6442_v33  ;;  %v4284_v27 = vpop.eup %4283 }
 0xa7c   :  { %v3742_v9 = vmul.f32 %v4284_v27, %v6447_v60  ;;  %v4286_v34 = vpop.eup %4285 }
 0xa7d   :  { %v4288_v35 = vpop.eup %4287  ;;  %v3709_v62 = vadd.f32 1.0, %v4286_v34 }
 0xa7e   :  { %v3710_v30 = vadd.f32 1.0, %v4288_v35 }
 0xa7f   :  { %4289 = vrcp.f32 %v3709_v62 }
 0xa80   :  { %4291 = vrcp.f32 %v3710_v30 }
 0xa89   :  { %v4290_v36 = vpop.eup %4289 }
 0xa8a   :  { %v4292_v41 = vpop.eup %4291 }
 0xa9e   :  { %v3647_v51 = vpop.f32.mrb[92].mxu1  ;;  %v3688_v44 = vpop.f32.mrb[108].mxu0 }
 0xa9f   :  { %v3699_v57 = vadd.f32 %v3647_v51, %v7716_v45  ;;  %v3701_v47 = vadd.f32 %v3688_v44, %v7717_v10  ;;  %v3649_v8 = vpop.f32.mrb[93].mxu1  ;;  %v3690_v33 = vpop.f32.mrb[109].mxu0 }
 0xaa0   :  { %v3700_v60 = vadd.f32 %v3649_v8, %v7718_v5  ;;  %v3702_v0 = vadd.f32 %v3690_v33, %v7719_v2  ;;  %v3651_v26 = vpop.f32.mrb[94].mxu1  ;;  %v3692_v14 = vpop.f32.mrb[110].mxu0 }
 0xaa1   :  { %4293 = vtanh.f32 %v3699_v57  ;;  %v4030_v61 = vmul.f32 -1.442695, %v3701_v47  ;;  %v3652_v55 = vpop.f32.mrb[95].mxu1  ;;  %v3693_v63 = vpop.f32.mrb[111].mxu0 }
 0xaa2   :  { %4295 = vtanh.f32 %v3700_v60  ;;  %v4031_v37 = vmul.f32 -1.442695, %v3702_v0 }
 0xaa3   :  { %4297 = vpow2.f32 %v4030_v61 }
 0xaa4   :  { %4299 = vpow2.f32 %v4031_v37 }
 0xaab   :  { %v4294_v18 = vpop.eup %4293 }
 0xaac   :  { %v4296_v23 = vpop.eup %4295  ;;  %v3743_v53 = vmul.f32 %v4294_v18, %v4290_v36 }
 0xaad   :  { %v4298_v42 = vpop.eup %4297  ;;  %v3744_v58 = vmul.f32 %v4296_v23, %v4292_v41 }
 0xaae   :  { %v4300_v48 = vpop.eup %4299  ;;  %v3745_v43 = vadd.f32 %v3743_v53, %v3741_v20  ;;  %v3735_v6 = vadd.f32 1.0, %v4298_v42 }
 0xaaf   :  { %v3746_v40 = vadd.f32 %v3744_v58, %v3742_v9  ;;  %v3736_v52 = vadd.f32 1.0, %v4300_v48 }
 0xab0   :  { %4301 = vtanh.f32 %v3745_v43 }
 0xab1   :  { %4303 = vrcp.f32 %v3735_v6 }
 0xab2   :  { %4305 = vtanh.f32 %v3746_v40 }
 0xab3   :  { %4307 = vrcp.f32 %v3736_v52 }
 0xaba   :  { %v4302_v12 = vpop.eup %4301 }
 0xabb   :  { %v4304_v3 = vpop.eup %4303 }
 0xabc   :  { %v4306_v39 = vpop.eup %4305  ;;  %v3749_v22 = vmul.f32 %v4304_v3, %v4302_v12 }
 0xabd   :  { %v4308_v49 = vpop.eup %4307 }
 0xabe   :  { %v3750_v59 = vmul.f32 %v4308_v49, %v4306_v39  ;;  %v3756_v28 = vsel %vm3754_vm14, %v3749_v22, %v6452_v38 }
 0xabf   :  { %3758 = vst [vmem:[#allocation13] sm:$0xff] %v3756_v28 }
 0xac0   :  { %v3757_v32 = vsel %vm3755_vm15, %v3750_v59, %v6457_v21 }
 0xac1   :  { %3759 = vst [vmem:[#allocation13 + $0x8] sm:$0xff] %v3757_v32 }
 0xac2   :  { %4430 = shalt.err (!%p4427_p2)
}
 0xac3   :  { %s4431_s14 = scalar_lea.hbm %s6567_s6, 256 }
 0xac4   :  { %p4432_p3 = scmp.ne.s32.totalorder %s6567_s6, %s4431_s14  ;;  %p4435_p4 = scmp.lt.u32.totalorder %s4431_s14, %s6567_s6 }
 0xac6   :  { %p4437_p5 = pnand %p4435_p4, %p4432_p3 }
 0xac8   :  { %4440 = shalt.err (!%p4437_p5)
}
 0xac9   :  { %3769 = dma.vmem_to_hbm [thread:$0]  %s3767_s21, 256, %s6567_s6, [#allocation6]  }
 0xaca   :  { %4447 = dma.done.wait [#allocation6], 256  }
 0xacb   :  { %4448 = vsyncadd [#allocation6], 4294967040 }
 0xacc   :  { %3773 = vsyncpa [#allocation5], 1 }
 0xacd   :  { %3774 = vsyncpa [#allocation8], 1 }
 0xace   :  { %3775 = vsyncpa [#allocation11], 1 }
 0xacf   :  { %3776 = vsyncpa [#allocation6], 1 }

</bundles_post_ra>
